<compile_context>
chip_gen: v7x
topology: tpu7x:2x2x1
jax: 0.10.0
libtpu: 0.0.40
codegen_flags: <defaults>
</compile_context>

<pallas_src>
import functools

import jax
import jax.numpy as jnp
from jax.experimental import pallas as pl
from jax.experimental.pallas import tpu as pltpu


LRELU_SLOPE = 0.2
BN_EPS = 1e-5


def _round_up(x, m):
    return (x + m - 1) // m * m


def _apply_act(y, act):
    if act == "lrelu":
        return jnp.where(y > 0, y, LRELU_SLOPE * y)
    if act == "sigmoid":
        return jax.nn.sigmoid(y)
    return y


# ------------------------------ Pallas kernels ------------------------------

def _conv_bias_act_kernel(a_ref, w_ref, b_ref, o_ref, *, act):
    """Non-BN conv layer: o = act((A @ W) + bias).  bf16 operands, f32 acc."""
    acc = jnp.dot(a_ref[...], w_ref[...], preferred_element_type=jnp.float32)
    o_ref[...] = _apply_act(acc + b_ref[0:1, :], act)


def _conv_bn_act_kernel(a_ref, w_ref, gb_ref, o_ref, sum_ref, sq_ref,
                        *, n_tiles, inv_m, act):
    """Fully fused BN conv layer (bias-free conv, training-mode BatchNorm,
    spectral-normalized gamma, LeakyReLU) in a single pallas_call.

    The raw GEMM output Y stays resident in the output VMEM block (constant
    out index_map across the M grid axis); per-channel sum / sumsq accumulate
    into (8, OCp) VMEM scratch.  At the last grid step the per-channel affine
    is computed and applied tile-by-tile in place.  Zero-padded A rows yield
    exact-zero Y rows, so they never contaminate the statistics (we divide by
    the true m, not the padded mp).
    """
    i = pl.program_id(0)

    @pl.when(i == 0)
    def _init():
        sum_ref[...] = jnp.zeros_like(sum_ref)
        sq_ref[...] = jnp.zeros_like(sq_ref)

    acc = jnp.dot(a_ref[...], w_ref[...], preferred_element_type=jnp.float32)
    tm, ocp = acc.shape
    row0 = pl.multiple_of(i * tm, tm)
    o_ref[pl.ds(row0, tm), :] = acc          # raw Y into the resident block

    # Sublane-partial stats: (tm//8, 8, OCp) -> (8, OCp) with pure VPU adds.
    a3 = acc.reshape(tm // 8, 8, ocp)
    sum_ref[...] += jnp.sum(a3, axis=0)
    sq_ref[...] += jnp.sum(a3 * a3, axis=0)

    @pl.when(i == n_tiles - 1)
    def _finalize():
        s = jnp.sum(sum_ref[...], axis=0, keepdims=True)   # (1, OCp)
        q = jnp.sum(sq_ref[...], axis=0, keepdims=True)
        mean = s * inv_m
        var = q * inv_m - mean * mean        # biased variance (training BN)
        gamma = gb_ref[0:1, :]
        beta = gb_ref[1:2, :]
        # spectral_norm of the (C,1) gamma "matrix" == its L2 norm
        gnorm_sq = jnp.sum(gamma * gamma, axis=1, keepdims=True)     # (1, 1)
        gamma_eff = gamma * jax.lax.rsqrt(gnorm_sq + 1e-12)
        scale = gamma_eff * jax.lax.rsqrt(var + BN_EPS)
        shift = beta - mean * scale

        def _apply_tile(j, carry):
            off = pl.multiple_of(j * tm, tm)
            blk = o_ref[pl.ds(off, tm), :]
            o_ref[pl.ds(off, tm), :] = _apply_act(blk * scale + shift, act)
            return carry

        jax.lax.fori_loop(0, n_tiles, _apply_tile, 0, unroll=True)


# ------------------------------ Pallas wrappers ------------------------------

def pallas_conv_bias_act(a_p, w_p, b_p, tm, act):
    mp, kp = a_p.shape
    ocp = w_p.shape[1]
    return pl.pallas_call(
        functools.partial(_conv_bias_act_kernel, act=act),
        out_shape=jax.ShapeDtypeStruct((mp, ocp), jnp.float32),
        grid_spec=pltpu.PrefetchScalarGridSpec(
            num_scalar_prefetch=0,
            grid=(mp // tm,),
            in_specs=[
                pl.BlockSpec((tm, kp), lambda i: (i, 0)),
                pl.BlockSpec((kp, ocp), lambda i: (0, 0)),
                pl.BlockSpec((8, ocp), lambda i: (0, 0)),
            ],
            out_specs=pl.BlockSpec((tm, ocp), lambda i: (i, 0)),
        ),
        compiler_params=pltpu.CompilerParams(
            dimension_semantics=("parallel",)),
    )(a_p, w_p, b_p)


def pallas_conv_bn_act(a_p, w_p, gb_p, tm, m, act):
    mp, kp = a_p.shape
    ocp = w_p.shape[1]
    n_tiles = mp // tm
    return pl.pallas_call(
        functools.partial(_conv_bn_act_kernel,
                          n_tiles=n_tiles, inv_m=1.0 / m, act=act),
        out_shape=jax.ShapeDtypeStruct((mp, ocp), jnp.float32),
        grid_spec=pltpu.PrefetchScalarGridSpec(
            num_scalar_prefetch=0,
            grid=(n_tiles,),
            in_specs=[
                pl.BlockSpec((tm, kp), lambda i: (i, 0)),
                pl.BlockSpec((kp, ocp), lambda i: (0, 0)),
                pl.BlockSpec((8, ocp), lambda i: (0, 0)),
            ],
            # Constant index_map: Y stays VMEM-resident across the whole M
            # axis and is written to HBM exactly once, post-affine.
            out_specs=pl.BlockSpec((mp, ocp), lambda i: (0, 0)),
            scratch_shapes=[pltpu.VMEM((8, ocp), jnp.float32),
                            pltpu.VMEM((8, ocp), jnp.float32)],
        ),
        # Output / stats are accumulators across the M axis -> arbitrary.
        compiler_params=pltpu.CompilerParams(
            dimension_semantics=("arbitrary",)),
    )(a_p, w_p, gb_p)


# -------------------------------- Model glue ---------------------------------

def _im2col(x, kh, kw, stride, pad):
    """x: (N, H, W, C) -> ((N*OH*OW, KH*KW*C), (N, OH, OW))."""
    if pad:
        x = jnp.pad(x, ((0, 0), (pad, pad), (pad, pad), (0, 0)))
    n, h, w, c = x.shape
    oh = (h - kh) // stride + 1
    ow = (w - kw) // stride + 1
    cols = []
    for i in range(kh):
        for j in range(kw):
            cols.append(x[:, i:i + stride * oh:stride, j:j + stride * ow:stride, :])
    patches = jnp.stack(cols, axis=3)  # (N, OH, OW, KH*KW, C)
    return patches.reshape(n * oh * ow, kh * kw * c), (n, oh, ow)
# TODO(synk): at production sizes, replace host-side im2col with an in-kernel
# strided tap accumulation to avoid the KH*KW patch blow-up in HBM.


def _conv_block(x, cfg, p):
    kh, kw, stride, pad = cfg["kh"], cfg["kw"], cfg["stride"], cfg["pad"]
    act, has_bn = cfg["act"], cfg["bn"]
    a, (n, oh, ow) = _im2col(x, kh, kw, stride, pad)
    ic = x.shape[-1]
    oc = p["w"].shape[-1]
    k = kh * kw * ic
    m = a.shape[0]

    # Lane/sublane-friendly padding; bf16 GEMM operands, f32 accumulation.
    # BN layers cap the M tile at 256 rows (vreg pressure of the in-kernel
    # stats + resident Y); non-BN layers use up to 512.
    tm_cap = 256 if has_bn else 512
    tm = min(tm_cap, _round_up(max(m, 1), 16))
    mp = _round_up(m, tm)
    kp = _round_up(k, 128)
    ocp = _round_up(oc, 128)

    a_p = jnp.pad(a, ((0, mp - m), (0, kp - k))).astype(jnp.bfloat16)
    w2 = p["w"].reshape(k, oc)
    w_p = jnp.pad(w2, ((0, kp - k), (0, ocp - oc))).astype(jnp.bfloat16)

    if has_bn:
        # Single fused pass: GEMM + batch stats + BN affine + LeakyReLU.
        gb = jnp.stack([p["gamma"], p["beta"]], axis=0)          # (2, OC)
        gb_p = jnp.pad(gb, ((0, 6), (0, ocp - oc)))              # (8, OCp)
        y_p = pallas_conv_bn_act(a_p, w_p, gb_p, tm, m, act)
    else:
        bias = p["b"] if p.get("b") is not None else jnp.zeros((oc,), jnp.float32)
        b_p = jnp.pad(bias.reshape(1, oc), ((0, 7), (0, ocp - oc)))  # (8, OCp)
        y_p = pallas_conv_bias_act(a_p, w_p, b_p, tm, act)

    return y_p[:m, :oc].reshape(n, oh, ow, oc)


def init_discriminator(key, input_nc=3, ndf=8, n_layers=4,
                       use_sigmoid=True, use_bias=False):
    del use_bias  # intermediate convs are bias-free, as in the PyTorch module
    keys = jax.random.split(key, 64)
    ki = 0

    def conv_w(k, kh, kw, ic, oc):
        return 0.05 * jax.random.normal(k, (kh, kw, ic, oc), jnp.float32)

    layers = []
    # self.model -----------------------------------------------------------
    layers.append((
        dict(kh=4, kw=4, stride=2, pad=1, act="lrelu", bn=False),
        dict(w=conv_w(keys[ki], 4, 4, input_nc, ndf),
             b=0.05 * jax.random.normal(keys[ki + 1], (ndf,), jnp.float32)),
    ))
    ki += 2
    nf_mult = 1
    for n in range(1, n_layers):
        nf_prev, nf_mult = nf_mult, min(2 ** n, 8)
        ic, oc = ndf * nf_prev, ndf * nf_mult
        layers.append((
            dict(kh=4, kw=4, stride=2, pad=1, act="lrelu", bn=True),
            dict(w=conv_w(keys[ki], 4, 4, ic, oc), b=None,
                 gamma=1.0 + 0.1 * jax.random.normal(keys[ki + 1], (oc,), jnp.float32),
                 beta=0.05 * jax.random.normal(keys[ki + 2], (oc,), jnp.float32)),
        ))
        ki += 3
    # self.predictor -------------------------------------------------------
    nf_prev, nf_mult = nf_mult, min(2 ** n_layers, 8)
    ic, oc = ndf * nf_prev, ndf * nf_mult
    layers.append((
        dict(kh=4, kw=4, stride=1, pad=1, act="lrelu", bn=True),
        dict(w=conv_w(keys[ki], 4, 4, ic, oc), b=None,
             gamma=1.0 + 0.1 * jax.random.normal(keys[ki + 1], (oc,), jnp.float32),
             beta=0.05 * jax.random.normal(keys[ki + 2], (oc,), jnp.float32)),
    ))
    ki += 3
    layers.append((
        dict(kh=3, kw=3, stride=1, pad=0,
             act="sigmoid" if use_sigmoid else "none", bn=False),
        dict(w=conv_w(keys[ki], 3, 3, oc, 1),
             b=0.05 * jax.random.normal(keys[ki + 1], (1,), jnp.float32)),
    ))
    return layers


def nlayer_discriminator_forward(x_nchw, layers):
    x = jnp.transpose(x_nchw, (0, 2, 3, 1)).astype(jnp.float32)  # NCHW -> NHWC
    for cfg, p in layers:
        x = _conv_block(x, cfg, p)
    # final feature map is (N, 1, 1, 1); .squeeze() like the PyTorch forward
    return jnp.squeeze(x)


# ----------------------------------- main ------------------------------------

if __name__ == "__main__":
    key = jax.random.PRNGKey(0)
    pkey, xkey = jax.random.split(key)

    # Small but shape-consistent config: input_nc=3, ndf=8, n_layers=4.
    # Spatial 64 -> model: 32/16/8/4 -> predictor: 3 -> 1, so output is (2,).
    layers = init_discriminator(pkey, input_nc=3, ndf=8, n_layers=4,
                                use_sigmoid=True, use_bias=False)
    x = jax.random.normal(xkey, (2, 3, 64, 64), jnp.float32)  # NCHW like PyTorch

    @jax.jit
    def forward(x_in):
        return nlayer_discriminator_forward(x_in, layers)

    out = forward(x)
    out = jax.block_until_ready(out)

    assert out.shape == (2,), out.shape
    assert bool(jnp.all(jnp.isfinite(out)))
    assert bool(jnp.all((out >= 0.0) & (out <= 1.0)))  # sigmoid output
    print("KERNEL_OK")
</pallas_src>

<mosaic_0001>
module attributes {stable_mosaic.version = 11 : i64} {
  func.func @_conv_bias_act_kernel(%arg0: i32, %arg1: memref<512x128xbf16, #tpu.memory_space<vmem>>, %arg2: memref<128x128xbf16, #tpu.memory_space<vmem>>, %arg3: memref<8x128xf32, #tpu.memory_space<vmem>>, %arg4: memref<512x128xf32, #tpu.memory_space<vmem>>) attributes {dimension_semantics = [#tpu.dimension_semantics<parallel>], iteration_bounds = array<i64: 4>, scalar_prefetch = 0 : i64, scratch_operands = 0 : i64, tpu.core_type = #tpu.core_type<tc>, window_params = [{transform_indices = @transform_0, window_bounds = array<i64: 512, 128>}, {pipeline_mode = #tpu.pipeline_mode<synchronous>, transform_indices = @transform_1, window_bounds = array<i64: 128, 128>}, {pipeline_mode = #tpu.pipeline_mode<synchronous>, transform_indices = @transform_2, window_bounds = array<i64: 8, 128>}, {transform_indices = @transform_3, window_bounds = array<i64: 512, 128>}]} {
    %c0 = arith.constant 0 : index
    %c0_0 = arith.constant 0 : index
    %0 = vector.load %arg1[%c0, %c0_0] : memref<512x128xbf16, #tpu.memory_space<vmem>>, vector<512x128xbf16>
    %c0_1 = arith.constant 0 : index
    %c0_2 = arith.constant 0 : index
    %1 = vector.load %arg2[%c0_1, %c0_2] : memref<128x128xbf16, #tpu.memory_space<vmem>>, vector<128x128xbf16>
    %cst = arith.constant dense<0.000000e+00> : vector<512x128xf32>
    %2 = tpu.matmul %0, %1, %cst {dimension_numbers = #tpu.dot_dimension_numbers<[1], [0], [0], [1], [0, 0, 1, 1], [], []>} : vector<512x128xbf16>, vector<128x128xbf16>, vector<512x128xf32> -> vector<512x128xf32>
    %c0_3 = arith.constant 0 : index
    %c0_4 = arith.constant 0 : index
    %3 = vector.load %arg3[%c0_3, %c0_4] : memref<8x128xf32, #tpu.memory_space<vmem>>, vector<1x128xf32>
    %4 = vector.broadcast %3 : vector<1x128xf32> to vector<512x128xf32>
    %5 = arith.addf %2, %4 : vector<512x128xf32>
    %cst_5 = arith.constant 0.000000e+00 : f32
    %6 = vector.broadcast %cst_5 : f32 to vector<512x128xf32>
    %7 = arith.cmpf ogt, %5, %6 : vector<512x128xf32>
    %cst_6 = arith.constant 2.000000e-01 : f32
    %8 = vector.broadcast %cst_6 : f32 to vector<512x128xf32>
    %9 = arith.mulf %8, %5 : vector<512x128xf32>
    %10 = arith.select %7, %5, %9 : vector<512x128xi1>, vector<512x128xf32>
    %c0_7 = arith.constant 0 : index
    %c0_8 = arith.constant 0 : index
    %11 = vector.load %arg4[%c0_7, %c0_8] : memref<512x128xf32, #tpu.memory_space<vmem>>, vector<512x128xf32>
    tpu.vector_store %arg4[%c0_7, %c0_8], %10 {strides = array<i32>} : memref<512x128xf32, #tpu.memory_space<vmem>>, vector<512x128xf32>,
    return
  }
  func.func @transform_0(%arg0: i32) -> (i32, i32) {
    %c0_i32 = arith.constant 0 : i32
    %c0_i32_0 = arith.constant 0 : i32
    return %arg0, %c0_i32 : i32, i32
  }
  func.func @transform_1(%arg0: i32) -> (i32, i32) {
    %c0_i32 = arith.constant 0 : i32
    %c0_i32_0 = arith.constant 0 : i32
    %c0_i32_1 = arith.constant 0 : i32
    return %c0_i32, %c0_i32_0 : i32, i32
  }
  func.func @transform_2(%arg0: i32) -> (i32, i32) {
    %c0_i32 = arith.constant 0 : i32
    %c0_i32_0 = arith.constant 0 : i32
    %c0_i32_1 = arith.constant 0 : i32
    return %c0_i32, %c0_i32_0 : i32, i32
  }
  func.func @transform_3(%arg0: i32) -> (i32, i32) {
    %c0_i32 = arith.constant 0 : i32
    %c0_i32_0 = arith.constant 0 : i32
    return %arg0, %c0_i32 : i32, i32
  }
}

module attributes {stable_mosaic.version = 11 : i64} {
  func.func @_conv_bn_act_kernel(%arg0: i32, %arg1: memref<256x128xbf16, #tpu.memory_space<vmem>>, %arg2: memref<128x128xbf16, #tpu.memory_space<vmem>>, %arg3: memref<8x128xf32, #tpu.memory_space<vmem>>, %arg4: memref<512x128xf32, #tpu.memory_space<vmem>>, %arg5: memref<8x128xf32, #tpu.memory_space<vmem>>, %arg6: memref<8x128xf32, #tpu.memory_space<vmem>>) attributes {dimension_semantics = [#tpu.dimension_semantics<arbitrary>], iteration_bounds = array<i64: 2>, scalar_prefetch = 0 : i64, scratch_operands = 2 : i64, tpu.core_type = #tpu.core_type<tc>, window_params = [{transform_indices = @transform_0, window_bounds = array<i64: 256, 128>}, {pipeline_mode = #tpu.pipeline_mode<synchronous>, transform_indices = @transform_1, window_bounds = array<i64: 128, 128>}, {pipeline_mode = #tpu.pipeline_mode<synchronous>, transform_indices = @transform_2, window_bounds = array<i64: 8, 128>}, {pipeline_mode = #tpu.pipeline_mode<synchronous>, transform_indices = @transform_3, window_bounds = array<i64: 512, 128>}]} {
    %c0_i32 = arith.constant 0 : i32
    %0 = arith.cmpi eq, %arg0, %c0_i32 : i32
    %1 = arith.extui %0 : i1 to i32
    %c0_i32_0 = arith.constant 0 : i32
    %2 = arith.cmpi ne, %1, %c0_i32_0 : i32
    scf.if %2 {
      %cst_16 = arith.constant 0.000000e+00 : f32
      %23 = vector.broadcast %cst_16 : f32 to vector<8x128xf32>
      %c0_17 = arith.constant 0 : index
      %c0_18 = arith.constant 0 : index
      %24 = vector.load %arg5[%c0_17, %c0_18] : memref<8x128xf32, #tpu.memory_space<vmem>>, vector<8x128xf32>
      tpu.vector_store %arg5[%c0_17, %c0_18], %23 {strides = array<i32>} : memref<8x128xf32, #tpu.memory_space<vmem>>, vector<8x128xf32>,
      %cst_19 = arith.constant 0.000000e+00 : f32
      %25 = vector.broadcast %cst_19 : f32 to vector<8x128xf32>
      %c0_20 = arith.constant 0 : index
      %c0_21 = arith.constant 0 : index
      %26 = vector.load %arg6[%c0_20, %c0_21] : memref<8x128xf32, #tpu.memory_space<vmem>>, vector<8x128xf32>
      tpu.vector_store %arg6[%c0_20, %c0_21], %25 {strides = array<i32>} : memref<8x128xf32, #tpu.memory_space<vmem>>, vector<8x128xf32>,
    } else {
    }
    %c0 = arith.constant 0 : index
    %c0_1 = arith.constant 0 : index
    %3 = vector.load %arg1[%c0, %c0_1] : memref<256x128xbf16, #tpu.memory_space<vmem>>, vector<256x128xbf16>
    %c0_2 = arith.constant 0 : index
    %c0_3 = arith.constant 0 : index
    %4 = vector.load %arg2[%c0_2, %c0_3] : memref<128x128xbf16, #tpu.memory_space<vmem>>, vector<128x128xbf16>
    %cst = arith.constant dense<0.000000e+00> : vector<256x128xf32>
    %5 = tpu.matmul %3, %4, %cst {dimension_numbers = #tpu.dot_dimension_numbers<[1], [0], [0], [1], [0, 0, 1, 1], [], []>} : vector<256x128xbf16>, vector<128x128xbf16>, vector<256x128xf32> -> vector<256x128xf32>
    %c256_i32 = arith.constant 256 : i32
    %6 = arith.muli %arg0, %c256_i32 : i32
    %7 = tpu.assume_multiple %6, 256 : i32
    %8 = arith.index_cast %7 : i32 to index
    %c0_4 = arith.constant 0 : index
    %9 = vector.load %arg4[%8, %c0_4] : memref<512x128xf32, #tpu.memory_space<vmem>>, vector<256x128xf32>
    tpu.vector_store %arg4[%8, %c0_4], %5 {strides = array<i32>} : memref<512x128xf32, #tpu.memory_space<vmem>>, vector<256x128xf32>,
    %10 = vector.shape_cast %5 : vector<256x128xf32> to vector<32x8x128xf32>
    %c0_5 = arith.constant 0 : index
    %c0_6 = arith.constant 0 : index
    %11 = vector.load %arg5[%c0_5, %c0_6] : memref<8x128xf32, #tpu.memory_space<vmem>>, vector<8x128xf32>
    %cst_7 = arith.constant dense<0.000000e+00> : vector<8x128xf32>
    %12 = vector.multi_reduction <add>, %10, %cst_7 [0] : vector<32x8x128xf32> to vector<8x128xf32>
    %13 = arith.addf %11, %12 : vector<8x128xf32>
    %c0_8 = arith.constant 0 : index
    %c0_9 = arith.constant 0 : index
    %14 = vector.load %arg5[%c0_8, %c0_9] : memref<8x128xf32, #tpu.memory_space<vmem>>, vector<8x128xf32>
    tpu.vector_store %arg5[%c0_8, %c0_9], %13 {strides = array<i32>} : memref<8x128xf32, #tpu.memory_space<vmem>>, vector<8x128xf32>,
    %c0_10 = arith.constant 0 : index
    %c0_11 = arith.constant 0 : index
    %15 = vector.load %arg6[%c0_10, %c0_11] : memref<8x128xf32, #tpu.memory_space<vmem>>, vector<8x128xf32>
    %16 = arith.mulf %10, %10 : vector<32x8x128xf32>
    %cst_12 = arith.constant dense<0.000000e+00> : vector<8x128xf32>
    %17 = vector.multi_reduction <add>, %16, %cst_12 [0] : vector<32x8x128xf32> to vector<8x128xf32>
    %18 = arith.addf %15, %17 : vector<8x128xf32>
    %c0_13 = arith.constant 0 : index
    %c0_14 = arith.constant 0 : index
    %19 = vector.load %arg6[%c0_13, %c0_14] : memref<8x128xf32, #tpu.memory_space<vmem>>, vector<8x128xf32>
    tpu.vector_store %arg6[%c0_13, %c0_14], %18 {strides = array<i32>} : memref<8x128xf32, #tpu.memory_space<vmem>>, vector<8x128xf32>,
    %c1_i32 = arith.constant 1 : i32
    %20 = arith.cmpi eq, %arg0, %c1_i32 : i32
    %21 = arith.extui %20 : i1 to i32
    %c0_i32_15 = arith.constant 0 : i32
    %22 = arith.cmpi ne, %21, %c0_i32_15 : i32
    scf.if %22 {
      %c0_16 = arith.constant 0 : index
      %c0_17 = arith.constant 0 : index
      %23 = vector.load %arg5[%c0_16, %c0_17] : memref<8x128xf32, #tpu.memory_space<vmem>>, vector<8x128xf32>
      %cst_18 = arith.constant dense<0.000000e+00> : vector<128xf32>
      %24 = vector.multi_reduction <add>, %23, %cst_18 [0] : vector<8x128xf32> to vector<128xf32>
      %25 = vector.shape_cast %24 : vector<128xf32> to vector<1x128xf32>
      %c0_19 = arith.constant 0 : index
      %c0_20 = arith.constant 0 : index
      %26 = vector.load %arg6[%c0_19, %c0_20] : memref<8x128xf32, #tpu.memory_space<vmem>>, vector<8x128xf32>
      %cst_21 = arith.constant dense<0.000000e+00> : vector<128xf32>
      %27 = vector.multi_reduction <add>, %26, %cst_21 [0] : vector<8x128xf32> to vector<128xf32>
      %28 = vector.shape_cast %27 : vector<128xf32> to vector<1x128xf32>
      %cst_22 = arith.constant 0.001953125 : f32
      %29 = vector.broadcast %cst_22 : f32 to vector<1x128xf32>
      %30 = arith.mulf %25, %29 : vector<1x128xf32>
      %cst_23 = arith.constant 0.001953125 : f32
      %31 = vector.broadcast %cst_23 : f32 to vector<1x128xf32>
      %32 = arith.mulf %28, %31 : vector<1x128xf32>
      %33 = arith.mulf %30, %30 : vector<1x128xf32>
      %34 = arith.subf %32, %33 : vector<1x128xf32>
      %c0_24 = arith.constant 0 : index
      %c0_25 = arith.constant 0 : index
      %35 = vector.load %arg3[%c0_24, %c0_25] : memref<8x128xf32, #tpu.memory_space<vmem>>, vector<1x128xf32>
      %c1 = arith.constant 1 : index
      %c0_26 = arith.constant 0 : index
      %36 = vector.load %arg3[%c1, %c0_26] : memref<8x128xf32, #tpu.memory_space<vmem>>, vector<1x128xf32>
      %37 = arith.mulf %35, %35 : vector<1x128xf32>
      %cst_27 = arith.constant dense<0.000000e+00> : vector<1xf32>
      %38 = vector.multi_reduction <add>, %37, %cst_27 [1] : vector<1x128xf32> to vector<1xf32>
      %39 = vector.shape_cast %38 : vector<1xf32> to vector<1x1xf32>
      %cst_28 = arith.constant 9.99999996E-13 : f32
      %40 = vector.broadcast %cst_28 : f32 to vector<1x1xf32>
      %41 = arith.addf %39, %40 : vector<1x1xf32>
      %42 = math.rsqrt %41 : vector<1x1xf32>
      %43 = vector.broadcast %42 : vector<1x1xf32> to vector<1x128xf32>
      %44 = arith.mulf %35, %43 : vector<1x128xf32>
      %cst_29 = arith.constant 9.99999974E-6 : f32
      %45 = vector.broadcast %cst_29 : f32 to vector<1x128xf32>
      %46 = arith.addf %34, %45 : vector<1x128xf32>
      %47 = math.rsqrt %46 : vector<1x128xf32>
      %48 = arith.mulf %44, %47 : vector<1x128xf32>
      %49 = arith.mulf %30, %48 : vector<1x128xf32>
      %50 = arith.subf %36, %49 : vector<1x128xf32>
      %c0_i32_30 = arith.constant 0 : i32
      %c256_i32_31 = arith.constant 256 : i32
      %51 = arith.muli %c0_i32_30, %c256_i32_31 : i32
      %52 = tpu.assume_multiple %51, 256 : i32
      %53 = arith.index_cast %52 : i32 to index
      %c0_32 = arith.constant 0 : index
      %54 = vector.load %arg4[%53, %c0_32] : memref<512x128xf32, #tpu.memory_space<vmem>>, vector<256x128xf32>
      %55 = vector.broadcast %48 : vector<1x128xf32> to vector<256x128xf32>
      %56 = arith.mulf %54, %55 : vector<256x128xf32>
      %57 = vector.broadcast %50 : vector<1x128xf32> to vector<256x128xf32>
      %58 = arith.addf %56, %57 : vector<256x128xf32>
      %cst_33 = arith.constant 0.000000e+00 : f32
      %59 = vector.broadcast %cst_33 : f32 to vector<256x128xf32>
      %60 = arith.cmpf ogt, %58, %59 : vector<256x128xf32>
      %cst_34 = arith.constant 2.000000e-01 : f32
      %61 = vector.broadcast %cst_34 : f32 to vector<256x128xf32>
      %62 = arith.mulf %61, %58 : vector<256x128xf32>
      %63 = arith.select %60, %58, %62 : vector<256x128xi1>, vector<256x128xf32>
      %64 = arith.index_cast %52 : i32 to index
      %c0_35 = arith.constant 0 : index
      %65 = vector.load %arg4[%64, %c0_35] : memref<512x128xf32, #tpu.memory_space<vmem>>, vector<256x128xf32>
      tpu.vector_store %arg4[%64, %c0_35], %63 {strides = array<i32>} : memref<512x128xf32, #tpu.memory_space<vmem>>, vector<256x128xf32>,
      %c1_i32_36 = arith.constant 1 : i32
      %c256_i32_37 = arith.constant 256 : i32
      %66 = arith.muli %c1_i32_36, %c256_i32_37 : i32
      %67 = tpu.assume_multiple %66, 256 : i32
      %68 = arith.index_cast %67 : i32 to index
      %c0_38 = arith.constant 0 : index
      %69 = vector.load %arg4[%68, %c0_38] : memref<512x128xf32, #tpu.memory_space<vmem>>, vector<256x128xf32>
      %70 = vector.broadcast %48 : vector<1x128xf32> to vector<256x128xf32>
      %71 = arith.mulf %69, %70 : vector<256x128xf32>
      %72 = vector.broadcast %50 : vector<1x128xf32> to vector<256x128xf32>
      %73 = arith.addf %71, %72 : vector<256x128xf32>
      %cst_39 = arith.constant 0.000000e+00 : f32
      %74 = vector.broadcast %cst_39 : f32 to vector<256x128xf32>
      %75 = arith.cmpf ogt, %73, %74 : vector<256x128xf32>
      %cst_40 = arith.constant 2.000000e-01 : f32
      %76 = vector.broadcast %cst_40 : f32 to vector<256x128xf32>
      %77 = arith.mulf %76, %73 : vector<256x128xf32>
      %78 = arith.select %75, %73, %77 : vector<256x128xi1>, vector<256x128xf32>
      %79 = arith.index_cast %67 : i32 to index
      %c0_41 = arith.constant 0 : index
      %80 = vector.load %arg4[%79, %c0_41] : memref<512x128xf32, #tpu.memory_space<vmem>>, vector<256x128xf32>
      tpu.vector_store %arg4[%79, %c0_41], %78 {strides = array<i32>} : memref<512x128xf32, #tpu.memory_space<vmem>>, vector<256x128xf32>,
      %c2_i32 = arith.constant 2 : i32
    } else {
    }
    return
  }
  func.func @transform_0(%arg0: i32) -> (i32, i32) {
    %c0_i32 = arith.constant 0 : i32
    %c0_i32_0 = arith.constant 0 : i32
    return %arg0, %c0_i32 : i32, i32
  }
  func.func @transform_1(%arg0: i32) -> (i32, i32) {
    %c0_i32 = arith.constant 0 : i32
    %c0_i32_0 = arith.constant 0 : i32
    %c0_i32_1 = arith.constant 0 : i32
    return %c0_i32, %c0_i32_0 : i32, i32
  }
  func.func @transform_2(%arg0: i32) -> (i32, i32) {
    %c0_i32 = arith.constant 0 : i32
    %c0_i32_0 = arith.constant 0 : i32
    %c0_i32_1 = arith.constant 0 : i32
    return %c0_i32, %c0_i32_0 : i32, i32
  }
  func.func @transform_3(%arg0: i32) -> (i32, i32) {
    %c0_i32 = arith.constant 0 : i32
    %c0_i32_0 = arith.constant 0 : i32
    %c0_i32_1 = arith.constant 0 : i32
    return %c0_i32, %c0_i32_0 : i32, i32
  }
}

module attributes {stable_mosaic.version = 11 : i64} {
  func.func @_conv_bn_act_kernel(%arg0: i32, %arg1: memref<128x256xbf16, #tpu.memory_space<vmem>>, %arg2: memref<256x128xbf16, #tpu.memory_space<vmem>>, %arg3: memref<8x128xf32, #tpu.memory_space<vmem>>, %arg4: memref<128x128xf32, #tpu.memory_space<vmem>>, %arg5: memref<8x128xf32, #tpu.memory_space<vmem>>, %arg6: memref<8x128xf32, #tpu.memory_space<vmem>>) attributes {dimension_semantics = [#tpu.dimension_semantics<arbitrary>], iteration_bounds = array<i64: 1>, scalar_prefetch = 0 : i64, scratch_operands = 2 : i64, tpu.core_type = #tpu.core_type<tc>, window_params = [{transform_indices = @transform_0, window_bounds = array<i64: 128, 256>}, {pipeline_mode = #tpu.pipeline_mode<synchronous>, transform_indices = @transform_1, window_bounds = array<i64: 256, 128>}, {pipeline_mode = #tpu.pipeline_mode<synchronous>, transform_indices = @transform_2, window_bounds = array<i64: 8, 128>}, {pipeline_mode = #tpu.pipeline_mode<synchronous>, transform_indices = @transform_3, window_bounds = array<i64: 128, 128>}]} {
    %c0_i32 = arith.constant 0 : i32
    %0 = arith.cmpi eq, %arg0, %c0_i32 : i32
    %1 = arith.extui %0 : i1 to i32
    %c0_i32_0 = arith.constant 0 : i32
    %2 = arith.cmpi ne, %1, %c0_i32_0 : i32
    scf.if %2 {
      %cst_17 = arith.constant 0.000000e+00 : f32
      %23 = vector.broadcast %cst_17 : f32 to vector<8x128xf32>
      %c0_18 = arith.constant 0 : index
      %c0_19 = arith.constant 0 : index
      %24 = vector.load %arg5[%c0_18, %c0_19] : memref<8x128xf32, #tpu.memory_space<vmem>>, vector<8x128xf32>
      tpu.vector_store %arg5[%c0_18, %c0_19], %23 {strides = array<i32>} : memref<8x128xf32, #tpu.memory_space<vmem>>, vector<8x128xf32>,
      %cst_20 = arith.constant 0.000000e+00 : f32
      %25 = vector.broadcast %cst_20 : f32 to vector<8x128xf32>
      %c0_21 = arith.constant 0 : index
      %c0_22 = arith.constant 0 : index
      %26 = vector.load %arg6[%c0_21, %c0_22] : memref<8x128xf32, #tpu.memory_space<vmem>>, vector<8x128xf32>
      tpu.vector_store %arg6[%c0_21, %c0_22], %25 {strides = array<i32>} : memref<8x128xf32, #tpu.memory_space<vmem>>, vector<8x128xf32>,
    } else {
    }
    %c0 = arith.constant 0 : index
    %c0_1 = arith.constant 0 : index
    %3 = vector.load %arg1[%c0, %c0_1] : memref<128x256xbf16, #tpu.memory_space<vmem>>, vector<128x256xbf16>
    %c0_2 = arith.constant 0 : index
    %c0_3 = arith.constant 0 : index
    %4 = vector.load %arg2[%c0_2, %c0_3] : memref<256x128xbf16, #tpu.memory_space<vmem>>, vector<256x128xbf16>
    %cst = arith.constant dense<0.000000e+00> : vector<128x128xf32>
    %5 = tpu.matmul %3, %4, %cst {dimension_numbers = #tpu.dot_dimension_numbers<[1], [0], [0], [1], [0, 0, 1, 1], [], []>} : vector<128x256xbf16>, vector<256x128xbf16>, vector<128x128xf32> -> vector<128x128xf32>
    %c128_i32 = arith.constant 128 : i32
    %6 = arith.muli %arg0, %c128_i32 : i32
    %7 = tpu.assume_multiple %6, 128 : i32
    %8 = arith.index_cast %7 : i32 to index
    %c0_4 = arith.constant 0 : index
    %9 = vector.load %arg4[%8, %c0_4] : memref<128x128xf32, #tpu.memory_space<vmem>>, vector<128x128xf32>
    tpu.vector_store %arg4[%8, %c0_4], %5 {strides = array<i32>} : memref<128x128xf32, #tpu.memory_space<vmem>>, vector<128x128xf32>,
    %10 = vector.shape_cast %5 : vector<128x128xf32> to vector<16x8x128xf32>
    %c0_5 = arith.constant 0 : index
    %c0_6 = arith.constant 0 : index
    %11 = vector.load %arg5[%c0_5, %c0_6] : memref<8x128xf32, #tpu.memory_space<vmem>>, vector<8x128xf32>
    %cst_7 = arith.constant dense<0.000000e+00> : vector<8x128xf32>
    %12 = vector.multi_reduction <add>, %10, %cst_7 [0] : vector<16x8x128xf32> to vector<8x128xf32>
    %13 = arith.addf %11, %12 : vector<8x128xf32>
    %c0_8 = arith.constant 0 : index
    %c0_9 = arith.constant 0 : index
    %14 = vector.load %arg5[%c0_8, %c0_9] : memref<8x128xf32, #tpu.memory_space<vmem>>, vector<8x128xf32>
    tpu.vector_store %arg5[%c0_8, %c0_9], %13 {strides = array<i32>} : memref<8x128xf32, #tpu.memory_space<vmem>>, vector<8x128xf32>,
    %c0_10 = arith.constant 0 : index
    %c0_11 = arith.constant 0 : index
    %15 = vector.load %arg6[%c0_10, %c0_11] : memref<8x128xf32, #tpu.memory_space<vmem>>, vector<8x128xf32>
    %16 = arith.mulf %10, %10 : vector<16x8x128xf32>
    %cst_12 = arith.constant dense<0.000000e+00> : vector<8x128xf32>
    %17 = vector.multi_reduction <add>, %16, %cst_12 [0] : vector<16x8x128xf32> to vector<8x128xf32>
    %18 = arith.addf %15, %17 : vector<8x128xf32>
    %c0_13 = arith.constant 0 : index
    %c0_14 = arith.constant 0 : index
    %19 = vector.load %arg6[%c0_13, %c0_14] : memref<8x128xf32, #tpu.memory_space<vmem>>, vector<8x128xf32>
    tpu.vector_store %arg6[%c0_13, %c0_14], %18 {strides = array<i32>} : memref<8x128xf32, #tpu.memory_space<vmem>>, vector<8x128xf32>,
    %c0_i32_15 = arith.constant 0 : i32
    %20 = arith.cmpi eq, %arg0, %c0_i32_15 : i32
    %21 = arith.extui %20 : i1 to i32
    %c0_i32_16 = arith.constant 0 : i32
    %22 = arith.cmpi ne, %21, %c0_i32_16 : i32
    scf.if %22 {
      %c0_17 = arith.constant 0 : index
      %c0_18 = arith.constant 0 : index
      %23 = vector.load %arg5[%c0_17, %c0_18] : memref<8x128xf32, #tpu.memory_space<vmem>>, vector<8x128xf32>
      %cst_19 = arith.constant dense<0.000000e+00> : vector<128xf32>
      %24 = vector.multi_reduction <add>, %23, %cst_19 [0] : vector<8x128xf32> to vector<128xf32>
      %25 = vector.shape_cast %24 : vector<128xf32> to vector<1x128xf32>
      %c0_20 = arith.constant 0 : index
      %c0_21 = arith.constant 0 : index
      %26 = vector.load %arg6[%c0_20, %c0_21] : memref<8x128xf32, #tpu.memory_space<vmem>>, vector<8x128xf32>
      %cst_22 = arith.constant dense<0.000000e+00> : vector<128xf32>
      %27 = vector.multi_reduction <add>, %26, %cst_22 [0] : vector<8x128xf32> to vector<128xf32>
      %28 = vector.shape_cast %27 : vector<128xf32> to vector<1x128xf32>
      %cst_23 = arith.constant 7.812500e-03 : f32
      %29 = vector.broadcast %cst_23 : f32 to vector<1x128xf32>
      %30 = arith.mulf %25, %29 : vector<1x128xf32>
      %cst_24 = arith.constant 7.812500e-03 : f32
      %31 = vector.broadcast %cst_24 : f32 to vector<1x128xf32>
      %32 = arith.mulf %28, %31 : vector<1x128xf32>
      %33 = arith.mulf %30, %30 : vector<1x128xf32>
      %34 = arith.subf %32, %33 : vector<1x128xf32>
      %c0_25 = arith.constant 0 : index
      %c0_26 = arith.constant 0 : index
      %35 = vector.load %arg3[%c0_25, %c0_26] : memref<8x128xf32, #tpu.memory_space<vmem>>, vector<1x128xf32>
      %c1 = arith.constant 1 : index
      %c0_27 = arith.constant 0 : index
      %36 = vector.load %arg3[%c1, %c0_27] : memref<8x128xf32, #tpu.memory_space<vmem>>, vector<1x128xf32>
      %37 = arith.mulf %35, %35 : vector<1x128xf32>
      %cst_28 = arith.constant dense<0.000000e+00> : vector<1xf32>
      %38 = vector.multi_reduction <add>, %37, %cst_28 [1] : vector<1x128xf32> to vector<1xf32>
      %39 = vector.shape_cast %38 : vector<1xf32> to vector<1x1xf32>
      %cst_29 = arith.constant 9.99999996E-13 : f32
      %40 = vector.broadcast %cst_29 : f32 to vector<1x1xf32>
      %41 = arith.addf %39, %40 : vector<1x1xf32>
      %42 = math.rsqrt %41 : vector<1x1xf32>
      %43 = vector.broadcast %42 : vector<1x1xf32> to vector<1x128xf32>
      %44 = arith.mulf %35, %43 : vector<1x128xf32>
      %cst_30 = arith.constant 9.99999974E-6 : f32
      %45 = vector.broadcast %cst_30 : f32 to vector<1x128xf32>
      %46 = arith.addf %34, %45 : vector<1x128xf32>
      %47 = math.rsqrt %46 : vector<1x128xf32>
      %48 = arith.mulf %44, %47 : vector<1x128xf32>
      %49 = arith.mulf %30, %48 : vector<1x128xf32>
      %50 = arith.subf %36, %49 : vector<1x128xf32>
      %c0_i32_31 = arith.constant 0 : i32
      %c128_i32_32 = arith.constant 128 : i32
      %51 = arith.muli %c0_i32_31, %c128_i32_32 : i32
      %52 = tpu.assume_multiple %51, 128 : i32
      %53 = arith.index_cast %52 : i32 to index
      %c0_33 = arith.constant 0 : index
      %54 = vector.load %arg4[%53, %c0_33] : memref<128x128xf32, #tpu.memory_space<vmem>>, vector<128x128xf32>
      %55 = vector.broadcast %48 : vector<1x128xf32> to vector<128x128xf32>
      %56 = arith.mulf %54, %55 : vector<128x128xf32>
      %57 = vector.broadcast %50 : vector<1x128xf32> to vector<128x128xf32>
      %58 = arith.addf %56, %57 : vector<128x128xf32>
      %cst_34 = arith.constant 0.000000e+00 : f32
      %59 = vector.broadcast %cst_34 : f32 to vector<128x128xf32>
      %60 = arith.cmpf ogt, %58, %59 : vector<128x128xf32>
      %cst_35 = arith.constant 2.000000e-01 : f32
      %61 = vector.broadcast %cst_35 : f32 to vector<128x128xf32>
      %62 = arith.mulf %61, %58 : vector<128x128xf32>
      %63 = arith.select %60, %58, %62 : vector<128x128xi1>, vector<128x128xf32>
      %64 = arith.index_cast %52 : i32 to index
      %c0_36 = arith.constant 0 : index
      %65 = vector.load %arg4[%64, %c0_36] : memref<128x128xf32, #tpu.memory_space<vmem>>, vector<128x128xf32>
      tpu.vector_store %arg4[%64, %c0_36], %63 {strides = array<i32>} : memref<128x128xf32, #tpu.memory_space<vmem>>, vector<128x128xf32>,
      %c1_i32 = arith.constant 1 : i32
    } else {
    }
    return
  }
  func.func @transform_0(%arg0: i32) -> (i32, i32) {
    %c0_i32 = arith.constant 0 : i32
    %c0_i32_0 = arith.constant 0 : i32
    return %arg0, %c0_i32 : i32, i32
  }
  func.func @transform_1(%arg0: i32) -> (i32, i32) {
    %c0_i32 = arith.constant 0 : i32
    %c0_i32_0 = arith.constant 0 : i32
    %c0_i32_1 = arith.constant 0 : i32
    return %c0_i32, %c0_i32_0 : i32, i32
  }
  func.func @transform_2(%arg0: i32) -> (i32, i32) {
    %c0_i32 = arith.constant 0 : i32
    %c0_i32_0 = arith.constant 0 : i32
    %c0_i32_1 = arith.constant 0 : i32
    return %c0_i32, %c0_i32_0 : i32, i32
  }
  func.func @transform_3(%arg0: i32) -> (i32, i32) {
    %c0_i32 = arith.constant 0 : i32
    %c0_i32_0 = arith.constant 0 : i32
    %c0_i32_1 = arith.constant 0 : i32
    return %c0_i32, %c0_i32_0 : i32, i32
  }
}

module attributes {stable_mosaic.version = 11 : i64} {
  func.func @_conv_bn_act_kernel(%arg0: i32, %arg1: memref<32x512xbf16, #tpu.memory_space<vmem>>, %arg2: memref<512x128xbf16, #tpu.memory_space<vmem>>, %arg3: memref<8x128xf32, #tpu.memory_space<vmem>>, %arg4: memref<32x128xf32, #tpu.memory_space<vmem>>, %arg5: memref<8x128xf32, #tpu.memory_space<vmem>>, %arg6: memref<8x128xf32, #tpu.memory_space<vmem>>) attributes {dimension_semantics = [#tpu.dimension_semantics<arbitrary>], iteration_bounds = array<i64: 1>, scalar_prefetch = 0 : i64, scratch_operands = 2 : i64, tpu.core_type = #tpu.core_type<tc>, window_params = [{transform_indices = @transform_0, window_bounds = array<i64: 32, 512>}, {pipeline_mode = #tpu.pipeline_mode<synchronous>, transform_indices = @transform_1, window_bounds = array<i64: 512, 128>}, {pipeline_mode = #tpu.pipeline_mode<synchronous>, transform_indices = @transform_2, window_bounds = array<i64: 8, 128>}, {pipeline_mode = #tpu.pipeline_mode<synchronous>, transform_indices = @transform_3, window_bounds = array<i64: 32, 128>}]} {
    %c0_i32 = arith.constant 0 : i32
    %0 = arith.cmpi eq, %arg0, %c0_i32 : i32
    %1 = arith.extui %0 : i1 to i32
    %c0_i32_0 = arith.constant 0 : i32
    %2 = arith.cmpi ne, %1, %c0_i32_0 : i32
    scf.if %2 {
      %cst_17 = arith.constant 0.000000e+00 : f32
      %23 = vector.broadcast %cst_17 : f32 to vector<8x128xf32>
      %c0_18 = arith.constant 0 : index
      %c0_19 = arith.constant 0 : index
      %24 = vector.load %arg5[%c0_18, %c0_19] : memref<8x128xf32, #tpu.memory_space<vmem>>, vector<8x128xf32>
      tpu.vector_store %arg5[%c0_18, %c0_19], %23 {strides = array<i32>} : memref<8x128xf32, #tpu.memory_space<vmem>>, vector<8x128xf32>,
      %cst_20 = arith.constant 0.000000e+00 : f32
      %25 = vector.broadcast %cst_20 : f32 to vector<8x128xf32>
      %c0_21 = arith.constant 0 : index
      %c0_22 = arith.constant 0 : index
      %26 = vector.load %arg6[%c0_21, %c0_22] : memref<8x128xf32, #tpu.memory_space<vmem>>, vector<8x128xf32>
      tpu.vector_store %arg6[%c0_21, %c0_22], %25 {strides = array<i32>} : memref<8x128xf32, #tpu.memory_space<vmem>>, vector<8x128xf32>,
    } else {
    }
    %c0 = arith.constant 0 : index
    %c0_1 = arith.constant 0 : index
    %3 = vector.load %arg1[%c0, %c0_1] : memref<32x512xbf16, #tpu.memory_space<vmem>>, vector<32x512xbf16>
    %c0_2 = arith.constant 0 : index
    %c0_3 = arith.constant 0 : index
    %4 = vector.load %arg2[%c0_2, %c0_3] : memref<512x128xbf16, #tpu.memory_space<vmem>>, vector<512x128xbf16>
    %cst = arith.constant dense<0.000000e+00> : vector<32x128xf32>
    %5 = tpu.matmul %3, %4, %cst {dimension_numbers = #tpu.dot_dimension_numbers<[1], [0], [0], [1], [0, 0, 1, 1], [], []>} : vector<32x512xbf16>, vector<512x128xbf16>, vector<32x128xf32> -> vector<32x128xf32>
    %c32_i32 = arith.constant 32 : i32
    %6 = arith.muli %arg0, %c32_i32 : i32
    %7 = tpu.assume_multiple %6, 32 : i32
    %8 = arith.index_cast %7 : i32 to index
    %c0_4 = arith.constant 0 : index
    %9 = vector.load %arg4[%8, %c0_4] : memref<32x128xf32, #tpu.memory_space<vmem>>, vector<32x128xf32>
    tpu.vector_store %arg4[%8, %c0_4], %5 {strides = array<i32>} : memref<32x128xf32, #tpu.memory_space<vmem>>, vector<32x128xf32>,
    %10 = vector.shape_cast %5 : vector<32x128xf32> to vector<4x8x128xf32>
    %c0_5 = arith.constant 0 : index
    %c0_6 = arith.constant 0 : index
    %11 = vector.load %arg5[%c0_5, %c0_6] : memref<8x128xf32, #tpu.memory_space<vmem>>, vector<8x128xf32>
    %cst_7 = arith.constant dense<0.000000e+00> : vector<8x128xf32>
    %12 = vector.multi_reduction <add>, %10, %cst_7 [0] : vector<4x8x128xf32> to vector<8x128xf32>
    %13 = arith.addf %11, %12 : vector<8x128xf32>
    %c0_8 = arith.constant 0 : index
    %c0_9 = arith.constant 0 : index
    %14 = vector.load %arg5[%c0_8, %c0_9] : memref<8x128xf32, #tpu.memory_space<vmem>>, vector<8x128xf32>
    tpu.vector_store %arg5[%c0_8, %c0_9], %13 {strides = array<i32>} : memref<8x128xf32, #tpu.memory_space<vmem>>, vector<8x128xf32>,
    %c0_10 = arith.constant 0 : index
    %c0_11 = arith.constant 0 : index
    %15 = vector.load %arg6[%c0_10, %c0_11] : memref<8x128xf32, #tpu.memory_space<vmem>>, vector<8x128xf32>
    %16 = arith.mulf %10, %10 : vector<4x8x128xf32>
    %cst_12 = arith.constant dense<0.000000e+00> : vector<8x128xf32>
    %17 = vector.multi_reduction <add>, %16, %cst_12 [0] : vector<4x8x128xf32> to vector<8x128xf32>
    %18 = arith.addf %15, %17 : vector<8x128xf32>
    %c0_13 = arith.constant 0 : index
    %c0_14 = arith.constant 0 : index
    %19 = vector.load %arg6[%c0_13, %c0_14] : memref<8x128xf32, #tpu.memory_space<vmem>>, vector<8x128xf32>
    tpu.vector_store %arg6[%c0_13, %c0_14], %18 {strides = array<i32>} : memref<8x128xf32, #tpu.memory_space<vmem>>, vector<8x128xf32>,
    %c0_i32_15 = arith.constant 0 : i32
    %20 = arith.cmpi eq, %arg0, %c0_i32_15 : i32
    %21 = arith.extui %20 : i1 to i32
    %c0_i32_16 = arith.constant 0 : i32
    %22 = arith.cmpi ne, %21, %c0_i32_16 : i32
    scf.if %22 {
      %c0_17 = arith.constant 0 : index
      %c0_18 = arith.constant 0 : index
      %23 = vector.load %arg5[%c0_17, %c0_18] : memref<8x128xf32, #tpu.memory_space<vmem>>, vector<8x128xf32>
      %cst_19 = arith.constant dense<0.000000e+00> : vector<128xf32>
      %24 = vector.multi_reduction <add>, %23, %cst_19 [0] : vector<8x128xf32> to vector<128xf32>
      %25 = vector.shape_cast %24 : vector<128xf32> to vector<1x128xf32>
      %c0_20 = arith.constant 0 : index
      %c0_21 = arith.constant 0 : index
      %26 = vector.load %arg6[%c0_20, %c0_21] : memref<8x128xf32, #tpu.memory_space<vmem>>, vector<8x128xf32>
      %cst_22 = arith.constant dense<0.000000e+00> : vector<128xf32>
      %27 = vector.multi_reduction <add>, %26, %cst_22 [0] : vector<8x128xf32> to vector<128xf32>
      %28 = vector.shape_cast %27 : vector<128xf32> to vector<1x128xf32>
      %cst_23 = arith.constant 3.125000e-02 : f32
      %29 = vector.broadcast %cst_23 : f32 to vector<1x128xf32>
      %30 = arith.mulf %25, %29 : vector<1x128xf32>
      %cst_24 = arith.constant 3.125000e-02 : f32
      %31 = vector.broadcast %cst_24 : f32 to vector<1x128xf32>
      %32 = arith.mulf %28, %31 : vector<1x128xf32>
      %33 = arith.mulf %30, %30 : vector<1x128xf32>
      %34 = arith.subf %32, %33 : vector<1x128xf32>
      %c0_25 = arith.constant 0 : index
      %c0_26 = arith.constant 0 : index
      %35 = vector.load %arg3[%c0_25, %c0_26] : memref<8x128xf32, #tpu.memory_space<vmem>>, vector<1x128xf32>
      %c1 = arith.constant 1 : index
      %c0_27 = arith.constant 0 : index
      %36 = vector.load %arg3[%c1, %c0_27] : memref<8x128xf32, #tpu.memory_space<vmem>>, vector<1x128xf32>
      %37 = arith.mulf %35, %35 : vector<1x128xf32>
      %cst_28 = arith.constant dense<0.000000e+00> : vector<1xf32>
      %38 = vector.multi_reduction <add>, %37, %cst_28 [1] : vector<1x128xf32> to vector<1xf32>
      %39 = vector.shape_cast %38 : vector<1xf32> to vector<1x1xf32>
      %cst_29 = arith.constant 9.99999996E-13 : f32
      %40 = vector.broadcast %cst_29 : f32 to vector<1x1xf32>
      %41 = arith.addf %39, %40 : vector<1x1xf32>
      %42 = math.rsqrt %41 : vector<1x1xf32>
      %43 = vector.broadcast %42 : vector<1x1xf32> to vector<1x128xf32>
      %44 = arith.mulf %35, %43 : vector<1x128xf32>
      %cst_30 = arith.constant 9.99999974E-6 : f32
      %45 = vector.broadcast %cst_30 : f32 to vector<1x128xf32>
      %46 = arith.addf %34, %45 : vector<1x128xf32>
      %47 = math.rsqrt %46 : vector<1x128xf32>
      %48 = arith.mulf %44, %47 : vector<1x128xf32>
      %49 = arith.mulf %30, %48 : vector<1x128xf32>
      %50 = arith.subf %36, %49 : vector<1x128xf32>
      %c0_i32_31 = arith.constant 0 : i32
      %c32_i32_32 = arith.constant 32 : i32
      %51 = arith.muli %c0_i32_31, %c32_i32_32 : i32
      %52 = tpu.assume_multiple %51, 32 : i32
      %53 = arith.index_cast %52 : i32 to index
      %c0_33 = arith.constant 0 : index
      %54 = vector.load %arg4[%53, %c0_33] : memref<32x128xf32, #tpu.memory_space<vmem>>, vector<32x128xf32>
      %55 = vector.broadcast %48 : vector<1x128xf32> to vector<32x128xf32>
      %56 = arith.mulf %54, %55 : vector<32x128xf32>
      %57 = vector.broadcast %50 : vector<1x128xf32> to vector<32x128xf32>
      %58 = arith.addf %56, %57 : vector<32x128xf32>
      %cst_34 = arith.constant 0.000000e+00 : f32
      %59 = vector.broadcast %cst_34 : f32 to vector<32x128xf32>
      %60 = arith.cmpf ogt, %58, %59 : vector<32x128xf32>
      %cst_35 = arith.constant 2.000000e-01 : f32
      %61 = vector.broadcast %cst_35 : f32 to vector<32x128xf32>
      %62 = arith.mulf %61, %58 : vector<32x128xf32>
      %63 = arith.select %60, %58, %62 : vector<32x128xi1>, vector<32x128xf32>
      %64 = arith.index_cast %52 : i32 to index
      %c0_36 = arith.constant 0 : index
      %65 = vector.load %arg4[%64, %c0_36] : memref<32x128xf32, #tpu.memory_space<vmem>>, vector<32x128xf32>
      tpu.vector_store %arg4[%64, %c0_36], %63 {strides = array<i32>} : memref<32x128xf32, #tpu.memory_space<vmem>>, vector<32x128xf32>,
      %c1_i32 = arith.constant 1 : i32
    } else {
    }
    return
  }
  func.func @transform_0(%arg0: i32) -> (i32, i32) {
    %c0_i32 = arith.constant 0 : i32
    %c0_i32_0 = arith.constant 0 : i32
    return %arg0, %c0_i32 : i32, i32
  }
  func.func @transform_1(%arg0: i32) -> (i32, i32) {
    %c0_i32 = arith.constant 0 : i32
    %c0_i32_0 = arith.constant 0 : i32
    %c0_i32_1 = arith.constant 0 : i32
    return %c0_i32, %c0_i32_0 : i32, i32
  }
  func.func @transform_2(%arg0: i32) -> (i32, i32) {
    %c0_i32 = arith.constant 0 : i32
    %c0_i32_0 = arith.constant 0 : i32
    %c0_i32_1 = arith.constant 0 : i32
    return %c0_i32, %c0_i32_0 : i32, i32
  }
  func.func @transform_3(%arg0: i32) -> (i32, i32) {
    %c0_i32 = arith.constant 0 : i32
    %c0_i32_0 = arith.constant 0 : i32
    %c0_i32_1 = arith.constant 0 : i32
    return %c0_i32, %c0_i32_0 : i32, i32
  }
}

module attributes {stable_mosaic.version = 11 : i64} {
  func.func @_conv_bn_act_kernel(%arg0: i32, %arg1: memref<32x1024xbf16, #tpu.memory_space<vmem>>, %arg2: memref<1024x128xbf16, #tpu.memory_space<vmem>>, %arg3: memref<8x128xf32, #tpu.memory_space<vmem>>, %arg4: memref<32x128xf32, #tpu.memory_space<vmem>>, %arg5: memref<8x128xf32, #tpu.memory_space<vmem>>, %arg6: memref<8x128xf32, #tpu.memory_space<vmem>>) attributes {dimension_semantics = [#tpu.dimension_semantics<arbitrary>], iteration_bounds = array<i64: 1>, scalar_prefetch = 0 : i64, scratch_operands = 2 : i64, tpu.core_type = #tpu.core_type<tc>, window_params = [{transform_indices = @transform_0, window_bounds = array<i64: 32, 1024>}, {pipeline_mode = #tpu.pipeline_mode<synchronous>, transform_indices = @transform_1, window_bounds = array<i64: 1024, 128>}, {pipeline_mode = #tpu.pipeline_mode<synchronous>, transform_indices = @transform_2, window_bounds = array<i64: 8, 128>}, {pipeline_mode = #tpu.pipeline_mode<synchronous>, transform_indices = @transform_3, window_bounds = array<i64: 32, 128>}]} {
    %c0_i32 = arith.constant 0 : i32
    %0 = arith.cmpi eq, %arg0, %c0_i32 : i32
    %1 = arith.extui %0 : i1 to i32
    %c0_i32_0 = arith.constant 0 : i32
    %2 = arith.cmpi ne, %1, %c0_i32_0 : i32
    scf.if %2 {
      %cst_17 = arith.constant 0.000000e+00 : f32
      %23 = vector.broadcast %cst_17 : f32 to vector<8x128xf32>
      %c0_18 = arith.constant 0 : index
      %c0_19 = arith.constant 0 : index
      %24 = vector.load %arg5[%c0_18, %c0_19] : memref<8x128xf32, #tpu.memory_space<vmem>>, vector<8x128xf32>
      tpu.vector_store %arg5[%c0_18, %c0_19], %23 {strides = array<i32>} : memref<8x128xf32, #tpu.memory_space<vmem>>, vector<8x128xf32>,
      %cst_20 = arith.constant 0.000000e+00 : f32
      %25 = vector.broadcast %cst_20 : f32 to vector<8x128xf32>
      %c0_21 = arith.constant 0 : index
      %c0_22 = arith.constant 0 : index
      %26 = vector.load %arg6[%c0_21, %c0_22] : memref<8x128xf32, #tpu.memory_space<vmem>>, vector<8x128xf32>
      tpu.vector_store %arg6[%c0_21, %c0_22], %25 {strides = array<i32>} : memref<8x128xf32, #tpu.memory_space<vmem>>, vector<8x128xf32>,
    } else {
    }
    %c0 = arith.constant 0 : index
    %c0_1 = arith.constant 0 : index
    %3 = vector.load %arg1[%c0, %c0_1] : memref<32x1024xbf16, #tpu.memory_space<vmem>>, vector<32x1024xbf16>
    %c0_2 = arith.constant 0 : index
    %c0_3 = arith.constant 0 : index
    %4 = vector.load %arg2[%c0_2, %c0_3] : memref<1024x128xbf16, #tpu.memory_space<vmem>>, vector<1024x128xbf16>
    %cst = arith.constant dense<0.000000e+00> : vector<32x128xf32>
    %5 = tpu.matmul %3, %4, %cst {dimension_numbers = #tpu.dot_dimension_numbers<[1], [0], [0], [1], [0, 0, 1, 1], [], []>} : vector<32x1024xbf16>, vector<1024x128xbf16>, vector<32x128xf32> -> vector<32x128xf32>
    %c32_i32 = arith.constant 32 : i32
    %6 = arith.muli %arg0, %c32_i32 : i32
    %7 = tpu.assume_multiple %6, 32 : i32
    %8 = arith.index_cast %7 : i32 to index
    %c0_4 = arith.constant 0 : index
    %9 = vector.load %arg4[%8, %c0_4] : memref<32x128xf32, #tpu.memory_space<vmem>>, vector<32x128xf32>
    tpu.vector_store %arg4[%8, %c0_4], %5 {strides = array<i32>} : memref<32x128xf32, #tpu.memory_space<vmem>>, vector<32x128xf32>,
    %10 = vector.shape_cast %5 : vector<32x128xf32> to vector<4x8x128xf32>
    %c0_5 = arith.constant 0 : index
    %c0_6 = arith.constant 0 : index
    %11 = vector.load %arg5[%c0_5, %c0_6] : memref<8x128xf32, #tpu.memory_space<vmem>>, vector<8x128xf32>
    %cst_7 = arith.constant dense<0.000000e+00> : vector<8x128xf32>
    %12 = vector.multi_reduction <add>, %10, %cst_7 [0] : vector<4x8x128xf32> to vector<8x128xf32>
    %13 = arith.addf %11, %12 : vector<8x128xf32>
    %c0_8 = arith.constant 0 : index
    %c0_9 = arith.constant 0 : index
    %14 = vector.load %arg5[%c0_8, %c0_9] : memref<8x128xf32, #tpu.memory_space<vmem>>, vector<8x128xf32>
    tpu.vector_store %arg5[%c0_8, %c0_9], %13 {strides = array<i32>} : memref<8x128xf32, #tpu.memory_space<vmem>>, vector<8x128xf32>,
    %c0_10 = arith.constant 0 : index
    %c0_11 = arith.constant 0 : index
    %15 = vector.load %arg6[%c0_10, %c0_11] : memref<8x128xf32, #tpu.memory_space<vmem>>, vector<8x128xf32>
    %16 = arith.mulf %10, %10 : vector<4x8x128xf32>
    %cst_12 = arith.constant dense<0.000000e+00> : vector<8x128xf32>
    %17 = vector.multi_reduction <add>, %16, %cst_12 [0] : vector<4x8x128xf32> to vector<8x128xf32>
    %18 = arith.addf %15, %17 : vector<8x128xf32>
    %c0_13 = arith.constant 0 : index
    %c0_14 = arith.constant 0 : index
    %19 = vector.load %arg6[%c0_13, %c0_14] : memref<8x128xf32, #tpu.memory_space<vmem>>, vector<8x128xf32>
    tpu.vector_store %arg6[%c0_13, %c0_14], %18 {strides = array<i32>} : memref<8x128xf32, #tpu.memory_space<vmem>>, vector<8x128xf32>,
    %c0_i32_15 = arith.constant 0 : i32
    %20 = arith.cmpi eq, %arg0, %c0_i32_15 : i32
    %21 = arith.extui %20 : i1 to i32
    %c0_i32_16 = arith.constant 0 : i32
    %22 = arith.cmpi ne, %21, %c0_i32_16 : i32
    scf.if %22 {
      %c0_17 = arith.constant 0 : index
      %c0_18 = arith.constant 0 : index
      %23 = vector.load %arg5[%c0_17, %c0_18] : memref<8x128xf32, #tpu.memory_space<vmem>>, vector<8x128xf32>
      %cst_19 = arith.constant dense<0.000000e+00> : vector<128xf32>
      %24 = vector.multi_reduction <add>, %23, %cst_19 [0] : vector<8x128xf32> to vector<128xf32>
      %25 = vector.shape_cast %24 : vector<128xf32> to vector<1x128xf32>
      %c0_20 = arith.constant 0 : index
      %c0_21 = arith.constant 0 : index
      %26 = vector.load %arg6[%c0_20, %c0_21] : memref<8x128xf32, #tpu.memory_space<vmem>>, vector<8x128xf32>
      %cst_22 = arith.constant dense<0.000000e+00> : vector<128xf32>
      %27 = vector.multi_reduction <add>, %26, %cst_22 [0] : vector<8x128xf32> to vector<128xf32>
      %28 = vector.shape_cast %27 : vector<128xf32> to vector<1x128xf32>
      %cst_23 = arith.constant 0.055555556 : f32
      %29 = vector.broadcast %cst_23 : f32 to vector<1x128xf32>
      %30 = arith.mulf %25, %29 : vector<1x128xf32>
      %cst_24 = arith.constant 0.055555556 : f32
      %31 = vector.broadcast %cst_24 : f32 to vector<1x128xf32>
      %32 = arith.mulf %28, %31 : vector<1x128xf32>
      %33 = arith.mulf %30, %30 : vector<1x128xf32>
      %34 = arith.subf %32, %33 : vector<1x128xf32>
      %c0_25 = arith.constant 0 : index
      %c0_26 = arith.constant 0 : index
      %35 = vector.load %arg3[%c0_25, %c0_26] : memref<8x128xf32, #tpu.memory_space<vmem>>, vector<1x128xf32>
      %c1 = arith.constant 1 : index
      %c0_27 = arith.constant 0 : index
      %36 = vector.load %arg3[%c1, %c0_27] : memref<8x128xf32, #tpu.memory_space<vmem>>, vector<1x128xf32>
      %37 = arith.mulf %35, %35 : vector<1x128xf32>
      %cst_28 = arith.constant dense<0.000000e+00> : vector<1xf32>
      %38 = vector.multi_reduction <add>, %37, %cst_28 [1] : vector<1x128xf32> to vector<1xf32>
      %39 = vector.shape_cast %38 : vector<1xf32> to vector<1x1xf32>
      %cst_29 = arith.constant 9.99999996E-13 : f32
      %40 = vector.broadcast %cst_29 : f32 to vector<1x1xf32>
      %41 = arith.addf %39, %40 : vector<1x1xf32>
      %42 = math.rsqrt %41 : vector<1x1xf32>
      %43 = vector.broadcast %42 : vector<1x1xf32> to vector<1x128xf32>
      %44 = arith.mulf %35, %43 : vector<1x128xf32>
      %cst_30 = arith.constant 9.99999974E-6 : f32
      %45 = vector.broadcast %cst_30 : f32 to vector<1x128xf32>
      %46 = arith.addf %34, %45 : vector<1x128xf32>
      %47 = math.rsqrt %46 : vector<1x128xf32>
      %48 = arith.mulf %44, %47 : vector<1x128xf32>
      %49 = arith.mulf %30, %48 : vector<1x128xf32>
      %50 = arith.subf %36, %49 : vector<1x128xf32>
      %c0_i32_31 = arith.constant 0 : i32
      %c32_i32_32 = arith.constant 32 : i32
      %51 = arith.muli %c0_i32_31, %c32_i32_32 : i32
      %52 = tpu.assume_multiple %51, 32 : i32
      %53 = arith.index_cast %52 : i32 to index
      %c0_33 = arith.constant 0 : index
      %54 = vector.load %arg4[%53, %c0_33] : memref<32x128xf32, #tpu.memory_space<vmem>>, vector<32x128xf32>
      %55 = vector.broadcast %48 : vector<1x128xf32> to vector<32x128xf32>
      %56 = arith.mulf %54, %55 : vector<32x128xf32>
      %57 = vector.broadcast %50 : vector<1x128xf32> to vector<32x128xf32>
      %58 = arith.addf %56, %57 : vector<32x128xf32>
      %cst_34 = arith.constant 0.000000e+00 : f32
      %59 = vector.broadcast %cst_34 : f32 to vector<32x128xf32>
      %60 = arith.cmpf ogt, %58, %59 : vector<32x128xf32>
      %cst_35 = arith.constant 2.000000e-01 : f32
      %61 = vector.broadcast %cst_35 : f32 to vector<32x128xf32>
      %62 = arith.mulf %61, %58 : vector<32x128xf32>
      %63 = arith.select %60, %58, %62 : vector<32x128xi1>, vector<32x128xf32>
      %64 = arith.index_cast %52 : i32 to index
      %c0_36 = arith.constant 0 : index
      %65 = vector.load %arg4[%64, %c0_36] : memref<32x128xf32, #tpu.memory_space<vmem>>, vector<32x128xf32>
      tpu.vector_store %arg4[%64, %c0_36], %63 {strides = array<i32>} : memref<32x128xf32, #tpu.memory_space<vmem>>, vector<32x128xf32>,
      %c1_i32 = arith.constant 1 : i32
    } else {
    }
    return
  }
  func.func @transform_0(%arg0: i32) -> (i32, i32) {
    %c0_i32 = arith.constant 0 : i32
    %c0_i32_0 = arith.constant 0 : i32
    return %arg0, %c0_i32 : i32, i32
  }
  func.func @transform_1(%arg0: i32) -> (i32, i32) {
    %c0_i32 = arith.constant 0 : i32
    %c0_i32_0 = arith.constant 0 : i32
    %c0_i32_1 = arith.constant 0 : i32
    return %c0_i32, %c0_i32_0 : i32, i32
  }
  func.func @transform_2(%arg0: i32) -> (i32, i32) {
    %c0_i32 = arith.constant 0 : i32
    %c0_i32_0 = arith.constant 0 : i32
    %c0_i32_1 = arith.constant 0 : i32
    return %c0_i32, %c0_i32_0 : i32, i32
  }
  func.func @transform_3(%arg0: i32) -> (i32, i32) {
    %c0_i32 = arith.constant 0 : i32
    %c0_i32_0 = arith.constant 0 : i32
    %c0_i32_1 = arith.constant 0 : i32
    return %c0_i32, %c0_i32_0 : i32, i32
  }
}

module attributes {stable_mosaic.version = 11 : i64} {
  func.func @_conv_bias_act_kernel(%arg0: i32, %arg1: memref<16x640xbf16, #tpu.memory_space<vmem>>, %arg2: memref<640x128xbf16, #tpu.memory_space<vmem>>, %arg3: memref<8x128xf32, #tpu.memory_space<vmem>>, %arg4: memref<16x128xf32, #tpu.memory_space<vmem>>) attributes {dimension_semantics = [#tpu.dimension_semantics<parallel>], iteration_bounds = array<i64: 1>, scalar_prefetch = 0 : i64, scratch_operands = 0 : i64, tpu.core_type = #tpu.core_type<tc>, window_params = [{transform_indices = @transform_0, window_bounds = array<i64: 16, 640>}, {pipeline_mode = #tpu.pipeline_mode<synchronous>, transform_indices = @transform_1, window_bounds = array<i64: 640, 128>}, {pipeline_mode = #tpu.pipeline_mode<synchronous>, transform_indices = @transform_2, window_bounds = array<i64: 8, 128>}, {transform_indices = @transform_3, window_bounds = array<i64: 16, 128>}]} {
    %c0 = arith.constant 0 : index
    %c0_0 = arith.constant 0 : index
    %0 = vector.load %arg1[%c0, %c0_0] : memref<16x640xbf16, #tpu.memory_space<vmem>>, vector<16x640xbf16>
    %c0_1 = arith.constant 0 : index
    %c0_2 = arith.constant 0 : index
    %1 = vector.load %arg2[%c0_1, %c0_2] : memref<640x128xbf16, #tpu.memory_space<vmem>>, vector<640x128xbf16>
    %cst = arith.constant dense<0.000000e+00> : vector<16x128xf32>
    %2 = tpu.matmul %0, %1, %cst {dimension_numbers = #tpu.dot_dimension_numbers<[1], [0], [0], [1], [0, 0, 1, 1], [], []>} : vector<16x640xbf16>, vector<640x128xbf16>, vector<16x128xf32> -> vector<16x128xf32>
    %c0_3 = arith.constant 0 : index
    %c0_4 = arith.constant 0 : index
    %3 = vector.load %arg3[%c0_3, %c0_4] : memref<8x128xf32, #tpu.memory_space<vmem>>, vector<1x128xf32>
    %4 = vector.broadcast %3 : vector<1x128xf32> to vector<16x128xf32>
    %5 = arith.addf %2, %4 : vector<16x128xf32>
    %6 = arith.negf %5 : vector<16x128xf32>
    %7 = math.exp %6 : vector<16x128xf32>
    %cst_5 = arith.constant 1.000000e+00 : f32
    %8 = vector.broadcast %cst_5 : f32 to vector<16x128xf32>
    %9 = arith.addf %8, %7 : vector<16x128xf32>
    %10 = arith.divf %8, %9 : vector<16x128xf32>
    %c0_6 = arith.constant 0 : index
    %c0_7 = arith.constant 0 : index
    %11 = vector.load %arg4[%c0_6, %c0_7] : memref<16x128xf32, #tpu.memory_space<vmem>>, vector<16x128xf32>
    tpu.vector_store %arg4[%c0_6, %c0_7], %10 {strides = array<i32>} : memref<16x128xf32, #tpu.memory_space<vmem>>, vector<16x128xf32>,
    return
  }
  func.func @transform_0(%arg0: i32) -> (i32, i32) {
    %c0_i32 = arith.constant 0 : i32
    %c0_i32_0 = arith.constant 0 : i32
    return %arg0, %c0_i32 : i32, i32
  }
  func.func @transform_1(%arg0: i32) -> (i32, i32) {
    %c0_i32 = arith.constant 0 : i32
    %c0_i32_0 = arith.constant 0 : i32
    %c0_i32_1 = arith.constant 0 : i32
    return %c0_i32, %c0_i32_0 : i32, i32
  }
  func.func @transform_2(%arg0: i32) -> (i32, i32) {
    %c0_i32 = arith.constant 0 : i32
    %c0_i32_0 = arith.constant 0 : i32
    %c0_i32_1 = arith.constant 0 : i32
    return %c0_i32, %c0_i32_0 : i32, i32
  }
  func.func @transform_3(%arg0: i32) -> (i32, i32) {
    %c0_i32 = arith.constant 0 : i32
    %c0_i32_0 = arith.constant 0 : i32
    return %arg0, %c0_i32 : i32, i32
  }
}

</mosaic_0001>

<bundles_post_ra>
// kernel: forward.6
= control target key start
LH: loop header
LB: loop body
LE: loop exit
PB: predicated region body
PF: predicated region fallthrough
CT: control target
= control target key end

     0   :  { %s1365_s12 = smov 0   ;;  %s1579_s0 = inlined_call_operand.vmem [shape: bf16[2048,128], index: 0, kind: input, shape index: {}]   ;;  %s1580_s1 = inlined_call_operand.vmem [shape: bf16[128,128], index: 1, kind: input, shape index: {}]   ;;  %s1581_s2 = inlined_call_operand.vmem [shape: f32[8,128], index: 2, kind: input, shape index: {}]   ;;  %s1582_s3 = inlined_call_operand.vmem [shape: f32[2048,128], index: 3, kind: output, shape index: {}]  }
   0x1 LB: > { %s1101_s13 = sadd.s32 4294967295, %s1343_s12   ;;  %p1105_p0 = scmp.ge.s32.totalorder %s1343_s12, 1  ;;  %s1343_s12 = sphi %s1365_s12, %s13_s12  }
   0x2   : > { %p138_p1 = scmp.lt.s32.totalorder %s1343_s12, 5 }
   0x4   : > { %p139_p2 = pnand %p1105_p0, %p138_p1 }
   0x5   : > { %v1297_v0 = vld [vmem:[%s1580_s1] sm:$0xff] (!%p139_p2)   ;;  %s1106_s16 = sshll.u32 (!%p139_p2), %s1101_s13, 6  ;;  %v1298_v1 = vld [vmem:[%s1580_s1 + $0x8] sm:$0xff] (!%p139_p2)   ;;  %v1299_v2 = vld [vmem:[%s1580_s1 + $0x10] sm:$0xff] (!%p139_p2)  }
   0x6   : > { %142 = sbr.rel (%p139_p2) target bundleno = 319 (0x13f), region = 32  ;;  %p163_p3 = scmp.lt.s32.totalorder (!%p139_p2), %s1106_s16, 255  ;;  %1193 = vmatprep.subr.bf16.mxu0 (!%p139_p2), %v1297_v0  ;;  %1273 = vmatprep.subr.bf16.mxu1 (!%p139_p2), %v1297_v0  ;;  %v1300_v3 = vld [vmem:[%s1580_s1 + $0x18] sm:$0xff] (!%p139_p2)   ;;  %v1301_v6 = vld [vmem:[%s1580_s1 + $0x20] sm:$0xff] (!%p139_p2)   ;;  %v1302_v7 = vld [vmem:[%s1580_s1 + $0x28] sm:$0xff] (!%p139_p2)  }
   0x7   : > { %1194 = vmatpush3.bf16.msra.mxu0 (!%p139_p2), %v1297_v0  ;;  %1281 = vmatpush3.bf16.msra.mxu1 (!%p139_p2), %v1297_v0  ;;  %v1303_v8 = vld [vmem:[%s1580_s1 + $0x30] sm:$0xff] (!%p139_p2)   ;;  %v1304_v9 = vld [vmem:[%s1580_s1 + $0x38] sm:$0xff] (!%p139_p2)   ;;  %v1440_v40 = vld [vmem:[%s1581_s2] ss:$0 sm:$0xff] (!%p139_p2) }
   0x8   : > { %1195 = vmatprep.subr.bf16.mxu0 (!%p139_p2), %v1298_v1  ;;  %1274 = vmatprep.subr.bf16.mxu1 (!%p139_p2), %v1298_v1 }
   0xb   : > { %1196 = vmatpush3.bf16.msra.mxu0 (!%p139_p2), %v1298_v1  ;;  %1282 = vmatpush3.bf16.msra.mxu1 (!%p139_p2), %v1298_v1 }
   0xc   : > { %1197 = vmatprep.subr.bf16.mxu0 (!%p139_p2), %v1299_v2  ;;  %1275 = vmatprep.subr.bf16.mxu1 (!%p139_p2), %v1299_v2 }
   0xd   : > { %s1584_s16 = smov (!%p163_p3, %s1106_s16), 255 }
   0xe   : > { %s1107_s21 = sshll.u32 %s1584_s16, 2  ;;  %s1109_s10 = sshll.u32 %s1584_s16, 3 }
   0xf   : > { %s1388_s24 = scalar_lea.vmem %s1579_s0, %s1107_s21  ;;  %1198 = vmatpush3.bf16.msra.mxu0 %v1299_v2  ;;  %1283 = vmatpush3.bf16.msra.mxu1 %v1299_v2  ;;  %s1450_s14 = scalar_lea.vmem %s1582_s3, %s1109_s10 }
  0x10   : > { %v1305_v4 = vld [vmem:[%s1388_s24] sm:$0xff]   ;;  %1199 = vmatprep.subr.bf16.mxu0 %v1300_v3  ;;  %1276 = vmatprep.subr.bf16.mxu1 %v1300_v3  ;;  %v1307_v10 = vld [vmem:[%s1388_s24 + $0x8] sm:$0xff]   ;;  %v1309_v12 = vld [vmem:[%s1388_s24 + $0x10] sm:$0xff]  }
  0x11   : > { %v1306_v5 = vld [vmem:[%s1388_s24 + $0x80] sm:$0xff]   ;;  %1209 = vmatprep.mubr.bf16.mxu0 %v1305_v4  ;;  %v1308_v11 = vld [vmem:[%s1388_s24 + $0x88] sm:$0xff]   ;;  %v1310_v13 = vld [vmem:[%s1388_s24 + $0x90] sm:$0xff]  }
  0x12   : > { %1241 = vmatprep.mubr.bf16.mxu1 %v1306_v5  ;;  %v1311_v14 = vld [vmem:[%s1388_s24 + $0x18] sm:$0xff]   ;;  %v1313_v16 = vld [vmem:[%s1388_s24 + $0x20] sm:$0xff]   ;;  %v1315_v18 = vld [vmem:[%s1388_s24 + $0x28] sm:$0xff]  }
  0x13   : > { %1200 = vmatpush3.bf16.msra.mxu0 %v1300_v3  ;;  %1284 = vmatpush3.bf16.msra.mxu1 %v1300_v3  ;;  %v1312_v15 = vld [vmem:[%s1388_s24 + $0x98] sm:$0xff]   ;;  %v1314_v17 = vld [vmem:[%s1388_s24 + $0xa0] sm:$0xff]   ;;  %v1316_v19 = vld [vmem:[%s1388_s24 + $0xa8] sm:$0xff]  }
  0x14   : > { %1201 = vmatprep.subr.bf16.mxu0 %v1301_v6  ;;  %1277 = vmatprep.subr.bf16.mxu1 %v1301_v6  ;;  %v1317_v20 = vld [vmem:[%s1388_s24 + $0x30] sm:$0xff]   ;;  %v1319_v22 = vld [vmem:[%s1388_s24 + $0x38] sm:$0xff]   ;;  %v1321_v24 = vld [vmem:[%s1388_s24 + $0x40] sm:$0xff]  }
  0x15   : > { %v1318_v21 = vld [vmem:[%s1388_s24 + $0xb0] sm:$0xff]   ;;  %v1320_v23 = vld [vmem:[%s1388_s24 + $0xb8] sm:$0xff]   ;;  %v1322_v25 = vld [vmem:[%s1388_s24 + $0xc0] sm:$0xff]  }
  0x16   : > { %v1323_v26 = vld [vmem:[%s1388_s24 + $0x48] sm:$0xff]   ;;  %v1325_v28 = vld [vmem:[%s1388_s24 + $0x50] sm:$0xff]   ;;  %v1327_v30 = vld [vmem:[%s1388_s24 + $0x58] sm:$0xff]  }
  0x17   : > { %1202 = vmatpush3.bf16.msra.mxu0 %v1301_v6  ;;  %1285 = vmatpush3.bf16.msra.mxu1 %v1301_v6  ;;  %v1324_v27 = vld [vmem:[%s1388_s24 + $0xc8] sm:$0xff]   ;;  %v1326_v29 = vld [vmem:[%s1388_s24 + $0xd0] sm:$0xff]   ;;  %v1328_v31 = vld [vmem:[%s1388_s24 + $0xd8] sm:$0xff]  }
  0x18   : > { %1203 = vmatprep.subr.bf16.mxu0 %v1302_v7  ;;  %1278 = vmatprep.subr.bf16.mxu1 %v1302_v7  ;;  %v1329_v32 = vld [vmem:[%s1388_s24 + $0x60] sm:$0xff]   ;;  %v1331_v34 = vld [vmem:[%s1388_s24 + $0x68] sm:$0xff]   ;;  %v1333_v36 = vld [vmem:[%s1388_s24 + $0x70] sm:$0xff]  }
  0x19   : > { %v1330_v33 = vld [vmem:[%s1388_s24 + $0xe0] sm:$0xff]   ;;  %v1332_v35 = vld [vmem:[%s1388_s24 + $0xe8] sm:$0xff]   ;;  %v1334_v37 = vld [vmem:[%s1388_s24 + $0xf0] sm:$0xff]  }
  0x1a   : > { %v1335_v38 = vld [vmem:[%s1388_s24 + $0x78] sm:$0xff]  }
  0x1b   : > { %1204 = vmatpush3.bf16.msra.mxu0 %v1302_v7  ;;  %1286 = vmatpush3.bf16.msra.mxu1 %v1302_v7  ;;  %v1336_v39 = vld [vmem:[%s1388_s24 + $0xf8] sm:$0xff]  }
  0x1c   : > { %1205 = vmatprep.subr.bf16.mxu0 %v1303_v8  ;;  %1279 = vmatprep.subr.bf16.mxu1 %v1303_v8 }
  0x1f   : > { %1206 = vmatpush3.bf16.msra.mxu0 %v1303_v8  ;;  %1287 = vmatpush3.bf16.msra.mxu1 %v1303_v8 }
  0x20   : > { %1207 = vmatprep.subr.bf16.mxu0 %v1304_v9  ;;  %1280 = vmatprep.subr.bf16.mxu1 %v1304_v9 }
  0x23   : > { %1208 = vmatpush3.bf16.msra.mxu0 %v1304_v9  ;;  %1288 = vmatpush3.bf16.msra.mxu1 %v1304_v9 }
  0x26   : > { %1210 = vmatmul.mubr.bf16.vlgmr.msra.gmra.mrb[0].mxu0 %v1307_v10  ;;  %1242 = vmatmul.mubr.bf16.vlgmr.msra.gmra.mrb[0].mxu1 %v1308_v11 }
  0x27   : > { %1213 = vmatprep.mubr.bf16.mxu0 %v1309_v12  ;;  %1245 = vmatprep.mubr.bf16.mxu1 %v1310_v13 }
  0x2e   : > { %1214 = vmatmul.mubr.bf16.gmra.mrb[4].mxu0 %v1311_v14  ;;  %1246 = vmatmul.mubr.bf16.gmra.mrb[4].mxu1 %v1312_v15 }
  0x2f   : > { %1217 = vmatprep.mubr.bf16.mxu0 %v1313_v16  ;;  %1249 = vmatprep.mubr.bf16.mxu1 %v1314_v17 }
  0x36   : > { %1218 = vmatmul.mubr.bf16.gmra.mrb[8].mxu0 %v1315_v18  ;;  %1250 = vmatmul.mubr.bf16.gmra.mrb[8].mxu1 %v1316_v19 }
  0x37   : > { %1221 = vmatprep.mubr.bf16.mxu0 %v1317_v20  ;;  %1253 = vmatprep.mubr.bf16.mxu1 %v1318_v21 }
  0x3e   : > { %1222 = vmatmul.mubr.bf16.gmra.mrb[12].mxu0 %v1319_v22  ;;  %1254 = vmatmul.mubr.bf16.gmra.mrb[12].mxu1 %v1320_v23 }
  0x3f   : > { %1225 = vmatprep.mubr.bf16.mxu0 %v1321_v24  ;;  %1257 = vmatprep.mubr.bf16.mxu1 %v1322_v25 }
  0x46   : > { %1226 = vmatmul.mubr.bf16.gmra.mrb[16].mxu0 %v1323_v26  ;;  %1258 = vmatmul.mubr.bf16.gmra.mrb[16].mxu1 %v1324_v27 }
  0x47   : > { %1229 = vmatprep.mubr.bf16.mxu0 %v1325_v28  ;;  %1261 = vmatprep.mubr.bf16.mxu1 %v1326_v29 }
  0x4e   : > { %1230 = vmatmul.mubr.bf16.gmra.mrb[20].mxu0 %v1327_v30  ;;  %1262 = vmatmul.mubr.bf16.gmra.mrb[20].mxu1 %v1328_v31 }
  0x4f   : > { %1233 = vmatprep.mubr.bf16.mxu0 %v1329_v32  ;;  %1265 = vmatprep.mubr.bf16.mxu1 %v1330_v33 }
  0x56   : > { %1234 = vmatmul.mubr.bf16.gmra.mrb[24].mxu0 %v1331_v34  ;;  %1266 = vmatmul.mubr.bf16.gmra.mrb[24].mxu1 %v1332_v35 }
  0x57   : > { %1237 = vmatprep.mubr.bf16.mxu0 %v1333_v36  ;;  %1269 = vmatprep.mubr.bf16.mxu1 %v1334_v37 }
  0x5e   : > { %1238 = vmatmul.mubr.bf16.gmra.mrb[28].mxu0 %v1335_v38  ;;  %1270 = vmatmul.mubr.bf16.gmra.mrb[28].mxu1 %v1336_v39 }
  0xf9   : > { %v1211_v41 = vpop.f32.mrb[0].mxu0  ;;  %v1243_v42 = vpop.f32.mrb[0].mxu1 }
  0xfa   : > { %v543_v43 = vadd.f32 %v1211_v41, %v1440_v40  ;;  %v671_v44 = vadd.f32 %v1243_v42, %v1440_v40  ;;  %v534_v45 = vpop.f32.mrb[1].mxu0  ;;  %v662_v46 = vpop.f32.mrb[1].mxu1 }
  0xfb   : > { %v535_v47 = vadd.f32 %v1440_v40, %v534_v45  ;;  %v663_v48 = vadd.f32 %v1440_v40, %v662_v46  ;;  %v1212_v49 = vpop.f32.mrb[2].mxu0  ;;  %v1244_v50 = vpop.f32.mrb[2].mxu1 }
  0xfc   : > { %vm791_vm0 = vcmp.gt.f32.partialorder %v543_v43, 0.0  ;;  %v855_v51 = vmul.f32 0.2, %v543_v43  ;;  %vm823_vm1 = vcmp.gt.f32.partialorder %v671_v44, 0.0  ;;  %v887_v52 = vmul.f32 0.2, %v671_v44 }
  0xfd   : > { %vm789_vm2 = vcmp.gt.f32.partialorder %v535_v47, 0.0  ;;  %v853_v53 = vmul.f32 0.2, %v535_v47  ;;  %vm821_vm3 = vcmp.gt.f32.partialorder %v663_v48, 0.0  ;;  %v885_v54 = vmul.f32 0.2, %v663_v48 }
  0xfe   : > { %v919_v55 = vsel %vm791_vm0, %v543_v43, %v855_v51  ;;  %v951_v56 = vsel %vm823_vm1, %v671_v44, %v887_v52  ;;  %v546_v57 = vadd.f32 %v1212_v49, %v1440_v40  ;;  %v674_v58 = vadd.f32 %v1244_v50, %v1440_v40  ;;  %v537_v59 = vpop.f32.mrb[3].mxu0  ;;  %v665_v60 = vpop.f32.mrb[3].mxu1 }
  0xff   : > { %983 = vst [vmem:[%s1450_s14 + $0x10] sm:$0xff] %v919_v55  ;;  %1015 = vst [vmem:[%s1450_s14 + $0x110] sm:$0xff] %v951_v56  ;;  %v917_v61 = vsel %vm789_vm2, %v535_v47, %v853_v53  ;;  %v949_v62 = vsel %vm821_vm3, %v663_v48, %v885_v54  ;;  %v538_v63 = vadd.f32 %v1440_v40, %v537_v59 }
 0x100   : > { %v666_v0 = vadd.f32 %v1440_v40, %v665_v60  ;;  %981 = vst [vmem:[%s1450_s14] sm:$0xff] %v917_v61  ;;  %1013 = vst [vmem:[%s1450_s14 + $0x100] sm:$0xff] %v949_v62  ;;  %vm792_vm4 = vcmp.gt.f32.partialorder %v546_v57, 0.0  ;;  %v856_v1 = vmul.f32 0.2, %v546_v57  ;;  %vm824_vm5 = vcmp.gt.f32.partialorder %v674_v58, 0.0 }
 0x101   : > { %v888_v2 = vmul.f32 0.2, %v674_v58  ;;  %vm790_vm6 = vcmp.gt.f32.partialorder %v538_v63, 0.0  ;;  %v854_v3 = vmul.f32 0.2, %v538_v63  ;;  %v1215_v7 = vpop.f32.mrb[4].mxu0 }
 0x102   : > { %vm822_vm7 = vcmp.gt.f32.partialorder %v666_v0, 0.0  ;;  %v886_v4 = vmul.f32 0.2, %v666_v0  ;;  %v920_v5 = vsel %vm792_vm4, %v546_v57, %v856_v1  ;;  %v1247_v8 = vpop.f32.mrb[4].mxu1  ;;  %v559_v11 = vadd.f32 %v1215_v7, %v1440_v40  ;;  %v550_v13 = vpop.f32.mrb[5].mxu0 }
 0x103   : > { %v952_v6 = vsel %vm824_vm5, %v674_v58, %v888_v2  ;;  %984 = vst [vmem:[%s1450_s14 + $0x18] sm:$0xff] %v920_v5  ;;  %v918_v9 = vsel %vm790_vm6, %v538_v63, %v854_v3  ;;  %v687_v12 = vadd.f32 %v1247_v8, %v1440_v40  ;;  %v678_v14 = vpop.f32.mrb[5].mxu1  ;;  %v551_v15 = vadd.f32 %v1440_v40, %v550_v13  ;;  %v1216_v17 = vpop.f32.mrb[6].mxu0 }
 0x104   : > { %1016 = vst [vmem:[%s1450_s14 + $0x118] sm:$0xff] %v952_v6  ;;  %v950_v10 = vsel %vm822_vm7, %v666_v0, %v886_v4  ;;  %982 = vst [vmem:[%s1450_s14 + $0x8] sm:$0xff] %v918_v9  ;;  %v679_v16 = vadd.f32 %v1440_v40, %v678_v14  ;;  %v1248_v18 = vpop.f32.mrb[6].mxu1  ;;  %vm795_vm8 = vcmp.gt.f32.partialorder %v559_v11, 0.0  ;;  %v859_v19 = vmul.f32 0.2, %v559_v11 }
 0x105   : > { %1014 = vst [vmem:[%s1450_s14 + $0x108] sm:$0xff] %v950_v10  ;;  %vm827_vm9 = vcmp.gt.f32.partialorder %v687_v12, 0.0  ;;  %v891_v20 = vmul.f32 0.2, %v687_v12  ;;  %vm793_vm10 = vcmp.gt.f32.partialorder %v551_v15, 0.0  ;;  %v562_v25 = vadd.f32 %v1216_v17, %v1440_v40  ;;  %v553_v27 = vpop.f32.mrb[7].mxu0 }
 0x106   : > { %v857_v21 = vmul.f32 0.2, %v551_v15  ;;  %vm825_vm11 = vcmp.gt.f32.partialorder %v679_v16, 0.0  ;;  %v889_v22 = vmul.f32 0.2, %v679_v16  ;;  %v923_v23 = vsel %vm795_vm8, %v559_v11, %v859_v19  ;;  %v681_v28 = vpop.f32.mrb[7].mxu1 }
 0x107   : > { %v955_v24 = vsel %vm827_vm9, %v687_v12, %v891_v20  ;;  %v690_v26 = vadd.f32 %v1248_v18, %v1440_v40  ;;  %987 = vst [vmem:[%s1450_s14 + $0x30] sm:$0xff] %v923_v23  ;;  %v554_v31 = vadd.f32 %v1440_v40, %v553_v27  ;;  %v682_v32 = vadd.f32 %v1440_v40, %v681_v28 }
 0x108   : > { %1019 = vst [vmem:[%s1450_s14 + $0x130] sm:$0xff] %v955_v24  ;;  %v921_v29 = vsel %vm793_vm10, %v551_v15, %v857_v21  ;;  %v953_v30 = vsel %vm825_vm11, %v679_v16, %v889_v22  ;;  %vm796_vm12 = vcmp.gt.f32.partialorder %v562_v25, 0.0  ;;  %v860_v33 = vmul.f32 0.2, %v562_v25 }
 0x109   : > { %985 = vst [vmem:[%s1450_s14 + $0x20] sm:$0xff] %v921_v29  ;;  %1017 = vst [vmem:[%s1450_s14 + $0x120] sm:$0xff] %v953_v30  ;;  %vm828_vm13 = vcmp.gt.f32.partialorder %v690_v26, 0.0  ;;  %v892_v34 = vmul.f32 0.2, %v690_v26  ;;  %vm794_vm14 = vcmp.gt.f32.partialorder %v554_v31, 0.0 }
 0x10a   : > { %v858_v35 = vmul.f32 0.2, %v554_v31  ;;  %vm826_vm15 = vcmp.gt.f32.partialorder %v682_v32, 0.0  ;;  %v890_v36 = vmul.f32 0.2, %v682_v32  ;;  %v924_v37 = vsel %vm796_vm12, %v562_v25, %v860_v33  ;;  %v1219_v39 = vpop.f32.mrb[8].mxu0 }
 0x10b   : > { %v956_v38 = vsel %vm828_vm13, %v690_v26, %v892_v34  ;;  %v1251_v41 = vpop.f32.mrb[8].mxu1  ;;  %988 = vst [vmem:[%s1450_s14 + $0x38] sm:$0xff] %v924_v37  ;;  %v575_v44 = vadd.f32 %v1219_v39, %v1440_v40  ;;  %v566_v46 = vpop.f32.mrb[9].mxu0 }
 0x10c   : > { %1020 = vst [vmem:[%s1450_s14 + $0x138] sm:$0xff] %v956_v38  ;;  %v922_v42 = vsel %vm794_vm14, %v554_v31, %v858_v35  ;;  %v954_v43 = vsel %vm826_vm15, %v682_v32, %v890_v36  ;;  %v703_v45 = vadd.f32 %v1251_v41, %v1440_v40  ;;  %v694_v47 = vpop.f32.mrb[9].mxu1  ;;  %v567_v48 = vadd.f32 %v1440_v40, %v566_v46  ;;  %v1220_v50 = vpop.f32.mrb[10].mxu0 }
 0x10d   : > { %986 = vst [vmem:[%s1450_s14 + $0x28] sm:$0xff] %v922_v42  ;;  %1018 = vst [vmem:[%s1450_s14 + $0x128] sm:$0xff] %v954_v43  ;;  %v695_v49 = vadd.f32 %v1440_v40, %v694_v47  ;;  %v1252_v51 = vpop.f32.mrb[10].mxu1  ;;  %vm799_vm0 = vcmp.gt.f32.partialorder %v575_v44, 0.0  ;;  %v863_v52 = vmul.f32 0.2, %v575_v44  ;;  %v578_v58 = vadd.f32 %v1220_v50, %v1440_v40 }
 0x10e   : > { %vm831_vm1 = vcmp.gt.f32.partialorder %v703_v45, 0.0  ;;  %v895_v53 = vmul.f32 0.2, %v703_v45  ;;  %vm797_vm2 = vcmp.gt.f32.partialorder %v567_v48, 0.0  ;;  %v861_v54 = vmul.f32 0.2, %v567_v48 }
 0x10f   : > { %vm829_vm3 = vcmp.gt.f32.partialorder %v695_v49, 0.0  ;;  %v893_v55 = vmul.f32 0.2, %v695_v49  ;;  %v927_v56 = vsel %vm799_vm0, %v575_v44, %v863_v52  ;;  %v706_v59 = vadd.f32 %v1252_v51, %v1440_v40  ;;  %v569_v60 = vpop.f32.mrb[11].mxu0  ;;  %v697_v61 = vpop.f32.mrb[11].mxu1 }
 0x110   : > { %v959_v57 = vsel %vm831_vm1, %v703_v45, %v895_v53  ;;  %991 = vst [vmem:[%s1450_s14 + $0x50] sm:$0xff] %v927_v56  ;;  %v925_v62 = vsel %vm797_vm2, %v567_v48, %v861_v54  ;;  %v570_v0 = vadd.f32 %v1440_v40, %v569_v60  ;;  %v698_v1 = vadd.f32 %v1440_v40, %v697_v61 }
 0x111   : > { %1023 = vst [vmem:[%s1450_s14 + $0x150] sm:$0xff] %v959_v57  ;;  %v957_v63 = vsel %vm829_vm3, %v695_v49, %v893_v55  ;;  %v1223_v2 = vpop.f32.mrb[12].mxu0  ;;  %v1255_v3 = vpop.f32.mrb[12].mxu1  ;;  %989 = vst [vmem:[%s1450_s14 + $0x40] sm:$0xff] %v925_v62  ;;  %vm800_vm4 = vcmp.gt.f32.partialorder %v578_v58, 0.0  ;;  %vm832_vm5 = vcmp.gt.f32.partialorder %v706_v59, 0.0 }
 0x112   : > { %1021 = vst [vmem:[%s1450_s14 + $0x140] sm:$0xff] %v957_v63  ;;  %v864_v4 = vmul.f32 0.2, %v578_v58  ;;  %v896_v5 = vmul.f32 0.2, %v706_v59  ;;  %vm798_vm6 = vcmp.gt.f32.partialorder %v570_v0, 0.0  ;;  %v591_v10 = vadd.f32 %v1223_v2, %v1440_v40 }
 0x113   : > { %v862_v6 = vmul.f32 0.2, %v570_v0  ;;  %vm830_vm7 = vcmp.gt.f32.partialorder %v698_v1, 0.0  ;;  %v894_v7 = vmul.f32 0.2, %v698_v1  ;;  %v719_v11 = vadd.f32 %v1255_v3, %v1440_v40  ;;  %v582_v12 = vpop.f32.mrb[13].mxu0 }
 0x114   : > { %v928_v8 = vsel %vm800_vm4, %v578_v58, %v864_v4  ;;  %v960_v9 = vsel %vm832_vm5, %v706_v59, %v896_v5  ;;  %v710_v13 = vpop.f32.mrb[13].mxu1  ;;  %v583_v16 = vadd.f32 %v1440_v40, %v582_v12  ;;  %v1224_v18 = vpop.f32.mrb[14].mxu0  ;;  %vm803_vm8 = vcmp.gt.f32.partialorder %v591_v10, 0.0 }
 0x115   : > { %992 = vst [vmem:[%s1450_s14 + $0x58] sm:$0xff] %v928_v8  ;;  %1024 = vst [vmem:[%s1450_s14 + $0x158] sm:$0xff] %v960_v9  ;;  %v926_v14 = vsel %vm798_vm6, %v570_v0, %v862_v6  ;;  %v958_v15 = vsel %vm830_vm7, %v698_v1, %v894_v7  ;;  %v711_v17 = vadd.f32 %v1440_v40, %v710_v13  ;;  %v1256_v19 = vpop.f32.mrb[14].mxu1  ;;  %v867_v20 = vmul.f32 0.2, %v591_v10  ;;  %v585_v28 = vpop.f32.mrb[15].mxu0 }
 0x116   : > { %990 = vst [vmem:[%s1450_s14 + $0x48] sm:$0xff] %v926_v14  ;;  %1022 = vst [vmem:[%s1450_s14 + $0x148] sm:$0xff] %v958_v15  ;;  %vm835_vm9 = vcmp.gt.f32.partialorder %v719_v11, 0.0  ;;  %v899_v21 = vmul.f32 0.2, %v719_v11  ;;  %vm801_vm10 = vcmp.gt.f32.partialorder %v583_v16, 0.0  ;;  %v594_v26 = vadd.f32 %v1224_v18, %v1440_v40 }
 0x117   : > { %v865_v22 = vmul.f32 0.2, %v583_v16  ;;  %vm833_vm11 = vcmp.gt.f32.partialorder %v711_v17, 0.0  ;;  %v897_v23 = vmul.f32 0.2, %v711_v17  ;;  %v931_v24 = vsel %vm803_vm8, %v591_v10, %v867_v20  ;;  %v713_v29 = vpop.f32.mrb[15].mxu1 }
 0x118   : > { %v963_v25 = vsel %vm835_vm9, %v719_v11, %v899_v21  ;;  %v722_v27 = vadd.f32 %v1256_v19, %v1440_v40  ;;  %995 = vst [vmem:[%s1450_s14 + $0x70] sm:$0xff] %v931_v24  ;;  %v586_v32 = vadd.f32 %v1440_v40, %v585_v28  ;;  %v714_v33 = vadd.f32 %v1440_v40, %v713_v29 }
 0x119   : > { %1027 = vst [vmem:[%s1450_s14 + $0x170] sm:$0xff] %v963_v25  ;;  %v929_v30 = vsel %vm801_vm10, %v583_v16, %v865_v22  ;;  %v961_v31 = vsel %vm833_vm11, %v711_v17, %v897_v23  ;;  %v1227_v34 = vpop.f32.mrb[16].mxu0  ;;  %v1259_v35 = vpop.f32.mrb[16].mxu1  ;;  %vm804_vm12 = vcmp.gt.f32.partialorder %v594_v26, 0.0  ;;  %v868_v36 = vmul.f32 0.2, %v594_v26 }
 0x11a   : > { %993 = vst [vmem:[%s1450_s14 + $0x60] sm:$0xff] %v929_v30  ;;  %1025 = vst [vmem:[%s1450_s14 + $0x160] sm:$0xff] %v961_v31  ;;  %vm836_vm13 = vcmp.gt.f32.partialorder %v722_v27, 0.0  ;;  %v900_v37 = vmul.f32 0.2, %v722_v27  ;;  %vm802_vm14 = vcmp.gt.f32.partialorder %v586_v32, 0.0  ;;  %v607_v43 = vadd.f32 %v1227_v34, %v1440_v40 }
 0x11b   : > { %v866_v38 = vmul.f32 0.2, %v586_v32  ;;  %vm834_vm15 = vcmp.gt.f32.partialorder %v714_v33, 0.0  ;;  %v898_v39 = vmul.f32 0.2, %v714_v33  ;;  %v932_v41 = vsel %vm804_vm12, %v594_v26, %v868_v36  ;;  %v598_v45 = vpop.f32.mrb[17].mxu0 }
 0x11c   : > { %v964_v42 = vsel %vm836_vm13, %v722_v27, %v900_v37  ;;  %v735_v44 = vadd.f32 %v1259_v35, %v1440_v40  ;;  %v726_v46 = vpop.f32.mrb[17].mxu1  ;;  %996 = vst [vmem:[%s1450_s14 + $0x78] sm:$0xff] %v932_v41  ;;  %v599_v49 = vadd.f32 %v1440_v40, %v598_v45  ;;  %v1228_v51 = vpop.f32.mrb[18].mxu0  ;;  %vm807_vm0 = vcmp.gt.f32.partialorder %v607_v43, 0.0 }
 0x11d   : > { %1028 = vst [vmem:[%s1450_s14 + $0x178] sm:$0xff] %v964_v42  ;;  %v930_v47 = vsel %vm802_vm14, %v586_v32, %v866_v38  ;;  %v962_v48 = vsel %vm834_vm15, %v714_v33, %v898_v39  ;;  %v727_v50 = vadd.f32 %v1440_v40, %v726_v46  ;;  %v1260_v52 = vpop.f32.mrb[18].mxu1  ;;  %v871_v53 = vmul.f32 0.2, %v607_v43  ;;  %v601_v61 = vpop.f32.mrb[19].mxu0 }
 0x11e   : > { %994 = vst [vmem:[%s1450_s14 + $0x68] sm:$0xff] %v930_v47  ;;  %1026 = vst [vmem:[%s1450_s14 + $0x168] sm:$0xff] %v962_v48  ;;  %vm839_vm1 = vcmp.gt.f32.partialorder %v735_v44, 0.0  ;;  %v903_v54 = vmul.f32 0.2, %v735_v44  ;;  %vm805_vm2 = vcmp.gt.f32.partialorder %v599_v49, 0.0  ;;  %v610_v59 = vadd.f32 %v1228_v51, %v1440_v40 }
 0x11f   : > { %v869_v55 = vmul.f32 0.2, %v599_v49  ;;  %vm837_vm3 = vcmp.gt.f32.partialorder %v727_v50, 0.0  ;;  %v901_v56 = vmul.f32 0.2, %v727_v50  ;;  %v935_v57 = vsel %vm807_vm0, %v607_v43, %v871_v53  ;;  %v729_v62 = vpop.f32.mrb[19].mxu1 }
 0x120   : > { %v967_v58 = vsel %vm839_vm1, %v735_v44, %v903_v54  ;;  %v738_v60 = vadd.f32 %v1260_v52, %v1440_v40  ;;  %999 = vst [vmem:[%s1450_s14 + $0x90] sm:$0xff] %v935_v57  ;;  %v602_v1 = vadd.f32 %v1440_v40, %v601_v61  ;;  %v730_v2 = vadd.f32 %v1440_v40, %v729_v62 }
 0x121   : > { %1031 = vst [vmem:[%s1450_s14 + $0x190] sm:$0xff] %v967_v58  ;;  %v933_v63 = vsel %vm805_vm2, %v599_v49, %v869_v55  ;;  %v965_v0 = vsel %vm837_vm3, %v727_v50, %v901_v56  ;;  %v1231_v3 = vpop.f32.mrb[20].mxu0  ;;  %v1263_v4 = vpop.f32.mrb[20].mxu1  ;;  %vm808_vm4 = vcmp.gt.f32.partialorder %v610_v59, 0.0  ;;  %v872_v5 = vmul.f32 0.2, %v610_v59 }
 0x122   : > { %997 = vst [vmem:[%s1450_s14 + $0x80] sm:$0xff] %v933_v63  ;;  %1029 = vst [vmem:[%s1450_s14 + $0x180] sm:$0xff] %v965_v0  ;;  %vm840_vm5 = vcmp.gt.f32.partialorder %v738_v60, 0.0  ;;  %v904_v6 = vmul.f32 0.2, %v738_v60  ;;  %vm806_vm6 = vcmp.gt.f32.partialorder %v602_v1, 0.0  ;;  %v623_v11 = vadd.f32 %v1231_v3, %v1440_v40 }
 0x123   : > { %v870_v7 = vmul.f32 0.2, %v602_v1  ;;  %vm838_vm7 = vcmp.gt.f32.partialorder %v730_v2, 0.0  ;;  %v902_v8 = vmul.f32 0.2, %v730_v2  ;;  %v936_v9 = vsel %vm808_vm4, %v610_v59, %v872_v5  ;;  %v614_v13 = vpop.f32.mrb[21].mxu0 }
 0x124   : > { %v968_v10 = vsel %vm840_vm5, %v738_v60, %v904_v6  ;;  %v751_v12 = vadd.f32 %v1263_v4, %v1440_v40  ;;  %v742_v14 = vpop.f32.mrb[21].mxu1  ;;  %1000 = vst [vmem:[%s1450_s14 + $0x98] sm:$0xff] %v936_v9  ;;  %v615_v17 = vadd.f32 %v1440_v40, %v614_v13  ;;  %v1232_v19 = vpop.f32.mrb[22].mxu0  ;;  %vm811_vm8 = vcmp.gt.f32.partialorder %v623_v11, 0.0 }
 0x125   : > { %1032 = vst [vmem:[%s1450_s14 + $0x198] sm:$0xff] %v968_v10  ;;  %v934_v15 = vsel %vm806_vm6, %v602_v1, %v870_v7  ;;  %v966_v16 = vsel %vm838_vm7, %v730_v2, %v902_v8  ;;  %v743_v18 = vadd.f32 %v1440_v40, %v742_v14  ;;  %v1264_v20 = vpop.f32.mrb[22].mxu1  ;;  %v875_v21 = vmul.f32 0.2, %v623_v11  ;;  %v617_v29 = vpop.f32.mrb[23].mxu0 }
 0x126   : > { %998 = vst [vmem:[%s1450_s14 + $0x88] sm:$0xff] %v934_v15  ;;  %1030 = vst [vmem:[%s1450_s14 + $0x188] sm:$0xff] %v966_v16  ;;  %vm843_vm9 = vcmp.gt.f32.partialorder %v751_v12, 0.0  ;;  %v907_v22 = vmul.f32 0.2, %v751_v12  ;;  %vm809_vm10 = vcmp.gt.f32.partialorder %v615_v17, 0.0  ;;  %v626_v27 = vadd.f32 %v1232_v19, %v1440_v40 }
 0x127   : > { %v873_v23 = vmul.f32 0.2, %v615_v17  ;;  %vm841_vm11 = vcmp.gt.f32.partialorder %v743_v18, 0.0  ;;  %v905_v24 = vmul.f32 0.2, %v743_v18  ;;  %v939_v25 = vsel %vm811_vm8, %v623_v11, %v875_v21  ;;  %v745_v30 = vpop.f32.mrb[23].mxu1 }
 0x128   : > { %v971_v26 = vsel %vm843_vm9, %v751_v12, %v907_v22  ;;  %v754_v28 = vadd.f32 %v1264_v20, %v1440_v40  ;;  %1003 = vst [vmem:[%s1450_s14 + $0xb0] sm:$0xff] %v939_v25  ;;  %v618_v33 = vadd.f32 %v1440_v40, %v617_v29  ;;  %v746_v34 = vadd.f32 %v1440_v40, %v745_v30 }
 0x129   : > { %1035 = vst [vmem:[%s1450_s14 + $0x1b0] sm:$0xff] %v971_v26  ;;  %v937_v31 = vsel %vm809_vm10, %v615_v17, %v873_v23  ;;  %v969_v32 = vsel %vm841_vm11, %v743_v18, %v905_v24  ;;  %v1235_v35 = vpop.f32.mrb[24].mxu0  ;;  %v1267_v36 = vpop.f32.mrb[24].mxu1  ;;  %vm812_vm12 = vcmp.gt.f32.partialorder %v626_v27, 0.0  ;;  %v876_v37 = vmul.f32 0.2, %v626_v27 }
 0x12a   : > { %1001 = vst [vmem:[%s1450_s14 + $0xa0] sm:$0xff] %v937_v31  ;;  %1033 = vst [vmem:[%s1450_s14 + $0x1a0] sm:$0xff] %v969_v32  ;;  %vm844_vm13 = vcmp.gt.f32.partialorder %v754_v28, 0.0  ;;  %v908_v38 = vmul.f32 0.2, %v754_v28  ;;  %vm810_vm14 = vcmp.gt.f32.partialorder %v618_v33, 0.0  ;;  %v639_v44 = vadd.f32 %v1235_v35, %v1440_v40 }
 0x12b   : > { %v874_v39 = vmul.f32 0.2, %v618_v33  ;;  %vm842_vm15 = vcmp.gt.f32.partialorder %v746_v34, 0.0  ;;  %v906_v41 = vmul.f32 0.2, %v746_v34  ;;  %v940_v42 = vsel %vm812_vm12, %v626_v27, %v876_v37  ;;  %v630_v46 = vpop.f32.mrb[25].mxu0 }
 0x12c   : > { %v972_v43 = vsel %vm844_vm13, %v754_v28, %v908_v38  ;;  %v767_v45 = vadd.f32 %v1267_v36, %v1440_v40  ;;  %v758_v47 = vpop.f32.mrb[25].mxu1  ;;  %1004 = vst [vmem:[%s1450_s14 + $0xb8] sm:$0xff] %v940_v42  ;;  %v631_v50 = vadd.f32 %v1440_v40, %v630_v46  ;;  %v1236_v52 = vpop.f32.mrb[26].mxu0  ;;  %vm815_vm0 = vcmp.gt.f32.partialorder %v639_v44, 0.0 }
 0x12d   : > { %1036 = vst [vmem:[%s1450_s14 + $0x1b8] sm:$0xff] %v972_v43  ;;  %v938_v48 = vsel %vm810_vm14, %v618_v33, %v874_v39  ;;  %v970_v49 = vsel %vm842_vm15, %v746_v34, %v906_v41  ;;  %v759_v51 = vadd.f32 %v1440_v40, %v758_v47  ;;  %v1268_v53 = vpop.f32.mrb[26].mxu1  ;;  %v879_v54 = vmul.f32 0.2, %v639_v44  ;;  %v633_v62 = vpop.f32.mrb[27].mxu0 }
 0x12e   : > { %1002 = vst [vmem:[%s1450_s14 + $0xa8] sm:$0xff] %v938_v48  ;;  %1034 = vst [vmem:[%s1450_s14 + $0x1a8] sm:$0xff] %v970_v49  ;;  %vm847_vm1 = vcmp.gt.f32.partialorder %v767_v45, 0.0  ;;  %v911_v55 = vmul.f32 0.2, %v767_v45  ;;  %vm813_vm2 = vcmp.gt.f32.partialorder %v631_v50, 0.0  ;;  %v642_v60 = vadd.f32 %v1236_v52, %v1440_v40 }
 0x12f   : > { %v877_v56 = vmul.f32 0.2, %v631_v50  ;;  %vm845_vm3 = vcmp.gt.f32.partialorder %v759_v51, 0.0  ;;  %v909_v57 = vmul.f32 0.2, %v759_v51  ;;  %v943_v58 = vsel %vm815_vm0, %v639_v44, %v879_v54  ;;  %v761_v63 = vpop.f32.mrb[27].mxu1 }
 0x130   : > { %v975_v59 = vsel %vm847_vm1, %v767_v45, %v911_v55  ;;  %v770_v61 = vadd.f32 %v1268_v53, %v1440_v40  ;;  %1007 = vst [vmem:[%s1450_s14 + $0xd0] sm:$0xff] %v943_v58  ;;  %v634_v2 = vadd.f32 %v1440_v40, %v633_v62  ;;  %v762_v3 = vadd.f32 %v1440_v40, %v761_v63 }
 0x131   : > { %1039 = vst [vmem:[%s1450_s14 + $0x1d0] sm:$0xff] %v975_v59  ;;  %v941_v0 = vsel %vm813_vm2, %v631_v50, %v877_v56  ;;  %v973_v1 = vsel %vm845_vm3, %v759_v51, %v909_v57  ;;  %v1239_v4 = vpop.f32.mrb[28].mxu0  ;;  %v1271_v5 = vpop.f32.mrb[28].mxu1  ;;  %vm816_vm4 = vcmp.gt.f32.partialorder %v642_v60, 0.0  ;;  %v880_v6 = vmul.f32 0.2, %v642_v60 }
 0x132   : > { %1005 = vst [vmem:[%s1450_s14 + $0xc0] sm:$0xff] %v941_v0  ;;  %1037 = vst [vmem:[%s1450_s14 + $0x1c0] sm:$0xff] %v973_v1  ;;  %vm848_vm5 = vcmp.gt.f32.partialorder %v770_v61, 0.0  ;;  %v912_v7 = vmul.f32 0.2, %v770_v61  ;;  %vm814_vm6 = vcmp.gt.f32.partialorder %v634_v2, 0.0  ;;  %v655_v12 = vadd.f32 %v1239_v4, %v1440_v40 }
 0x133   : > { %v878_v8 = vmul.f32 0.2, %v634_v2  ;;  %vm846_vm7 = vcmp.gt.f32.partialorder %v762_v3, 0.0  ;;  %v910_v9 = vmul.f32 0.2, %v762_v3  ;;  %v944_v10 = vsel %vm816_vm4, %v642_v60, %v880_v6  ;;  %v646_v14 = vpop.f32.mrb[29].mxu0 }
 0x134   : > { %v976_v11 = vsel %vm848_vm5, %v770_v61, %v912_v7  ;;  %v783_v13 = vadd.f32 %v1271_v5, %v1440_v40  ;;  %v774_v15 = vpop.f32.mrb[29].mxu1  ;;  %1008 = vst [vmem:[%s1450_s14 + $0xd8] sm:$0xff] %v944_v10  ;;  %v647_v18 = vadd.f32 %v1440_v40, %v646_v14  ;;  %v1240_v20 = vpop.f32.mrb[30].mxu0  ;;  %vm819_vm8 = vcmp.gt.f32.partialorder %v655_v12, 0.0 }
 0x135   : > { %1040 = vst [vmem:[%s1450_s14 + $0x1d8] sm:$0xff] %v976_v11  ;;  %v942_v16 = vsel %vm814_vm6, %v634_v2, %v878_v8  ;;  %v974_v17 = vsel %vm846_vm7, %v762_v3, %v910_v9  ;;  %v775_v19 = vadd.f32 %v1440_v40, %v774_v15  ;;  %v1272_v21 = vpop.f32.mrb[30].mxu1  ;;  %v883_v22 = vmul.f32 0.2, %v655_v12  ;;  %v649_v30 = vpop.f32.mrb[31].mxu0 }
 0x136   : > { %1006 = vst [vmem:[%s1450_s14 + $0xc8] sm:$0xff] %v942_v16  ;;  %1038 = vst [vmem:[%s1450_s14 + $0x1c8] sm:$0xff] %v974_v17  ;;  %vm851_vm9 = vcmp.gt.f32.partialorder %v783_v13, 0.0  ;;  %v915_v23 = vmul.f32 0.2, %v783_v13  ;;  %vm817_vm10 = vcmp.gt.f32.partialorder %v647_v18, 0.0  ;;  %v658_v28 = vadd.f32 %v1240_v20, %v1440_v40 }
 0x137   : > { %v881_v24 = vmul.f32 0.2, %v647_v18  ;;  %vm849_vm11 = vcmp.gt.f32.partialorder %v775_v19, 0.0  ;;  %v913_v25 = vmul.f32 0.2, %v775_v19  ;;  %v947_v26 = vsel %vm819_vm8, %v655_v12, %v883_v22  ;;  %v777_v31 = vpop.f32.mrb[31].mxu1 }
 0x138   : > { %v979_v27 = vsel %vm851_vm9, %v783_v13, %v915_v23  ;;  %v786_v29 = vadd.f32 %v1272_v21, %v1440_v40  ;;  %1011 = vst [vmem:[%s1450_s14 + $0xf0] sm:$0xff] %v947_v26  ;;  %v650_v34 = vadd.f32 %v1440_v40, %v649_v30  ;;  %v778_v35 = vadd.f32 %v1440_v40, %v777_v31 }
 0x139   : > { %1043 = vst [vmem:[%s1450_s14 + $0x1f0] sm:$0xff] %v979_v27  ;;  %v945_v32 = vsel %vm817_vm10, %v647_v18, %v881_v24  ;;  %v977_v33 = vsel %vm849_vm11, %v775_v19, %v913_v25  ;;  %vm820_vm12 = vcmp.gt.f32.partialorder %v658_v28, 0.0  ;;  %v884_v36 = vmul.f32 0.2, %v658_v28 }
 0x13a   : > { %1009 = vst [vmem:[%s1450_s14 + $0xe0] sm:$0xff] %v945_v32  ;;  %1041 = vst [vmem:[%s1450_s14 + $0x1e0] sm:$0xff] %v977_v33  ;;  %vm852_vm13 = vcmp.gt.f32.partialorder %v786_v29, 0.0  ;;  %v916_v37 = vmul.f32 0.2, %v786_v29  ;;  %vm818_vm14 = vcmp.gt.f32.partialorder %v650_v34, 0.0 }
 0x13b   : > { %v882_v38 = vmul.f32 0.2, %v650_v34  ;;  %vm850_vm15 = vcmp.gt.f32.partialorder %v778_v35, 0.0  ;;  %v914_v39 = vmul.f32 0.2, %v778_v35  ;;  %v948_v41 = vsel %vm820_vm12, %v658_v28, %v884_v36 }
 0x13c   : > { %v980_v42 = vsel %vm852_vm13, %v786_v29, %v916_v37  ;;  %1012 = vst [vmem:[%s1450_s14 + $0xf8] sm:$0xff] %v948_v41 }
 0x13d   : > { %1044 = vst [vmem:[%s1450_s14 + $0x1f8] sm:$0xff] %v980_v42  ;;  %v946_v43 = vsel %vm818_vm14, %v650_v34, %v882_v38  ;;  %v978_v44 = vsel %vm850_vm15, %v778_v35, %v914_v39 }
 0x13e   : > { %1010 = vst [vmem:[%s1450_s14 + $0xe8] sm:$0xff] %v946_v43  ;;  %1042 = vst [vmem:[%s1450_s14 + $0x1e8] sm:$0xff] %v978_v44 }
 0x13f PF: > { %s13_s12 = sadd.s32 1, %s1343_s12  }
 0x140   : > { %p10_p4 = scmp.ge.s32.totalorder %s13_s12, 6  }
 0x142   :  { %12 = sbr.rel (!%p10_p4) target bundleno = 1 (0x1), region = 62 }

// kernel: forward.7
= control target key start
LH: loop header
LB: loop body
LE: loop exit
PB: predicated region body
PF: predicated region fallthrough
CT: control target
= control target key end

     0   :  { %s1429_s12 = smov 0   ;;  %s2576_s0 = inlined_call_operand.vmem [shape: bf16[512,128], index: 0, kind: input, shape index: {}]   ;;  %s2577_s1 = inlined_call_operand.vmem [shape: bf16[128,128], index: 1, kind: input, shape index: {}]   ;;  %s2578_s2 = inlined_call_operand.vmem [shape: f32[8,128], index: 2, kind: input, shape index: {}]   ;;  %s2579_s3 = inlined_call_operand.vmem [shape: f32[512,128], index: 3, kind: output, shape index: {}]  }
   0x1 LB: > { %s1435_s13 = sadd.s32 4294967295, %s1406_s12   ;;  %p1179_p0 = scmp.ge.s32.totalorder %s1406_s12, 1  ;;  %s1406_s12 = sphi %s1429_s12, %s13_s12  }
   0x2   : > { %p133_p1 = scmp.lt.s32.totalorder %s1406_s12, 3 }
   0x4   : > { %p134_p2 = pnand %p1179_p0, %p133_p1 }
   0x5   : > { %s1180_s14 = sshll.u32 (!%p134_p2), %s1435_s13, 5  ;;  %p1182_p4 = scmp.ne.s32.totalorder (!%p134_p2), %s1435_s13, 0 }
   0x6   : > { %137 = sbr.rel (%p134_p2) target bundleno = 579 (0x243), region = 32  ;;  %p153_p3 = scmp.lt.s32.totalorder (!%p134_p2), %s1180_s14, 63 }
   0xd   : > { %s2609_s14 = smov (!%p153_p3, %s1180_s14), 63  ;;  %162 = sbr.rel (%p1182_p4) target bundleno = 20 (0x14), region = 36 }
   0xe   : > { %s1181_s15 = sshll.u32 %s2609_s14, 2  ;;  %v1408_v0 = vmov (!%p1182_p4), 0.0  }
   0xf   : > { %s1443_s18 = scalar_lea.vmem %s2576_s0, %s1181_s15  ;;  %163 = vst [vmem:[#allocation2] sm:$0xff] (!%p1182_p4), %v1408_v0  ;;  %164 = vst [vmem:[#allocation3] sm:$0xff] (!%p1182_p4), %v1408_v0 }
  0x14 PF: > { %v1372_v1 = vld [vmem:[%s2577_s1] sm:$0xff]   ;;  %v1373_v2 = vld [vmem:[%s2577_s1 + $0x8] sm:$0xff]   ;;  %v1374_v3 = vld [vmem:[%s2577_s1 + $0x10] sm:$0xff]   ;;  %s1207_s8 = sshll.u32 %s1435_s13, 8  ;;  %p1208_p5 = scmp.ne.s32.totalorder %s1435_s13, 1 }
  0x15   : > { %1299 = vmatprep.subr.bf16.mxu0 %v1372_v1  ;;  %1347 = vmatprep.subr.bf16.mxu1 %v1372_v1  ;;  %v1375_v4 = vld [vmem:[%s2577_s1 + $0x18] sm:$0xff]   ;;  %v1380_v5 = vld [vmem:[%s1443_s18] sm:$0xff]   ;;  %v1377_v7 = vld [vmem:[%s2577_s1 + $0x28] sm:$0xff]   ;;  %s1490_s11 = scalar_lea.vmem %s2579_s3, %s1207_s8  ;;  %vm677_vm0 = vcmask (!%p1208_p5), 1040384  }
  0x16   : > { %1300 = vmatpush3.bf16.msra.mxu0 %v1372_v1  ;;  %1355 = vmatpush3.bf16.msra.mxu1 %v1372_v1  ;;  %v1376_v6 = vld [vmem:[%s2577_s1 + $0x20] sm:$0xff]   ;;  %v1378_v9 = vld [vmem:[%s2577_s1 + $0x30] sm:$0xff]   ;;  %v1379_v10 = vld [vmem:[%s2577_s1 + $0x38] sm:$0xff]  }
  0x17   : > { %1301 = vmatprep.subr.bf16.mxu0 %v1373_v2  ;;  %1348 = vmatprep.subr.bf16.mxu1 %v1373_v2  ;;  %v1388_v8 = vld [vmem:[%s1443_s18 + $0x40] sm:$0xff]   ;;  %v1381_v11 = vld [vmem:[%s1443_s18 + $0x8] sm:$0xff]   ;;  %v1382_v13 = vld [vmem:[%s1443_s18 + $0x10] sm:$0xff]  }
  0x18   : > { %1315 = vmatprep.mubr.bf16.mxu0 %v1380_v5  ;;  %1331 = vmatprep.mubr.bf16.mxu1 %v1388_v8  ;;  %v1389_v12 = vld [vmem:[%s1443_s18 + $0x48] sm:$0xff]   ;;  %v1390_v14 = vld [vmem:[%s1443_s18 + $0x50] sm:$0xff]   ;;  %v1383_v15 = vld [vmem:[%s1443_s18 + $0x18] sm:$0xff]  }
  0x19   : > { %v1391_v16 = vld [vmem:[%s1443_s18 + $0x58] sm:$0xff]   ;;  %v1384_v17 = vld [vmem:[%s1443_s18 + $0x20] sm:$0xff]   ;;  %v1385_v19 = vld [vmem:[%s1443_s18 + $0x28] sm:$0xff]  }
  0x1a   : > { %1302 = vmatpush3.bf16.msra.mxu0 %v1373_v2  ;;  %1356 = vmatpush3.bf16.msra.mxu1 %v1373_v2  ;;  %v1392_v18 = vld [vmem:[%s1443_s18 + $0x60] sm:$0xff]   ;;  %v1393_v20 = vld [vmem:[%s1443_s18 + $0x68] sm:$0xff]   ;;  %v1386_v21 = vld [vmem:[%s1443_s18 + $0x30] sm:$0xff]  }
  0x1b   : > { %1303 = vmatprep.subr.bf16.mxu0 %v1374_v3  ;;  %1349 = vmatprep.subr.bf16.mxu1 %v1374_v3  ;;  %v1394_v22 = vld [vmem:[%s1443_s18 + $0x70] sm:$0xff]   ;;  %v1387_v23 = vld [vmem:[%s1443_s18 + $0x38] sm:$0xff]  }
  0x1c   : > { %v1395_v24 = vld [vmem:[%s1443_s18 + $0x78] sm:$0xff]  }
  0x1e   : > { %1304 = vmatpush3.bf16.msra.mxu0 %v1374_v3  ;;  %1357 = vmatpush3.bf16.msra.mxu1 %v1374_v3 }
  0x1f   : > { %1305 = vmatprep.subr.bf16.mxu0 %v1375_v4  ;;  %1350 = vmatprep.subr.bf16.mxu1 %v1375_v4 }
  0x22   : > { %1306 = vmatpush3.bf16.msra.mxu0 %v1375_v4  ;;  %1358 = vmatpush3.bf16.msra.mxu1 %v1375_v4 }
  0x23   : > { %1307 = vmatprep.subr.bf16.mxu0 %v1376_v6  ;;  %1351 = vmatprep.subr.bf16.mxu1 %v1376_v6 }
  0x26   : > { %1308 = vmatpush3.bf16.msra.mxu0 %v1376_v6  ;;  %1359 = vmatpush3.bf16.msra.mxu1 %v1376_v6 }
  0x27   : > { %1309 = vmatprep.subr.bf16.mxu0 %v1377_v7  ;;  %1352 = vmatprep.subr.bf16.mxu1 %v1377_v7 }
  0x2a   : > { %1310 = vmatpush3.bf16.msra.mxu0 %v1377_v7  ;;  %1360 = vmatpush3.bf16.msra.mxu1 %v1377_v7 }
  0x2b   : > { %1311 = vmatprep.subr.bf16.mxu0 %v1378_v9  ;;  %1353 = vmatprep.subr.bf16.mxu1 %v1378_v9 }
  0x2e   : > { %1312 = vmatpush3.bf16.msra.mxu0 %v1378_v9  ;;  %1361 = vmatpush3.bf16.msra.mxu1 %v1378_v9 }
  0x2f   : > { %1313 = vmatprep.subr.bf16.mxu0 %v1379_v10  ;;  %1354 = vmatprep.subr.bf16.mxu1 %v1379_v10 }
  0x32   : > { %1314 = vmatpush3.bf16.msra.mxu0 %v1379_v10  ;;  %1362 = vmatpush3.bf16.msra.mxu1 %v1379_v10 }
  0x35   : > { %1316 = vmatmul.mubr.bf16.vlgmr.msra.gmra.mrb[0].mxu0 %v1381_v11  ;;  %1332 = vmatmul.mubr.bf16.vlgmr.msra.gmra.mrb[0].mxu1 %v1389_v12 }
  0x36   : > { %1319 = vmatprep.mubr.bf16.mxu0 %v1382_v13  ;;  %1335 = vmatprep.mubr.bf16.mxu1 %v1390_v14 }
  0x3d   : > { %1320 = vmatmul.mubr.bf16.gmra.mrb[4].mxu0 %v1383_v15  ;;  %1336 = vmatmul.mubr.bf16.gmra.mrb[4].mxu1 %v1391_v16 }
  0x3e   : > { %1323 = vmatprep.mubr.bf16.mxu0 %v1384_v17  ;;  %1339 = vmatprep.mubr.bf16.mxu1 %v1392_v18 }
  0x45   : > { %1324 = vmatmul.mubr.bf16.gmra.mrb[8].mxu0 %v1385_v19  ;;  %1340 = vmatmul.mubr.bf16.gmra.mrb[8].mxu1 %v1393_v20 }
  0x46   : > { %1327 = vmatprep.mubr.bf16.mxu0 %v1386_v21  ;;  %1343 = vmatprep.mubr.bf16.mxu1 %v1394_v22 }
  0x4d   : > { %1328 = vmatmul.mubr.bf16.gmra.mrb[12].mxu0 %v1387_v23  ;;  %1344 = vmatmul.mubr.bf16.gmra.mrb[12].mxu1 %v1395_v24 }
 0x108   : > { %v1317_v25 = vpop.f32.mrb[0].mxu0  ;;  %v1492_v26 = vpop.f32.mrb[0].mxu1 }
 0x109   : > { %522 = vst [vmem:[%s1490_s11 + $0x10] sm:$0xff] %v1317_v25  ;;  %v391_v27 = vpop.f32.mrb[1].mxu0  ;;  %538 = vst [vmem:[%s1490_s11 + $0x90] sm:$0xff] %v1492_v26  ;;  %v1497_v28 = vpop.f32.mrb[1].mxu1  ;;  %v589_v36 = vmul.f32 %v1317_v25, %v1317_v25 }
 0x10a   : > { %520 = vst [vmem:[%s1490_s11] sm:$0xff] %v391_v27  ;;  %v1318_v29 = vpop.f32.mrb[2].mxu0  ;;  %536 = vst [vmem:[%s1490_s11 + $0x80] sm:$0xff] %v1497_v28  ;;  %v1502_v30 = vpop.f32.mrb[2].mxu1  ;;  %v587_v33 = vmul.f32 %v391_v27, %v391_v27 }
 0x10b   : > { %523 = vst [vmem:[%s1490_s11 + $0x18] sm:$0xff] %v1318_v29  ;;  %v394_v31 = vpop.f32.mrb[3].mxu0  ;;  %539 = vst [vmem:[%s1490_s11 + $0x98] sm:$0xff] %v1502_v30  ;;  %v1507_v32 = vpop.f32.mrb[3].mxu1  ;;  %v590_v39 = vmul.f32 %v1318_v29, %v1318_v29 }
 0x10c   : > { %521 = vst [vmem:[%s1490_s11 + $0x8] sm:$0xff] %v394_v31  ;;  %v553_v34 = vadd.f32 %v394_v31, %v391_v27  ;;  %v588_v35 = vmul.f32 %v394_v31, %v394_v31  ;;  %537 = vst [vmem:[%s1490_s11 + $0x88] sm:$0xff] %v1507_v32 }
 0x10e   : > { %v554_v37 = vadd.f32 %v1317_v25, %v553_v34  ;;  %v619_v38 = vadd.f32 %v588_v35, %v587_v33 }
 0x110   : > { %v620_v40 = vadd.f32 %v619_v38, %v589_v36  ;;  %v1321_v41 = vpop.f32.mrb[4].mxu0  ;;  %v555_v42 = vadd.f32 %v1318_v29, %v554_v37  ;;  %v1512_v43 = vpop.f32.mrb[4].mxu1 }
 0x111   : > { %526 = vst [vmem:[%s1490_s11 + $0x30] sm:$0xff] %v1321_v41  ;;  %v407_v44 = vpop.f32.mrb[5].mxu0  ;;  %542 = vst [vmem:[%s1490_s11 + $0xb0] sm:$0xff] %v1512_v43  ;;  %v1517_v45 = vpop.f32.mrb[5].mxu1  ;;  %v593_v56 = vmul.f32 %v1321_v41, %v1321_v41 }
 0x112   : > { %524 = vst [vmem:[%s1490_s11 + $0x20] sm:$0xff] %v407_v44  ;;  %v556_v46 = vadd.f32 %v555_v42, %v407_v44  ;;  %v591_v47 = vmul.f32 %v407_v44, %v407_v44  ;;  %v621_v48 = vadd.f32 %v620_v40, %v590_v39  ;;  %v1322_v49 = vpop.f32.mrb[6].mxu0  ;;  %540 = vst [vmem:[%s1490_s11 + $0xa0] sm:$0xff] %v1517_v45  ;;  %v1522_v50 = vpop.f32.mrb[6].mxu1 }
 0x113   : > { %527 = vst [vmem:[%s1490_s11 + $0x38] sm:$0xff] %v1322_v49  ;;  %v410_v51 = vpop.f32.mrb[7].mxu0  ;;  %543 = vst [vmem:[%s1490_s11 + $0xb8] sm:$0xff] %v1522_v50  ;;  %v1527_v52 = vpop.f32.mrb[7].mxu1  ;;  %v594_v59 = vmul.f32 %v1322_v49, %v1322_v49  ;;  %v603_v42 = vmul.f32 %v1497_v28, %v1497_v28 }
 0x114   : > { %v622_v53 = vadd.f32 %v621_v48, %v591_v47  ;;  %525 = vst [vmem:[%s1490_s11 + $0x28] sm:$0xff] %v410_v51  ;;  %v557_v54 = vadd.f32 %v556_v46, %v410_v51  ;;  %v592_v55 = vmul.f32 %v410_v51, %v410_v51  ;;  %541 = vst [vmem:[%s1490_s11 + $0xa8] sm:$0xff] %v1527_v52 }
 0x115   : > { %v605_v51 = vmul.f32 %v1492_v26, %v1492_v26 }
 0x116   : > { %v558_v57 = vadd.f32 %v1321_v41, %v557_v54  ;;  %v623_v58 = vadd.f32 %v622_v53, %v592_v55  ;;  %v606_v55 = vmul.f32 %v1502_v30, %v1502_v30 }
 0x118   : > { %v624_v60 = vadd.f32 %v623_v58, %v593_v56  ;;  %v1325_v61 = vpop.f32.mrb[8].mxu0  ;;  %v559_v62 = vadd.f32 %v1322_v49, %v558_v57  ;;  %v1532_v63 = vpop.f32.mrb[8].mxu1  ;;  %v604_v49 = vmul.f32 %v1507_v32, %v1507_v32 }
 0x119   : > { %530 = vst [vmem:[%s1490_s11 + $0x50] sm:$0xff] %v1325_v61  ;;  %v423_v0 = vpop.f32.mrb[9].mxu0  ;;  %546 = vst [vmem:[%s1490_s11 + $0xd0] sm:$0xff] %v1532_v63  ;;  %v1537_v1 = vpop.f32.mrb[9].mxu1  ;;  %v597_v12 = vmul.f32 %v1325_v61, %v1325_v61 }
 0x11a   : > { %528 = vst [vmem:[%s1490_s11 + $0x40] sm:$0xff] %v423_v0  ;;  %v560_v2 = vadd.f32 %v559_v62, %v423_v0  ;;  %v595_v3 = vmul.f32 %v423_v0, %v423_v0  ;;  %v625_v4 = vadd.f32 %v624_v60, %v594_v59  ;;  %v1326_v5 = vpop.f32.mrb[10].mxu0  ;;  %544 = vst [vmem:[%s1490_s11 + $0xc0] sm:$0xff] %v1537_v1  ;;  %v1542_v6 = vpop.f32.mrb[10].mxu1 }
 0x11b   : > { %531 = vst [vmem:[%s1490_s11 + $0x58] sm:$0xff] %v1326_v5  ;;  %v426_v7 = vpop.f32.mrb[11].mxu0  ;;  %547 = vst [vmem:[%s1490_s11 + $0xd8] sm:$0xff] %v1542_v6  ;;  %v1547_v8 = vpop.f32.mrb[11].mxu1  ;;  %v598_v15 = vmul.f32 %v1326_v5, %v1326_v5 }
 0x11c   : > { %v626_v9 = vadd.f32 %v625_v4, %v595_v3  ;;  %529 = vst [vmem:[%s1490_s11 + $0x48] sm:$0xff] %v426_v7  ;;  %v561_v10 = vadd.f32 %v560_v2, %v426_v7  ;;  %v596_v11 = vmul.f32 %v426_v7, %v426_v7  ;;  %545 = vst [vmem:[%s1490_s11 + $0xc8] sm:$0xff] %v1547_v8 }
 0x11e   : > { %v562_v13 = vadd.f32 %v1325_v61, %v561_v10  ;;  %v627_v14 = vadd.f32 %v626_v9, %v596_v11  ;;  %v608_v61 = vmul.f32 %v1527_v52, %v1527_v52  ;;  %v612_v9 = vmul.f32 %v1547_v8, %v1547_v8 }
 0x120   : > { %v628_v16 = vadd.f32 %v627_v14, %v597_v12  ;;  %v1329_v17 = vpop.f32.mrb[12].mxu0  ;;  %v563_v18 = vadd.f32 %v1326_v5, %v562_v13  ;;  %v1552_v19 = vpop.f32.mrb[12].mxu1 }
 0x121   : > { %534 = vst [vmem:[%s1490_s11 + $0x70] sm:$0xff] %v1329_v17  ;;  %v439_v20 = vpop.f32.mrb[13].mxu0  ;;  %550 = vst [vmem:[%s1490_s11 + $0xf0] sm:$0xff] %v1552_v19  ;;  %v503_v21 = vpop.f32.mrb[13].mxu1  ;;  %v601_v36 = vmul.f32 %v1329_v17, %v1329_v17 }
 0x122   : > { %532 = vst [vmem:[%s1490_s11 + $0x60] sm:$0xff] %v439_v20  ;;  %v564_v22 = vadd.f32 %v563_v18, %v439_v20  ;;  %v599_v23 = vmul.f32 %v439_v20, %v439_v20  ;;  %v629_v24 = vadd.f32 %v628_v16, %v598_v15  ;;  %v1330_v25 = vpop.f32.mrb[14].mxu0  ;;  %548 = vst [vmem:[%s1490_s11 + $0xe0] sm:$0xff] %v503_v21  ;;  %v1559_v27 = vpop.f32.mrb[14].mxu1 }
 0x123   : > { %535 = vst [vmem:[%s1490_s11 + $0x78] sm:$0xff] %v1330_v25  ;;  %v442_v29 = vpop.f32.mrb[15].mxu0  ;;  %551 = vst [vmem:[%s1490_s11 + $0xf8] sm:$0xff] %v1559_v27  ;;  %v506_v31 = vpop.f32.mrb[15].mxu1  ;;  %v602_v39 = vmul.f32 %v1330_v25, %v1330_v25 }
 0x124   : > { %v630_v33 = vadd.f32 %v629_v24, %v599_v23  ;;  %533 = vst [vmem:[%s1490_s11 + $0x68] sm:$0xff] %v442_v29  ;;  %v565_v34 = vadd.f32 %v564_v22, %v442_v29  ;;  %v600_v35 = vmul.f32 %v442_v29, %v442_v29  ;;  %549 = vst [vmem:[%s1490_s11 + $0xe8] sm:$0xff] %v506_v31 }
 0x125   : > { %v616_v18 = vmul.f32 %v506_v31, %v506_v31  ;;  %v618_v23 = vmul.f32 %v1559_v27, %v1559_v27 }
 0x126   : > { %v566_v37 = vadd.f32 %v1329_v17, %v565_v34  ;;  %v631_v38 = vadd.f32 %v630_v33, %v600_v35 }
 0x128   : > { %v632_v40 = vadd.f32 %v631_v38, %v601_v36  ;;  %v567_v41 = vadd.f32 %v1330_v25, %v566_v37 }
 0x12a   : > { %v568_v44 = vadd.f32 %v567_v41, %v1497_v28  ;;  %v633_v46 = vadd.f32 %v632_v40, %v602_v39  ;;  %v607_v28 = vmul.f32 %v1517_v45, %v1517_v45 }
 0x12c   : > { %v634_v47 = vadd.f32 %v633_v46, %v603_v42  ;;  %v569_v48 = vadd.f32 %v568_v44, %v1507_v32 }
 0x12e   : > { %v570_v53 = vadd.f32 %v1492_v26, %v569_v48  ;;  %v635_v54 = vadd.f32 %v634_v47, %v604_v49  ;;  %v609_v26 = vmul.f32 %v1512_v43, %v1512_v43 }
 0x130   : > { %v636_v56 = vadd.f32 %v635_v54, %v605_v51  ;;  %v571_v57 = vadd.f32 %v1502_v30, %v570_v53  ;;  %v610_v30 = vmul.f32 %v1522_v50, %v1522_v50 }
 0x132   : > { %v572_v58 = vadd.f32 %v571_v57, %v1517_v45  ;;  %v637_v59 = vadd.f32 %v636_v56, %v606_v55  ;;  %v611_v45 = vmul.f32 %v1537_v1, %v1537_v1 }
 0x134   : > { %v638_v60 = vadd.f32 %v637_v59, %v607_v28  ;;  %v573_v32 = vadd.f32 %v572_v58, %v1527_v52  ;;  %v721_v58 = vlaneseq (!%p1208_p5) }
 0x136   : > { %v574_v62 = vadd.f32 %v1512_v43, %v573_v32  ;;  %v639_v0 = vadd.f32 %v638_v60, %v608_v61  ;;  %v613_v43 = vmul.f32 %v1532_v63, %v1532_v63  ;;  %v722_v32 = vshrl.u32 (!%p1208_p5), %v721_v58, 7 }
 0x138   : > { %v640_v2 = vadd.f32 %v639_v0, %v609_v26  ;;  %v575_v3 = vadd.f32 %v1522_v50, %v574_v62  ;;  %v614_v50 = vmul.f32 %v1542_v6, %v1542_v6  ;;  %v723_v62 = vsub.s32 (!%p1208_p5), 0, %v722_v32  ;;  %v675_v0 = vld [vmem:[%s2578_s2 + $0x1] sm:$0x1] (!%p1208_p5) }
 0x13a   : > { %v576_v4 = vadd.f32 %v575_v3, %v1537_v1  ;;  %v641_v5 = vadd.f32 %v640_v2, %v610_v30  ;;  %v615_v1 = vmul.f32 %v503_v21, %v503_v21  ;;  %v689_v30 = vld [vmem:[%s2579_s3] sm:$0xff] (!%p1208_p5)  ;;  %v690_v3 = vld [vmem:[%s2579_s3 + $0x8] sm:$0xff] (!%p1208_p5) }
 0x13c   : > { %v642_v7 = vadd.f32 %v641_v5, %v611_v45  ;;  %v577_v52 = vadd.f32 %v576_v4, %v1547_v8  ;;  %v617_v8 = vmul.f32 %v1552_v19, %v1552_v19  ;;  %v691_v45 = vld [vmem:[%s2579_s3 + $0x10] sm:$0xff] (!%p1208_p5)  ;;  %v692_v4 = vld [vmem:[%s2579_s3 + $0x18] sm:$0xff] (!%p1208_p5)  ;;  %v693_v5 = vld [vmem:[%s2579_s3 + $0x20] sm:$0xff] (!%p1208_p5) }
 0x13e   : > { %v578_v10 = vadd.f32 %v1532_v63, %v577_v52  ;;  %v643_v11 = vadd.f32 %v642_v7, %v612_v9  ;;  %v552_v63 = vld [vmem:[#allocation2] sm:$0xff]  ;;  %v694_v52 = vld [vmem:[%s2579_s3 + $0x28] sm:$0xff] (!%p1208_p5)  ;;  %v695_v9 = vld [vmem:[%s2579_s3 + $0x30] sm:$0xff] (!%p1208_p5) }
 0x140   : > { %v644_v12 = vadd.f32 %v643_v11, %v613_v43  ;;  %v579_v13 = vadd.f32 %v1542_v6, %v578_v10  ;;  %v586_v6 = vld [vmem:[#allocation3] sm:$0xff]  ;;  %v696_v43 = vld [vmem:[%s2579_s3 + $0x38] sm:$0xff] (!%p1208_p5)  ;;  %v697_v10 = vld [vmem:[%s2579_s3 + $0x40] sm:$0xff] (!%p1208_p5) }
 0x141   : > { %v698_v11 = vld [vmem:[%s2579_s3 + $0x48] sm:$0xff] (!%p1208_p5) }
 0x142   : > { %v580_v14 = vadd.f32 %v579_v13, %v503_v21  ;;  %v645_v15 = vadd.f32 %v644_v12, %v614_v50  ;;  %v699_v50 = vld [vmem:[%s2579_s3 + $0x50] sm:$0xff] (!%p1208_p5)  ;;  %v700_v12 = vld [vmem:[%s2579_s3 + $0x58] sm:$0xff] (!%p1208_p5)  ;;  %v701_v13 = vld [vmem:[%s2579_s3 + $0x60] sm:$0xff] (!%p1208_p5) }
 0x144   : > { %v646_v16 = vadd.f32 %v645_v15, %v615_v1  ;;  %v581_v17 = vadd.f32 %v580_v14, %v506_v31  ;;  %v702_v1 = vld [vmem:[%s2579_s3 + $0x68] sm:$0xff] (!%p1208_p5)  ;;  %v703_v15 = vld [vmem:[%s2579_s3 + $0x70] sm:$0xff] (!%p1208_p5) }
 0x146   : > { %v582_v20 = vadd.f32 %v1552_v19, %v581_v17  ;;  %v647_v22 = vadd.f32 %v646_v16, %v616_v18  ;;  %v674_v19 = vld [vmem:[%s2578_s2] sm:$0x1] (!%p1208_p5)  ;;  %v704_v16 = vld [vmem:[%s2579_s3 + $0x78] sm:$0xff] (!%p1208_p5) }
 0x147   : > { %v676_v31 = vmul.f32 (!%p1208_p5), %v674_v19, %v674_v19  ;;  %v705_v17 = vld [vmem:[%s2579_s3 + $0x80] sm:$0xff] (!%p1208_p5) }
 0x148   : > { %v583_v24 = vadd.f32 %v1559_v27, %v582_v20  ;;  %v648_v25 = vadd.f32 %v647_v22, %v617_v8  ;;  %655 = sbr.rel (%p1208_p5) target bundleno = 579 (0x243), region = 40  ;;  %v706_v8 = vld [vmem:[%s2579_s3 + $0x88] sm:$0xff] (!%p1208_p5)  ;;  %v707_v20 = vld [vmem:[%s2579_s3 + $0x90] sm:$0xff] (!%p1208_p5)  ;;  %v708_v22 = vld [vmem:[%s2579_s3 + $0x98] sm:$0xff] (!%p1208_p5) }
 0x149   : > { %v678_v34 = vsel (!%p1208_p5), %vm677_vm0, %v676_v31, 0.0 }
 0x14a   : > { %v584_v29 = vadd.f32 %v583_v24, %v552_v63  ;;  %v649_v21 = vadd.f32 %v648_v25, %v618_v23  ;;  %679 = vadd.xlane.f32.xlu0 (!%p1208_p5), %v678_v34 }
 0x14c   : > { %585 = vst [vmem:[#allocation2] sm:$0xff] %v584_v29  ;;  %v650_v33 = vadd.f32 %v649_v21, %v586_v6  ;;  %v709_v6 = vld [vmem:[%s2579_s3 + $0xa0] sm:$0xff] (!%p1208_p5)  ;;  %v710_v29 = vld [vmem:[%s2579_s3 + $0xa8] sm:$0xff] (!%p1208_p5)  ;;  %v711_v21 = vld [vmem:[%s2579_s3 + $0xb0] sm:$0xff] (!%p1208_p5) }
 0x14e   : > { %651 = vst [vmem:[#allocation3] sm:$0xff] %v650_v33 }
 0x153   : > { %v656_v35 = vld [vmem:[#allocation2] sm:$0xff] }
 0x154   : > { %v657_v27 = vrot.slane %v656_v35, 4 }
 0x155   : > { %v663_v36 = vld [vmem:[#allocation3] sm:$0xff] }
 0x156   : > { %v658_v37 = vadd.f32 %v657_v27, %v656_v35  ;;  %v664_v38 = vrot.slane %v663_v36, 4  ;;  %v712_v35 = vld [vmem:[%s2579_s3 + $0xb8] sm:$0xff]  ;;  %v713_v27 = vld [vmem:[%s2579_s3 + $0xc0] sm:$0xff] }
 0x158   : > { %v659_v39 = vrot.slane %v658_v37, 2  ;;  %v665_v40 = vadd.f32 %v664_v38, %v663_v36  ;;  %v714_v36 = vld [vmem:[%s2579_s3 + $0xc8] sm:$0xff] }
 0x15a   : > { %v660_v41 = vadd.f32 %v659_v39, %v658_v37  ;;  %v666_v42 = vrot.slane %v665_v40, 2 }
 0x15c   : > { %v661_v44 = vrot.slane %v660_v41, 1  ;;  %v667_v46 = vadd.f32 %v666_v42, %v665_v40  ;;  %v716_v42 = vld [vmem:[%s2579_s3 + $0xd8] sm:$0xff] }
 0x15e   : > { %v662_v47 = vadd.f32 %v661_v44, %v660_v41  ;;  %v668_v48 = vrot.slane %v667_v46, 1  ;;  %v715_v41 = vld [vmem:[%s2579_s3 + $0xd0] sm:$0xff]  ;;  %v717_v44 = vld [vmem:[%s2579_s3 + $0xe0] sm:$0xff] }
 0x160   : > { %v669_v49 = vadd.f32 %v668_v48, %v667_v46  ;;  %v670_v51 = vmul.f32 0.001953125, %v662_v47 }
 0x162   : > { %v671_v53 = vmul.f32 0.001953125, %v669_v49  ;;  %v672_v54 = vmul.f32 %v670_v51, %v670_v51 }
 0x164   : > { %v673_v55 = vsub.f32 %v671_v53, %v672_v54  ;;  %v719_v53 = vld [vmem:[%s2579_s3 + $0xf0] sm:$0xff]  ;;  %v720_v54 = vld [vmem:[%s2579_s3 + $0xf8] sm:$0xff] }
 0x166   : > { %v684_v28 = vadd.f32 1e-05, %v673_v55 }
 0x1d7   : > { %v680_v56 = vpop.xlane.xlu0 %679 }
 0x1d8   : > { %v681_v57 = vadd.f32 1e-12, %v680_v56 }
 0x1da   : > { %1396 = vrsqrt.f32 %v681_v57 }
 0x1db   : > { %1398 = vrsqrt.f32 %v684_v28 }
 0x1e4   : > { %v1397_v59 = vpop.eup %1396 }
 0x1e5   : > { %v683_v60 = vmul.f32 %v1397_v59, %v674_v19  ;;  %v1399_v61 = vpop.eup %1398 }
 0x1e7   : > { %v686_v26 = vmul.f32 %v1399_v61, %v683_v60 }
 0x1e9   : > { %v687_v2 = vmul.f32 %v686_v26, %v670_v51  ;;  %v1630_v7 = vrot.slane %v686_v26, %v723_v62  ;;  %v718_v51 = vld [vmem:[%s2579_s3 + $0xe8] sm:$0xff] }
 0x1eb   : > { %v688_v14 = vsub.f32 %v675_v0, %v687_v2  ;;  %v725_v18 = vmul.f32 %v1630_v7, %v689_v30  ;;  %v726_v63 = vmul.f32 %v1630_v7, %v690_v3  ;;  %v727_v23 = vmul.f32 %v1630_v7, %v691_v45 }
 0x1ec   : > { %v728_v24 = vmul.f32 %v1630_v7, %v692_v4  ;;  %v729_v25 = vmul.f32 %v1630_v7, %v693_v5  ;;  %v730_v33 = vmul.f32 %v1630_v7, %v694_v52  ;;  %v731_v19 = vmul.f32 %v1630_v7, %v695_v9 }
 0x1ed   : > { %v732_v31 = vmul.f32 %v1630_v7, %v696_v43  ;;  %v733_v34 = vmul.f32 %v1630_v7, %v697_v10  ;;  %v734_v37 = vmul.f32 %v1630_v7, %v698_v11  ;;  %v735_v38 = vmul.f32 %v1630_v7, %v699_v50 }
 0x1ee   : > { %v736_v39 = vmul.f32 %v1630_v7, %v700_v12  ;;  %v737_v40 = vmul.f32 %v1630_v7, %v701_v13  ;;  %v738_v46 = vmul.f32 %v1630_v7, %v702_v1  ;;  %v739_v47 = vmul.f32 %v1630_v7, %v703_v15 }
 0x1ef   : > { %v740_v48 = vmul.f32 %v1630_v7, %v704_v16  ;;  %v741_v49 = vmul.f32 %v1630_v7, %v705_v17  ;;  %v742_v55 = vmul.f32 %v1630_v7, %v706_v8  ;;  %v743_v56 = vmul.f32 %v1630_v7, %v707_v20 }
 0x1f0   : > { %v744_v57 = vmul.f32 %v1630_v7, %v708_v22  ;;  %v1733_v28 = vrot.slane %v688_v14, %v723_v62  ;;  %v745_v58 = vmul.f32 %v1630_v7, %v709_v6  ;;  %v746_v59 = vmul.f32 %v1630_v7, %v710_v29 }
 0x1f1   : > { %v747_v60 = vmul.f32 %v1630_v7, %v711_v21  ;;  %v748_v32 = vmul.f32 %v1630_v7, %v712_v35  ;;  %v749_v61 = vmul.f32 %v1630_v7, %v713_v27  ;;  %v750_v26 = vmul.f32 %v1630_v7, %v714_v36 }
 0x1f2   : > { %v751_v0 = vmul.f32 %v1630_v7, %v715_v41  ;;  %v752_v30 = vmul.f32 %v1630_v7, %v716_v42  ;;  %v753_v2 = vmul.f32 %v1630_v7, %v717_v44  ;;  %v754_v62 = vmul.f32 %v1630_v7, %v718_v51 }
 0x1f3   : > { %v755_v3 = vmul.f32 %v1630_v7, %v719_v53  ;;  %v756_v45 = vmul.f32 %v1630_v7, %v720_v54  ;;  %v1748_v4 = vadd.f32 %v1733_v28, %v725_v18  ;;  %v1751_v5 = vadd.f32 %v1733_v28, %v726_v63 }
 0x1f4   : > { %v1754_v52 = vadd.f32 %v1733_v28, %v727_v23  ;;  %v1757_v9 = vadd.f32 %v1733_v28, %v728_v24  ;;  %v1760_v43 = vadd.f32 %v1733_v28, %v729_v25  ;;  %v1763_v10 = vadd.f32 %v1733_v28, %v730_v33 }
 0x1f5   : > { %v1766_v11 = vadd.f32 %v1733_v28, %v731_v19  ;;  %v1769_v50 = vadd.f32 %v1733_v28, %v732_v31  ;;  %v1772_v12 = vadd.f32 %v1733_v28, %v733_v34  ;;  %v1775_v13 = vadd.f32 %v1733_v28, %v734_v37 }
 0x1f6   : > { %v1778_v1 = vadd.f32 %v1733_v28, %v735_v38  ;;  %v1781_v14 = vadd.f32 %v1733_v28, %v736_v39  ;;  %v1784_v15 = vadd.f32 %v1733_v28, %v737_v40  ;;  %v1787_v16 = vadd.f32 %v1733_v28, %v738_v46 }
 0x1f7   : > { %v1790_v17 = vadd.f32 %v1733_v28, %v739_v47  ;;  %v1793_v18 = vadd.f32 %v1733_v28, %v740_v48  ;;  %v1796_v8 = vadd.f32 %v1733_v28, %v741_v49  ;;  %v1799_v20 = vadd.f32 %v1733_v28, %v742_v55 }
 0x1f8   : > { %v1802_v22 = vadd.f32 %v1733_v28, %v743_v56  ;;  %v1805_v63 = vadd.f32 %v1733_v28, %v744_v57  ;;  %v1808_v23 = vadd.f32 %v1733_v28, %v745_v58  ;;  %v1811_v24 = vadd.f32 %v1733_v28, %v746_v59 }
 0x1f9   : > { %v1814_v25 = vadd.f32 %v1733_v28, %v747_v60  ;;  %v1817_v6 = vadd.f32 %v1733_v28, %v748_v32  ;;  %v1820_v29 = vadd.f32 %v1733_v28, %v749_v61  ;;  %v1823_v21 = vadd.f32 %v1733_v28, %v750_v26 }
 0x1fa   : > { %v1826_v33 = vadd.f32 %v1733_v28, %v751_v0  ;;  %v1829_v19 = vadd.f32 %v1733_v28, %v752_v30  ;;  %v1832_v31 = vadd.f32 %v1733_v28, %v753_v2  ;;  %v1835_v34 = vadd.f32 %v1733_v28, %v754_v62 }
 0x1fb   : > { %vm793_vm1 = vcmp.gt.f32.partialorder %v1748_v4, 0.0  ;;  %vm794_vm2 = vcmp.gt.f32.partialorder %v1751_v5, 0.0  ;;  %vm795_vm3 = vcmp.gt.f32.partialorder %v1754_v52, 0.0  ;;  %vm796_vm4 = vcmp.gt.f32.partialorder %v1757_v9, 0.0 }
 0x1fc   : > { %vm797_vm5 = vcmp.gt.f32.partialorder %v1760_v43, 0.0  ;;  %vm798_vm6 = vcmp.gt.f32.partialorder %v1763_v10, 0.0  ;;  %vm799_vm7 = vcmp.gt.f32.partialorder %v1766_v11, 0.0  ;;  %vm800_vm8 = vcmp.gt.f32.partialorder %v1769_v50, 0.0 }
 0x1fd   : > { %vm801_vm9 = vcmp.gt.f32.partialorder %v1772_v12, 0.0  ;;  %v1848_v35 = vadd.f32 %v1733_v28, %v755_v3  ;;  %v825_v27 = vmul.f32 0.2, %v1748_v4  ;;  %v826_v36 = vmul.f32 0.2, %v1751_v5 }
 0x1fe   : > { %v827_v37 = vmul.f32 0.2, %v1754_v52  ;;  %v1858_v38 = vadd.f32 %v1733_v28, %v756_v45  ;;  %vm808_vm0 = vcmp.gt.f32.partialorder %v1793_v18, 0.0  ;;  %vm809_vm11 = vcmp.gt.f32.partialorder %v1796_v8, 0.0 }
 0x1ff   : > { %v828_v39 = vmul.f32 0.2, %v1757_v9  ;;  %v829_v40 = vmul.f32 0.2, %v1760_v43  ;;  %v830_v41 = vmul.f32 0.2, %v1763_v10  ;;  %v857_v47 = vsel %vm793_vm1, %v1748_v4, %v825_v27 }
 0x200   : > { %vm814_vm15 = vcmp.gt.f32.partialorder %v1811_v24, 0.0  ;;  %v831_v42 = vmul.f32 0.2, %v1766_v11  ;;  %v832_v44 = vmul.f32 0.2, %v1769_v50  ;;  %vm815_vm12 = vcmp.gt.f32.partialorder %v1814_v25, 0.0  ;;  %889 = vst [vmem:[%s2579_s3] sm:$0xff] %v857_v47 }
 0x201   : > { %v833_v46 = vmul.f32 0.2, %v1772_v12  ;;  %v834_v48 = vmul.f32 0.2, %v1775_v13  ;;  %v835_v49 = vmul.f32 0.2, %v1778_v1  ;;  %v858_v53 = vsel %vm794_vm2, %v1751_v5, %v826_v36 }
 0x202   : > { %v836_v51 = vmul.f32 0.2, %v1781_v14  ;;  %vm819_vm1 = vcmp.gt.f32.partialorder %v1826_v33, 0.0  ;;  %vm820_vm13 = vcmp.gt.f32.partialorder %v1829_v19, 0.0  ;;  %vm822_vm14 = vcmp.gt.f32.partialorder %v1835_v34, 0.0  ;;  %890 = vst [vmem:[%s2579_s3 + $0x8] sm:$0xff] %v858_v53 }
 0x203   : > { %v837_v54 = vmul.f32 0.2, %v1784_v15  ;;  %v838_v55 = vmul.f32 0.2, %v1787_v16  ;;  %v839_v56 = vmul.f32 0.2, %v1790_v17  ;;  %v859_v57 = vsel %vm795_vm3, %v1754_v52, %v827_v37 }
 0x204   : > { %vm823_vm2 = vcmp.gt.f32.partialorder %v1848_v35, 0.0  ;;  %vm824_vm10 = vcmp.gt.f32.partialorder %v1858_v38, 0.0  ;;  %v840_v58 = vmul.f32 0.2, %v1793_v18  ;;  %v841_v59 = vmul.f32 0.2, %v1796_v8 }
 0x205   : > { %v842_v60 = vmul.f32 0.2, %v1799_v20  ;;  %v860_v32 = vsel %vm796_vm4, %v1757_v9, %v828_v39  ;;  %891 = vst [vmem:[%s2579_s3 + $0x10] sm:$0xff] %v859_v57  ;;  %v843_v61 = vmul.f32 0.2, %v1802_v22  ;;  %v861_v30 = vsel %vm797_vm5, %v1760_v43, %v829_v40  ;;  %v1216_v47 = vld [vmem:[%s2579_s3 + $0x138] sm:$0xff] }
 0x206   : > { %v844_v26 = vmul.f32 0.2, %v1805_v63  ;;  %v845_v0 = vmul.f32 0.2, %v1808_v23  ;;  %892 = vst [vmem:[%s2579_s3 + $0x18] sm:$0xff] %v860_v32  ;;  %v862_v45 = vsel %vm798_vm6, %v1763_v10, %v830_v41  ;;  %893 = vst [vmem:[%s2579_s3 + $0x20] sm:$0xff] %v861_v30  ;;  %v863_v9 = vsel %vm799_vm7, %v1766_v11, %v831_v42 }
 0x207   : > { %v846_v2 = vmul.f32 0.2, %v1811_v24  ;;  %v847_v62 = vmul.f32 0.2, %v1814_v25  ;;  %v848_v3 = vmul.f32 0.2, %v1817_v6  ;;  %v864_v36 = vsel %vm800_vm8, %v1769_v50, %v832_v44 }
 0x208   : > { %v849_v4 = vmul.f32 0.2, %v1820_v29  ;;  %v850_v5 = vmul.f32 0.2, %v1823_v21  ;;  %v851_v52 = vmul.f32 0.2, %v1826_v33  ;;  %v865_v39 = vsel %vm801_vm9, %v1772_v12, %v833_v46 }
 0x209   : > { %894 = vst [vmem:[%s2579_s3 + $0x28] sm:$0xff] %v862_v45  ;;  %v852_v43 = vmul.f32 0.2, %v1829_v19  ;;  %v853_v10 = vmul.f32 0.2, %v1832_v31  ;;  %895 = vst [vmem:[%s2579_s3 + $0x30] sm:$0xff] %v863_v9 }
 0x20a   : > { %v854_v27 = vmul.f32 0.2, %v1835_v34  ;;  %v855_v11 = vmul.f32 0.2, %v1848_v35  ;;  %v856_v37 = vmul.f32 0.2, %v1858_v38 }
 0x20b   : > { %vm2580_vm3 = vcmp.gt.f32.partialorder %v1775_v13, 0.0  ;;  %896 = vst [vmem:[%s2579_s3 + $0x38] sm:$0xff] %v864_v36  ;;  %vm2581_vm4 = vcmp.gt.f32.partialorder %v1778_v1, 0.0  ;;  %vm2582_vm5 = vcmp.gt.f32.partialorder %v1781_v14, 0.0  ;;  %vm2583_vm6 = vcmp.gt.f32.partialorder %v1784_v15, 0.0  ;;  %897 = vst [vmem:[%s2579_s3 + $0x40] sm:$0xff] %v865_v39 }
 0x20c   : > { %v866_v40 = vsel %vm2580_vm3, %v1775_v13, %v834_v48  ;;  %v867_v50 = vsel %vm2581_vm4, %v1778_v1, %v835_v49  ;;  %v868_v41 = vsel %vm2582_vm5, %v1781_v14, %v836_v51  ;;  %v869_v12 = vsel %vm2583_vm6, %v1784_v15, %v837_v54  ;;  %v1215_v46 = vld [vmem:[%s2579_s3 + $0x130] sm:$0xff]  ;;  %v1217_v48 = vld [vmem:[%s2579_s3 + $0x140] sm:$0xff]  ;;  %v1218_v49 = vld [vmem:[%s2579_s3 + $0x148] sm:$0xff] }
 0x20d   : > { %vm2584_vm7 = vcmp.gt.f32.partialorder %v1787_v16, 0.0  ;;  %898 = vst [vmem:[%s2579_s3 + $0x48] sm:$0xff] %v866_v40  ;;  %vm2585_vm8 = vcmp.gt.f32.partialorder %v1790_v17, 0.0  ;;  %v872_v14 = vsel %vm808_vm0, %v1793_v18, %v840_v58  ;;  %v873_v15 = vsel %vm809_vm11, %v1796_v8, %v841_v59  ;;  %899 = vst [vmem:[%s2579_s3 + $0x50] sm:$0xff] %v867_v50  ;;  %v1219_v51 = vld [vmem:[%s2579_s3 + $0x150] sm:$0xff]  ;;  %v1220_v53 = vld [vmem:[%s2579_s3 + $0x158] sm:$0xff] }
 0x20e   : > { %v870_v13 = vsel %vm2584_vm7, %v1787_v16, %v838_v55  ;;  %v871_v1 = vsel %vm2585_vm8, %v1790_v17, %v839_v56  ;;  %vm2586_vm9 = vcmp.gt.f32.partialorder %v1799_v20, 0.0  ;;  %900 = vst [vmem:[%s2579_s3 + $0x58] sm:$0xff] %v868_v41  ;;  %901 = vst [vmem:[%s2579_s3 + $0x60] sm:$0xff] %v869_v12  ;;  %vm2587_vm11 = vcmp.gt.f32.partialorder %v1802_v22, 0.0  ;;  %v1221_v54 = vld [vmem:[%s2579_s3 + $0x160] sm:$0xff]  ;;  %v1222_v55 = vld [vmem:[%s2579_s3 + $0x168] sm:$0xff] }
 0x20f   : > { %v874_v16 = vsel %vm2586_vm9, %v1799_v20, %v842_v60  ;;  %902 = vst [vmem:[%s2579_s3 + $0x68] sm:$0xff] %v870_v13  ;;  %v875_v17 = vsel %vm2587_vm11, %v1802_v22, %v843_v61  ;;  %vm2588_vm0 = vcmp.gt.f32.partialorder %v1805_v63, 0.0  ;;  %vm2589_vm3 = vcmp.gt.f32.partialorder %v1808_v23, 0.0  ;;  %903 = vst [vmem:[%s2579_s3 + $0x70] sm:$0xff] %v871_v1  ;;  %v1223_v56 = vld [vmem:[%s2579_s3 + $0x170] sm:$0xff]  ;;  %v1224_v57 = vld [vmem:[%s2579_s3 + $0x178] sm:$0xff] }
 0x210   : > { %v876_v18 = vsel %vm2588_vm0, %v1805_v63, %v844_v26  ;;  %v877_v8 = vsel %vm2589_vm3, %v1808_v23, %v845_v0  ;;  %v878_v20 = vsel %vm814_vm15, %v1811_v24, %v846_v2  ;;  %904 = vst [vmem:[%s2579_s3 + $0x78] sm:$0xff] %v872_v14  ;;  %905 = vst [vmem:[%s2579_s3 + $0x80] sm:$0xff] %v873_v15  ;;  %vm2590_vm15 = vcmp.gt.f32.partialorder %v1817_v6, 0.0  ;;  %v1225_v58 = vld [vmem:[%s2579_s3 + $0x180] sm:$0xff]  ;;  %v1226_v59 = vld [vmem:[%s2579_s3 + $0x188] sm:$0xff] }
 0x211   : > { %906 = vst [vmem:[%s2579_s3 + $0x88] sm:$0xff] %v874_v16  ;;  %v879_v22 = vsel %vm815_vm12, %v1814_v25, %v847_v62  ;;  %v880_v63 = vsel %vm2590_vm15, %v1817_v6, %v848_v3  ;;  %vm2591_vm4 = vcmp.gt.f32.partialorder %v1820_v29, 0.0  ;;  %vm2592_vm5 = vcmp.gt.f32.partialorder %v1823_v21, 0.0  ;;  %907 = vst [vmem:[%s2579_s3 + $0x90] sm:$0xff] %v875_v17  ;;  %v1227_v60 = vld [vmem:[%s2579_s3 + $0x190] sm:$0xff]  ;;  %v1228_v32 = vld [vmem:[%s2579_s3 + $0x198] sm:$0xff] }
 0x212   : > { %v881_v23 = vsel %vm2591_vm4, %v1820_v29, %v849_v4  ;;  %v882_v24 = vsel %vm2592_vm5, %v1823_v21, %v850_v5  ;;  %908 = vst [vmem:[%s2579_s3 + $0x98] sm:$0xff] %v876_v18  ;;  %909 = vst [vmem:[%s2579_s3 + $0xa0] sm:$0xff] %v877_v8  ;;  %v883_v25 = vsel %vm819_vm1, %v1826_v33, %v851_v52  ;;  %vm2593_vm12 = vcmp.gt.f32.partialorder %v1832_v31, 0.0  ;;  %v1209_v33 = vld [vmem:[%s2579_s3 + $0x100] sm:$0xff]  ;;  %v1230_v62 = vld [vmem:[%s2579_s3 + $0x1a8] sm:$0xff] }
 0x213   : > { %910 = vst [vmem:[%s2579_s3 + $0xa8] sm:$0xff] %v878_v20  ;;  %v884_v6 = vsel %vm820_vm13, %v1829_v19, %v852_v43  ;;  %v885_v29 = vsel %vm2593_vm12, %v1832_v31, %v853_v10  ;;  %v886_v21 = vsel %vm822_vm14, %v1835_v34, %v854_v27  ;;  %911 = vst [vmem:[%s2579_s3 + $0xb0] sm:$0xff] %v879_v22  ;;  %v1210_v19 = vld [vmem:[%s2579_s3 + $0x108] sm:$0xff]  ;;  %v1211_v31 = vld [vmem:[%s2579_s3 + $0x110] sm:$0xff] }
 0x214   : > { %912 = vst [vmem:[%s2579_s3 + $0xb8] sm:$0xff] %v880_v63  ;;  %913 = vst [vmem:[%s2579_s3 + $0xc0] sm:$0xff] %v881_v23  ;;  %v1212_v34 = vld [vmem:[%s2579_s3 + $0x118] sm:$0xff]  ;;  %v887_v42 = vsel %vm823_vm2, %v1848_v35, %v855_v11  ;;  %v888_v44 = vsel %vm824_vm10, %v1858_v38, %v856_v37  ;;  %v1213_v35 = vld [vmem:[%s2579_s3 + $0x120] sm:$0xff]  ;;  %v954_v61 = vmul.f32 %v1209_v33, %v1630_v7 }
 0x215   : > { %914 = vst [vmem:[%s2579_s3 + $0xc8] sm:$0xff] %v882_v24  ;;  %915 = vst [vmem:[%s2579_s3 + $0xd0] sm:$0xff] %v883_v25  ;;  %v1214_v38 = vld [vmem:[%s2579_s3 + $0x128] sm:$0xff]  ;;  %v955_v26 = vmul.f32 %v1210_v19, %v1630_v7  ;;  %v956_v0 = vmul.f32 %v1211_v31, %v1630_v7  ;;  %v957_v30 = vmul.f32 %v1212_v34, %v1630_v7  ;;  %v1229_v2 = vld [vmem:[%s2579_s3 + $0x1a0] sm:$0xff] }
 0x216   : > { %916 = vst [vmem:[%s2579_s3 + $0xd8] sm:$0xff] %v884_v6  ;;  %917 = vst [vmem:[%s2579_s3 + $0xe0] sm:$0xff] %v885_v29  ;;  %v1231_v3 = vld [vmem:[%s2579_s3 + $0x1b0] sm:$0xff]  ;;  %v958_v45 = vmul.f32 %v1213_v35, %v1630_v7  ;;  %v959_v4 = vmul.f32 %v1214_v38, %v1630_v7  ;;  %v960_v5 = vmul.f32 %v1215_v46, %v1630_v7  ;;  %v1232_v9 = vld [vmem:[%s2579_s3 + $0x1b8] sm:$0xff] }
 0x217   : > { %918 = vst [vmem:[%s2579_s3 + $0xe8] sm:$0xff] %v886_v21  ;;  %919 = vst [vmem:[%s2579_s3 + $0xf0] sm:$0xff] %v887_v42  ;;  %v961_v52 = vmul.f32 %v1216_v47, %v1630_v7  ;;  %v1233_v43 = vld [vmem:[%s2579_s3 + $0x1c0] sm:$0xff]  ;;  %v1234_v10 = vld [vmem:[%s2579_s3 + $0x1c8] sm:$0xff]  ;;  %v962_v27 = vmul.f32 %v1217_v48, %v1630_v7  ;;  %v963_v36 = vmul.f32 %v1218_v49, %v1630_v7 }
 0x218   : > { %920 = vst [vmem:[%s2579_s3 + $0xf8] sm:$0xff] %v888_v44  ;;  %v964_v11 = vmul.f32 %v1219_v51, %v1630_v7  ;;  %v965_v37 = vmul.f32 %v1220_v53, %v1630_v7  ;;  %v1235_v39 = vld [vmem:[%s2579_s3 + $0x1d0] sm:$0xff]  ;;  %v1236_v40 = vld [vmem:[%s2579_s3 + $0x1d8] sm:$0xff]  ;;  %v1237_v50 = vld [vmem:[%s2579_s3 + $0x1e0] sm:$0xff]  ;;  %v966_v41 = vmul.f32 %v1221_v54, %v1630_v7  ;;  %v967_v12 = vmul.f32 %v1222_v55, %v1630_v7 }
 0x219   : > { %v968_v13 = vmul.f32 %v1223_v56, %v1630_v7  ;;  %v969_v1 = vmul.f32 %v1224_v57, %v1630_v7  ;;  %v1238_v14 = vld [vmem:[%s2579_s3 + $0x1e8] sm:$0xff]  ;;  %v1239_v15 = vld [vmem:[%s2579_s3 + $0x1f0] sm:$0xff]  ;;  %v1240_v16 = vld [vmem:[%s2579_s3 + $0x1f8] sm:$0xff]  ;;  %v970_v17 = vmul.f32 %v1225_v58, %v1630_v7  ;;  %v971_v18 = vmul.f32 %v1226_v59, %v1630_v7 }
 0x21a   : > { %v972_v8 = vmul.f32 %v1227_v60, %v1630_v7  ;;  %v973_v20 = vmul.f32 %v1228_v32, %v1630_v7  ;;  %v974_v22 = vmul.f32 %v1229_v2, %v1630_v7  ;;  %v975_v63 = vmul.f32 %v1230_v62, %v1630_v7 }
 0x21b   : > { %v976_v23 = vmul.f32 %v1231_v3, %v1630_v7  ;;  %v977_v24 = vmul.f32 %v1232_v9, %v1630_v7  ;;  %v978_v25 = vmul.f32 %v1233_v43, %v1630_v7  ;;  %v979_v6 = vmul.f32 %v1234_v10, %v1630_v7 }
 0x21c   : > { %v980_v29 = vmul.f32 %v1235_v39, %v1630_v7  ;;  %v981_v21 = vmul.f32 %v1236_v40, %v1630_v7  ;;  %v982_v33 = vmul.f32 %v1237_v50, %v1630_v7  ;;  %v983_v19 = vmul.f32 %v1238_v14, %v1630_v7 }
 0x21d   : > { %v984_v31 = vmul.f32 %v1239_v15, %v1630_v7  ;;  %v985_v34 = vmul.f32 %v1240_v16, %v1630_v7  ;;  %v986_v42 = vadd.f32 %v954_v61, %v1733_v28  ;;  %v2229_v44 = vadd.f32 %v955_v26, %v1733_v28 }
 0x21e   : > { %v2232_v35 = vadd.f32 %v956_v0, %v1733_v28  ;;  %v2235_v38 = vadd.f32 %v957_v30, %v1733_v28  ;;  %v2238_v46 = vadd.f32 %v958_v45, %v1733_v28  ;;  %v2241_v47 = vadd.f32 %v959_v4, %v1733_v28 }
 0x21f   : > { %v2244_v48 = vadd.f32 %v960_v5, %v1733_v28  ;;  %v2247_v7 = vadd.f32 %v961_v52, %v1733_v28  ;;  %v2250_v49 = vadd.f32 %v962_v27, %v1733_v28  ;;  %v2253_v51 = vadd.f32 %v963_v36, %v1733_v28 }
 0x220   : > { %v2256_v53 = vadd.f32 %v964_v11, %v1733_v28  ;;  %v2259_v54 = vadd.f32 %v965_v37, %v1733_v28  ;;  %v2262_v55 = vadd.f32 %v966_v41, %v1733_v28  ;;  %v2265_v56 = vadd.f32 %v967_v12, %v1733_v28 }
 0x221   : > { %v2268_v57 = vadd.f32 %v968_v13, %v1733_v28  ;;  %v2271_v58 = vadd.f32 %v969_v1, %v1733_v28  ;;  %v2274_v59 = vadd.f32 %v970_v17, %v1733_v28  ;;  %v2277_v60 = vadd.f32 %v971_v18, %v1733_v28 }
 0x222   : > { %v2280_v32 = vadd.f32 %v972_v8, %v1733_v28  ;;  %v2283_v61 = vadd.f32 %v973_v20, %v1733_v28  ;;  %v2286_v26 = vadd.f32 %v974_v22, %v1733_v28  ;;  %v2289_v0 = vadd.f32 %v975_v63, %v1733_v28 }
 0x223   : > { %v2292_v30 = vadd.f32 %v976_v23, %v1733_v28  ;;  %v2295_v2 = vadd.f32 %v977_v24, %v1733_v28  ;;  %v2298_v62 = vadd.f32 %v978_v25, %v1733_v28  ;;  %v2301_v3 = vadd.f32 %v979_v6, %v1733_v28 }
 0x224   : > { %v2304_v45 = vadd.f32 %v980_v29, %v1733_v28  ;;  %v2307_v4 = vadd.f32 %v981_v21, %v1733_v28  ;;  %v2310_v5 = vadd.f32 %v982_v33, %v1733_v28  ;;  %v2313_v52 = vadd.f32 %v983_v19, %v1733_v28 }
 0x225   : > { %v2316_v9 = vadd.f32 %v984_v31, %v1733_v28  ;;  %vm1018_vm10 = vcmp.gt.f32.partialorder %v986_v42, 0.0  ;;  %vm1019_vm13 = vcmp.gt.f32.partialorder %v2229_v44, 0.0  ;;  %vm1020_vm14 = vcmp.gt.f32.partialorder %v2232_v35, 0.0 }
 0x226   : > { %vm1021_vm1 = vcmp.gt.f32.partialorder %v2235_v38, 0.0  ;;  %vm1022_vm2 = vcmp.gt.f32.partialorder %v2238_v46, 0.0  ;;  %vm1023_vm6 = vcmp.gt.f32.partialorder %v2241_v47, 0.0  ;;  %vm1024_vm7 = vcmp.gt.f32.partialorder %v2244_v48, 0.0 }
 0x227   : > { %vm1025_vm8 = vcmp.gt.f32.partialorder %v2247_v7, 0.0  ;;  %vm1026_vm9 = vcmp.gt.f32.partialorder %v2250_v49, 0.0  ;;  %v1050_v43 = vmul.f32 0.2, %v986_v42  ;;  %v1051_v10 = vmul.f32 0.2, %v2229_v44 }
 0x228   : > { %v2332_v27 = vadd.f32 %v985_v34, %v1733_v28  ;;  %vm1032_vm5 = vcmp.gt.f32.partialorder %v2268_v57, 0.0  ;;  %v1052_v36 = vmul.f32 0.2, %v2232_v35  ;;  %v1053_v11 = vmul.f32 0.2, %v2235_v38 }
 0x229   : > { %v1054_v37 = vmul.f32 0.2, %v2238_v46  ;;  %vm1037_vm0 = vcmp.gt.f32.partialorder %v2283_v61, 0.0  ;;  %vm1038_vm4 = vcmp.gt.f32.partialorder %v2286_v26, 0.0  ;;  %v1055_v28 = vmul.f32 0.2, %v2241_v47 }
 0x22a   : > { %v1056_v39 = vmul.f32 0.2, %v2244_v48  ;;  %v1057_v40 = vmul.f32 0.2, %v2247_v7  ;;  %v1082_v50 = vsel %vm1018_vm10, %v986_v42, %v1050_v43  ;;  %vm1039_vm11 = vcmp.gt.f32.partialorder %v2289_v0, 0.0 }
 0x22b   : > { %v1058_v41 = vmul.f32 0.2, %v2250_v49  ;;  %v1059_v12 = vmul.f32 0.2, %v2253_v51  ;;  %v1060_v13 = vmul.f32 0.2, %v2256_v53  ;;  %v1083_v1 = vsel %vm1019_vm13, %v2229_v44, %v1051_v10 }
 0x22c   : > { %1241 = vst [vmem:[%s2579_s3 + $0x100] sm:$0xff] %v1082_v50  ;;  %vm1043_vm10 = vcmp.gt.f32.partialorder %v2301_v3, 0.0  ;;  %vm1044_vm15 = vcmp.gt.f32.partialorder %v2304_v45, 0.0  ;;  %v1061_v14 = vmul.f32 0.2, %v2259_v54  ;;  %v1084_v17 = vsel %vm1020_vm14, %v2232_v35, %v1052_v36  ;;  %1242 = vst [vmem:[%s2579_s3 + $0x108] sm:$0xff] %v1083_v1 }
 0x22d   : > { %v1062_v15 = vmul.f32 0.2, %v2262_v55  ;;  %v1063_v16 = vmul.f32 0.2, %v2265_v56  ;;  %vm1047_vm13 = vcmp.gt.f32.partialorder %v2313_v52, 0.0  ;;  %vm1048_vm3 = vcmp.gt.f32.partialorder %v2316_v9, 0.0 }
 0x22e   : > { %vm1049_vm12 = vcmp.gt.f32.partialorder %v2332_v27, 0.0  ;;  %v1064_v18 = vmul.f32 0.2, %v2268_v57  ;;  %v1065_v8 = vmul.f32 0.2, %v2271_v58  ;;  %v1085_v22 = vsel %vm1021_vm1, %v2235_v38, %v1053_v11  ;;  %1243 = vst [vmem:[%s2579_s3 + $0x110] sm:$0xff] %v1084_v17 }
 0x22f   : > { %v1066_v20 = vmul.f32 0.2, %v2274_v59  ;;  %v1067_v63 = vmul.f32 0.2, %v2277_v60  ;;  %v1068_v23 = vmul.f32 0.2, %v2280_v32  ;;  %v1086_v25 = vsel %vm1022_vm2, %v2238_v46, %v1054_v37 }
 0x230   : > { %v1069_v24 = vmul.f32 0.2, %v2283_v61  ;;  %1244 = vst [vmem:[%s2579_s3 + $0x118] sm:$0xff] %v1085_v22  ;;  %v1070_v6 = vmul.f32 0.2, %v2286_v26  ;;  %v1087_v33 = vsel %vm1023_vm6, %v2241_v47, %v1055_v28  ;;  %1245 = vst [vmem:[%s2579_s3 + $0x120] sm:$0xff] %v1086_v25  ;;  %v1088_v42 = vsel %vm1024_vm7, %v2244_v48, %v1056_v39 }
 0x231   : > { %v1071_v29 = vmul.f32 0.2, %v2289_v0  ;;  %v1072_v21 = vmul.f32 0.2, %v2292_v30  ;;  %v1073_v19 = vmul.f32 0.2, %v2295_v2  ;;  %v1089_v46 = vsel %vm1025_vm8, %v2247_v7, %v1057_v40 }
 0x232   : > { %v1074_v31 = vmul.f32 0.2, %v2298_v62  ;;  %v1075_v34 = vmul.f32 0.2, %v2301_v3  ;;  %1246 = vst [vmem:[%s2579_s3 + $0x128] sm:$0xff] %v1087_v33  ;;  %1247 = vst [vmem:[%s2579_s3 + $0x130] sm:$0xff] %v1088_v42  ;;  %v1090_v10 = vsel %vm1026_vm9, %v2250_v49, %v1058_v41 }
 0x233   : > { %v1076_v44 = vmul.f32 0.2, %v2304_v45  ;;  %v1077_v35 = vmul.f32 0.2, %v2307_v4  ;;  %v1078_v38 = vmul.f32 0.2, %v2310_v5 }
 0x234   : > { %v1079_v47 = vmul.f32 0.2, %v2313_v52  ;;  %v1080_v48 = vmul.f32 0.2, %v2316_v9  ;;  %v1081_v43 = vmul.f32 0.2, %v2332_v27 }
 0x235   : > { %1248 = vst [vmem:[%s2579_s3 + $0x138] sm:$0xff] %v1089_v46  ;;  %vm2594_vm14 = vcmp.gt.f32.partialorder %v2253_v51, 0.0  ;;  %vm2595_vm1 = vcmp.gt.f32.partialorder %v2256_v53, 0.0  ;;  %vm2596_vm2 = vcmp.gt.f32.partialorder %v2259_v54, 0.0  ;;  %vm2597_vm6 = vcmp.gt.f32.partialorder %v2262_v55, 0.0  ;;  %1249 = vst [vmem:[%s2579_s3 + $0x140] sm:$0xff] %v1090_v10 }
 0x236   : > { %v1091_v7 = vsel %vm2594_vm14, %v2253_v51, %v1059_v12  ;;  %v1092_v36 = vsel %vm2595_vm1, %v2256_v53, %v1060_v13  ;;  %v1093_v11 = vsel %vm2596_vm2, %v2259_v54, %v1061_v14  ;;  %v1094_v49 = vsel %vm2597_vm6, %v2262_v55, %v1062_v15 }
 0x237   : > { %vm2598_vm7 = vcmp.gt.f32.partialorder %v2265_v56, 0.0  ;;  %v1096_v53 = vsel %vm1032_vm5, %v2268_v57, %v1064_v18  ;;  %vm2599_vm8 = vcmp.gt.f32.partialorder %v2271_v58, 0.0  ;;  %vm2600_vm9 = vcmp.gt.f32.partialorder %v2274_v59, 0.0  ;;  %1250 = vst [vmem:[%s2579_s3 + $0x148] sm:$0xff] %v1091_v7  ;;  %1251 = vst [vmem:[%s2579_s3 + $0x150] sm:$0xff] %v1092_v36 }
 0x238   : > { %v1095_v51 = vsel %vm2598_vm7, %v2265_v56, %v1063_v16  ;;  %v1097_v54 = vsel %vm2599_vm8, %v2271_v58, %v1065_v8  ;;  %v1098_v55 = vsel %vm2600_vm9, %v2274_v59, %v1066_v20  ;;  %1252 = vst [vmem:[%s2579_s3 + $0x158] sm:$0xff] %v1093_v11  ;;  %1253 = vst [vmem:[%s2579_s3 + $0x160] sm:$0xff] %v1094_v49  ;;  %vm2601_vm5 = vcmp.gt.f32.partialorder %v2277_v60, 0.0 }
 0x239   : > { %v1099_v56 = vsel %vm2601_vm5, %v2277_v60, %v1067_v63  ;;  %vm2602_vm14 = vcmp.gt.f32.partialorder %v2280_v32, 0.0  ;;  %v1101_v58 = vsel %vm1037_vm0, %v2283_v61, %v1069_v24  ;;  %v1102_v59 = vsel %vm1038_vm4, %v2286_v26, %v1070_v6  ;;  %1254 = vst [vmem:[%s2579_s3 + $0x168] sm:$0xff] %v1095_v51  ;;  %1255 = vst [vmem:[%s2579_s3 + $0x170] sm:$0xff] %v1096_v53 }
 0x23a   : > { %v1100_v57 = vsel %vm2602_vm14, %v2280_v32, %v1068_v23  ;;  %1256 = vst [vmem:[%s2579_s3 + $0x178] sm:$0xff] %v1097_v54  ;;  %1257 = vst [vmem:[%s2579_s3 + $0x180] sm:$0xff] %v1098_v55  ;;  %v1103_v60 = vsel %vm1039_vm11, %v2289_v0, %v1071_v29  ;;  %vm2603_vm0 = vcmp.gt.f32.partialorder %v2292_v30, 0.0  ;;  %vm2604_vm4 = vcmp.gt.f32.partialorder %v2295_v2, 0.0 }
 0x23b   : > { %v1104_v32 = vsel %vm2603_vm0, %v2292_v30, %v1072_v21  ;;  %v1105_v61 = vsel %vm2604_vm4, %v2295_v2, %v1073_v19  ;;  %vm2605_vm1 = vcmp.gt.f32.partialorder %v2298_v62, 0.0  ;;  %1258 = vst [vmem:[%s2579_s3 + $0x188] sm:$0xff] %v1099_v56  ;;  %1259 = vst [vmem:[%s2579_s3 + $0x190] sm:$0xff] %v1100_v57  ;;  %v1107_v0 = vsel %vm1043_vm10, %v2301_v3, %v1075_v34 }
 0x23c   : > { %v1106_v26 = vsel %vm2605_vm1, %v2298_v62, %v1074_v31  ;;  %1260 = vst [vmem:[%s2579_s3 + $0x198] sm:$0xff] %v1101_v58  ;;  %1261 = vst [vmem:[%s2579_s3 + $0x1a0] sm:$0xff] %v1102_v59  ;;  %v1108_v30 = vsel %vm1044_vm15, %v2304_v45, %v1076_v44  ;;  %vm2606_vm11 = vcmp.gt.f32.partialorder %v2307_v4, 0.0  ;;  %vm2607_vm2 = vcmp.gt.f32.partialorder %v2310_v5, 0.0 }
 0x23d   : > { %v1109_v2 = vsel %vm2606_vm11, %v2307_v4, %v1077_v35  ;;  %v1110_v62 = vsel %vm2607_vm2, %v2310_v5, %v1078_v38  ;;  %1262 = vst [vmem:[%s2579_s3 + $0x1a8] sm:$0xff] %v1103_v60  ;;  %1263 = vst [vmem:[%s2579_s3 + $0x1b0] sm:$0xff] %v1104_v32  ;;  %v1111_v3 = vsel %vm1047_vm13, %v2313_v52, %v1079_v47 }
 0x23e   : > { %1264 = vst [vmem:[%s2579_s3 + $0x1b8] sm:$0xff] %v1105_v61  ;;  %1265 = vst [vmem:[%s2579_s3 + $0x1c0] sm:$0xff] %v1106_v26  ;;  %v1112_v45 = vsel %vm1048_vm3, %v2316_v9, %v1080_v48  ;;  %v1113_v4 = vsel %vm1049_vm12, %v2332_v27, %v1081_v43 }
 0x23f   : > { %1266 = vst [vmem:[%s2579_s3 + $0x1c8] sm:$0xff] %v1107_v0  ;;  %1267 = vst [vmem:[%s2579_s3 + $0x1d0] sm:$0xff] %v1108_v30 }
 0x240   : > { %1268 = vst [vmem:[%s2579_s3 + $0x1d8] sm:$0xff] %v1109_v2  ;;  %1269 = vst [vmem:[%s2579_s3 + $0x1e0] sm:$0xff] %v1110_v62 }
 0x241   : > { %1270 = vst [vmem:[%s2579_s3 + $0x1e8] sm:$0xff] %v1111_v3  ;;  %1271 = vst [vmem:[%s2579_s3 + $0x1f0] sm:$0xff] %v1112_v45 }
 0x242   : > { %1272 = vst [vmem:[%s2579_s3 + $0x1f8] sm:$0xff] %v1113_v4 }
 0x243 PF: > { %s13_s12 = sadd.s32 1, %s1406_s12  }
 0x244   : > { %p10_p6 = scmp.ge.s32.totalorder %s13_s12, 4  }
 0x246   :  { %12 = sbr.rel (!%p10_p6) target bundleno = 1 (0x1), region = 68 }

// kernel: forward.8
= control target key start
LH: loop header
LB: loop body
LE: loop exit
PB: predicated region body
PF: predicated region fallthrough
CT: control target
= control target key end

     0   :  { %vm436_vm0 = vcmask 1040384   ;;  %s1015_s1 = inlined_call_operand.vmem [shape: bf16[256,128], index: 1, kind: input, shape index: {}]   ;;  %s1016_s0 = inlined_call_operand.vmem [shape: bf16[128,256], index: 0, kind: input, shape index: {}]   ;;  %s1017_s2 = inlined_call_operand.vmem [shape: f32[8,128], index: 2, kind: input, shape index: {}]   ;;  %s1018_s3 = inlined_call_operand.vmem [shape: f32[128,128], index: 3, kind: output, shape index: {}]  }
   0x1   :  { %v684_v0 = vld [vmem:[%s1015_s1 + $0x40] sm:$0xff]   ;;  %v686_v2 = vld [vmem:[%s1015_s1 + $0x48] sm:$0xff]   ;;  %v688_v4 = vld [vmem:[%s1015_s1 + $0x50] sm:$0xff]  }
   0x2   :  { %v685_v1 = vld [vmem:[%s1015_s1] sm:$0xff]   ;;  %604 = vmatprep.subr.bf16.mxu0 %v684_v0  ;;  %668 = vmatprep.subr.bf16.mxu1 %v684_v0  ;;  %v687_v3 = vld [vmem:[%s1015_s1 + $0x8] sm:$0xff]   ;;  %v689_v5 = vld [vmem:[%s1015_s1 + $0x10] sm:$0xff]  }
   0x3   :  { %605 = vmatpush3.bf16.msra.mxu0 %v685_v1  ;;  %676 = vmatpush3.bf16.msra.mxu1 %v685_v1  ;;  %v690_v6 = vld [vmem:[%s1015_s1 + $0x58] sm:$0xff]   ;;  %v692_v8 = vld [vmem:[%s1015_s1 + $0x60] sm:$0xff]   ;;  %v694_v10 = vld [vmem:[%s1015_s1 + $0x68] sm:$0xff]  }
   0x4   :  { %606 = vmatprep.subr.bf16.mxu0 %v686_v2  ;;  %669 = vmatprep.subr.bf16.mxu1 %v686_v2  ;;  %v691_v7 = vld [vmem:[%s1015_s1 + $0x18] sm:$0xff]   ;;  %v693_v9 = vld [vmem:[%s1015_s1 + $0x20] sm:$0xff]   ;;  %v695_v12 = vld [vmem:[%s1015_s1 + $0x28] sm:$0xff]  }
   0x5   :  { %v702_v11 = vld [vmem:[%s1016_s0 + $0x4] ss:$8 sps:$4 sm:$0xff]   ;;  %v696_v14 = vld [vmem:[%s1015_s1 + $0x70] sm:$0xff]   ;;  %v698_v16 = vld [vmem:[%s1015_s1 + $0x78] sm:$0xff]  }
   0x6   :  { %v708_v13 = vld [vmem:[%s1016_s0 + $0x44] ss:$8 sps:$4 sm:$0xff]   ;;  %277 = vmatprep.mubr.bf16.mxu0 %v702_v11  ;;  %v697_v15 = vld [vmem:[%s1015_s1 + $0x30] sm:$0xff]   ;;  %v802_v17 = vld [vmem:[%s1017_s2] sm:$0x1] }
   0x7   :  { %607 = vmatpush3.bf16.msra.mxu0 %v687_v3  ;;  %677 = vmatpush3.bf16.msra.mxu1 %v687_v3  ;;  %v699_v18 = vld [vmem:[%s1015_s1 + $0x38] sm:$0xff]   ;;  %v435_v19 = vmul.f32 %v802_v17, %v802_v17  ;;  %v700_v21 = vld [vmem:[%s1016_s0] ss:$8 sps:$4 sm:$0xff]   ;;  %v709_v27 = vld [vmem:[%s1016_s0 + $0x24] ss:$8 sps:$4 sm:$0xff]  }
   0x8   :  { %608 = vmatprep.subr.bf16.mxu0 %v688_v4  ;;  %670 = vmatprep.subr.bf16.mxu1 %v688_v4  ;;  %v706_v22 = vld [vmem:[%s1016_s0 + $0x40] ss:$8 sps:$4 sm:$0xff]   ;;  %v703_v23 = vld [vmem:[%s1016_s0 + $0x14] ss:$8 sps:$4 sm:$0xff]   ;;  %v705_v25 = vld [vmem:[%s1016_s0 + $0x10] ss:$8 sps:$4 sm:$0xff]  }
   0x9   :  { %309 = vmatprep.mubr.bf16.mxu1 %v708_v13  ;;  %v437_v20 = vsel %vm436_vm0, %v435_v19, 0.0  ;;  %v712_v24 = vld [vmem:[%s1016_s0 + $0x54] ss:$8 sps:$4 sm:$0xff]   ;;  %v714_v26 = vld [vmem:[%s1016_s0 + $0x50] ss:$8 sps:$4 sm:$0xff]  }
   0xa   :  { %438 = vadd.xlane.f32.xlu0 %v437_v20  ;;  %v718_v28 = vld [vmem:[%s1016_s0 + $0x64] ss:$8 sps:$4 sm:$0xff]   ;;  %v711_v29 = vld [vmem:[%s1016_s0 + $0x20] ss:$8 sps:$4 sm:$0xff]   ;;  %v715_v31 = vld [vmem:[%s1016_s0 + $0x34] ss:$8 sps:$4 sm:$0xff]  }
   0xb   :  { %609 = vmatpush3.bf16.msra.mxu0 %v689_v5  ;;  %678 = vmatpush3.bf16.msra.mxu1 %v689_v5  ;;  %v720_v30 = vld [vmem:[%s1016_s0 + $0x60] ss:$8 sps:$4 sm:$0xff]   ;;  %v721_v32 = vld [vmem:[%s1016_s0 + $0x74] ss:$8 sps:$4 sm:$0xff]   ;;  %v717_v33 = vld [vmem:[%s1016_s0 + $0x30] ss:$8 sps:$4 sm:$0xff]  }
   0xc   :  { %610 = vmatprep.subr.bf16.mxu0 %v690_v6  ;;  %671 = vmatprep.subr.bf16.mxu1 %v690_v6  ;;  %v723_v34 = vld [vmem:[%s1016_s0 + $0x70] ss:$8 sps:$4 sm:$0xff]  }
   0xf   :  { %611 = vmatpush3.bf16.msra.mxu0 %v691_v7  ;;  %679 = vmatpush3.bf16.msra.mxu1 %v691_v7 }
  0x10   :  { %612 = vmatprep.subr.bf16.mxu0 %v692_v8  ;;  %672 = vmatprep.subr.bf16.mxu1 %v692_v8 }
  0x13   :  { %613 = vmatpush3.bf16.msra.mxu0 %v693_v9  ;;  %680 = vmatpush3.bf16.msra.mxu1 %v693_v9 }
  0x14   :  { %614 = vmatprep.subr.bf16.mxu0 %v694_v10  ;;  %673 = vmatprep.subr.bf16.mxu1 %v694_v10 }
  0x17   :  { %615 = vmatpush3.bf16.msra.mxu0 %v695_v12  ;;  %681 = vmatpush3.bf16.msra.mxu1 %v695_v12 }
  0x18   :  { %616 = vmatprep.subr.bf16.mxu0 %v696_v14  ;;  %674 = vmatprep.subr.bf16.mxu1 %v696_v14 }
  0x1b   :  { %617 = vmatpush3.bf16.msra.mxu0 %v697_v15  ;;  %682 = vmatpush3.bf16.msra.mxu1 %v697_v15 }
  0x1c   :  { %618 = vmatprep.subr.bf16.mxu0 %v698_v16  ;;  %675 = vmatprep.subr.bf16.mxu1 %v698_v16 }
  0x1f   :  { %619 = vmatpush3.bf16.msra.mxu0 %v699_v18  ;;  %683 = vmatpush3.bf16.msra.mxu1 %v699_v18 }
  0x22   :  { %278 = vmatmul.mubr.bf16.vlgmr.msra.gmra.mrb[0].mxu0 %v700_v21  ;;  %310 = vmatmul.mubr.bf16.vlgmr.msra.gmra.mrb[0].mxu1 %v706_v22 }
  0x23   :  { %285 = vmatprep.mubr.bf16.mxu0 %v703_v23  ;;  %317 = vmatprep.mubr.bf16.mxu1 %v712_v24 }
  0x2a   :  { %286 = vmatmul.mubr.bf16.gmra.mrb[4].mxu0 %v705_v25  ;;  %318 = vmatmul.mubr.bf16.gmra.mrb[4].mxu1 %v714_v26 }
  0x2b   :  { %293 = vmatprep.mubr.bf16.mxu0 %v709_v27  ;;  %325 = vmatprep.mubr.bf16.mxu1 %v718_v28 }
  0x32   :  { %294 = vmatmul.mubr.bf16.gmra.mrb[8].mxu0 %v711_v29  ;;  %326 = vmatmul.mubr.bf16.gmra.mrb[8].mxu1 %v720_v30 }
  0x33   :  { %301 = vmatprep.mubr.bf16.mxu0 %v715_v31  ;;  %333 = vmatprep.mubr.bf16.mxu1 %v721_v32 }
  0x3a   :  { %302 = vmatmul.mubr.bf16.gmra.mrb[12].mxu0 %v717_v33  ;;  %334 = vmatmul.mubr.bf16.gmra.mrb[12].mxu1 %v723_v34 }
  0xf5   :  { %v620_v35 = vpop.f32.mrb[0].mxu0  ;;  %v644_v36 = vpop.f32.mrb[0].mxu1 }
  0xf6   :  { %v621_v37 = vpop.f32.mrb[1].mxu0  ;;  %v645_v38 = vpop.f32.mrb[1].mxu1 }
  0xf7   :  { %v851_v39 = vadd.f32 %v621_v37, %v620_v35  ;;  %v623_v40 = vpop.f32.mrb[2].mxu0  ;;  %v853_v41 = vadd.f32 %v645_v38, %v644_v36  ;;  %v647_v42 = vpop.f32.mrb[2].mxu1 }
  0xf8   :  { %v624_v43 = vpop.f32.mrb[3].mxu0  ;;  %v648_v44 = vpop.f32.mrb[3].mxu1 }
  0xf9   :  { %v855_v45 = vadd.f32 %v624_v43, %v623_v40  ;;  %v857_v46 = vadd.f32 %v648_v44, %v647_v42  ;;  %v379_v58 = vmul.f32 %v851_v39, %v851_v39  ;;  %v387_v43 = vmul.f32 %v853_v41, %v853_v41 }
  0xfb   :  { %v380_v51 = vmul.f32 %v855_v45, %v855_v45  ;;  %v361_v59 = vadd.f32 %v855_v45, %v851_v39 }
  0xfd   :  { %v626_v47 = vpop.f32.mrb[4].mxu0  ;;  %v650_v48 = vpop.f32.mrb[4].mxu1  ;;  %v395_v63 = vadd.f32 %v380_v51, %v379_v58 }
  0xfe   :  { %v627_v49 = vpop.f32.mrb[5].mxu0  ;;  %v651_v50 = vpop.f32.mrb[5].mxu1 }
  0xff   :  { %v861_v52 = vadd.f32 %v627_v49, %v626_v47  ;;  %v629_v53 = vpop.f32.mrb[6].mxu0  ;;  %v863_v54 = vadd.f32 %v651_v50, %v650_v48  ;;  %v653_v55 = vpop.f32.mrb[6].mxu1  ;;  %v388_v48 = vmul.f32 %v857_v46, %v857_v46 }
 0x100   :  { %v630_v56 = vpop.f32.mrb[7].mxu0  ;;  %v654_v57 = vpop.f32.mrb[7].mxu1 }
 0x101   :  { %v381_v60 = vmul.f32 %v861_v52, %v861_v52  ;;  %v871_v61 = vadd.f32 %v630_v56, %v629_v53  ;;  %v873_v62 = vadd.f32 %v654_v57, %v653_v55  ;;  %v362_v0 = vadd.f32 %v861_v52, %v361_v59 }
 0x102   :  { %v389_v51 = vmul.f32 %v863_v54, %v863_v54 }
 0x103   :  { %v396_v1 = vadd.f32 %v395_v63, %v381_v60  ;;  %v382_v2 = vmul.f32 %v871_v61, %v871_v61  ;;  %v363_v7 = vadd.f32 %v871_v61, %v362_v0  ;;  %v390_v56 = vmul.f32 %v873_v62, %v873_v62 }
 0x105   :  { %v632_v3 = vpop.f32.mrb[8].mxu0  ;;  %v656_v4 = vpop.f32.mrb[8].mxu1  ;;  %v397_v14 = vadd.f32 %v396_v1, %v382_v2 }
 0x106   :  { %v633_v5 = vpop.f32.mrb[9].mxu0  ;;  %v657_v6 = vpop.f32.mrb[9].mxu1 }
 0x107   :  { %v879_v8 = vadd.f32 %v633_v5, %v632_v3  ;;  %v635_v9 = vpop.f32.mrb[10].mxu0  ;;  %v881_v10 = vadd.f32 %v657_v6, %v656_v4  ;;  %v659_v11 = vpop.f32.mrb[10].mxu1 }
 0x108   :  { %v636_v12 = vpop.f32.mrb[11].mxu0  ;;  %v660_v13 = vpop.f32.mrb[11].mxu1 }
 0x109   :  { %v364_v15 = vadd.f32 %v879_v8, %v363_v7  ;;  %v383_v16 = vmul.f32 %v879_v8, %v879_v8  ;;  %v886_v18 = vadd.f32 %v636_v12, %v635_v9  ;;  %v888_v19 = vadd.f32 %v660_v13, %v659_v11 }
 0x10a   :  { %v391_v60 = vmul.f32 %v881_v10, %v881_v10 }
 0x10b   :  { %v398_v20 = vadd.f32 %v397_v14, %v383_v16  ;;  %v365_v21 = vadd.f32 %v886_v18, %v364_v15  ;;  %v384_v22 = vmul.f32 %v886_v18, %v886_v18  ;;  %v392_v2 = vmul.f32 %v888_v19, %v888_v19 }
 0x10d   :  { %v399_v23 = vadd.f32 %v398_v20, %v384_v22  ;;  %v638_v24 = vpop.f32.mrb[12].mxu0  ;;  %v662_v25 = vpop.f32.mrb[12].mxu1 }
 0x10e   :  { %v639_v26 = vpop.f32.mrb[13].mxu0  ;;  %v663_v27 = vpop.f32.mrb[13].mxu1 }
 0x10f   :  { %v893_v28 = vadd.f32 %v639_v26, %v638_v24  ;;  %v641_v29 = vpop.f32.mrb[14].mxu0  ;;  %v895_v30 = vadd.f32 %v663_v27, %v662_v25  ;;  %v665_v31 = vpop.f32.mrb[14].mxu1 }
 0x110   :  { %v642_v32 = vpop.f32.mrb[15].mxu0  ;;  %v666_v33 = vpop.f32.mrb[15].mxu1 }
 0x111   :  { %v366_v34 = vadd.f32 %v893_v28, %v365_v21  ;;  %v385_v35 = vmul.f32 %v893_v28, %v893_v28  ;;  %v900_v36 = vadd.f32 %v642_v32, %v641_v29  ;;  %v902_v37 = vadd.f32 %v666_v33, %v665_v31  ;;  %v439_v22 = vpop.xlane.xlu0 %438 }
 0x112   :  { %v393_v3 = vmul.f32 %v895_v30, %v895_v30  ;;  %v440_v27 = vadd.f32 1e-12, %v439_v22 }
 0x113   :  { %v400_v38 = vadd.f32 %v399_v23, %v385_v35  ;;  %v367_v40 = vadd.f32 %v900_v36, %v366_v34  ;;  %v386_v42 = vmul.f32 %v900_v36, %v900_v36  ;;  %v394_v9 = vmul.f32 %v902_v37, %v902_v37 }
 0x114   :  { %724 = vrsqrt.f32 %v440_v27 }
 0x115   :  { %v368_v44 = vadd.f32 %v853_v41, %v367_v40  ;;  %v401_v47 = vadd.f32 %v400_v38, %v386_v42  ;;  %v464_v38 = vlaneseq }
 0x117   :  { %v369_v49 = vadd.f32 %v857_v46, %v368_v44  ;;  %v402_v50 = vadd.f32 %v401_v47, %v387_v43  ;;  %v465_v42 = vshrl.u32 %v464_v38, 7 }
 0x119   :  { %v403_v53 = vadd.f32 %v402_v50, %v388_v48  ;;  %v370_v55 = vadd.f32 %v863_v54, %v369_v49  ;;  %v466_v44 = vsub.s32 0, %v465_v42  ;;  %v434_v49 = vld [vmem:[%s1017_s2 + $0x1] sm:$0x1] }
 0x11b   :  { %v371_v57 = vadd.f32 %v873_v62, %v370_v55  ;;  %v404_v58 = vadd.f32 %v403_v53, %v389_v51 }
 0x11d   :  { %v372_v59 = vadd.f32 %v881_v10, %v371_v57  ;;  %v405_v63 = vadd.f32 %v404_v58, %v390_v56 }
 0x11e   :  { %v725_v40 = vpop.eup %724 }
 0x11f   :  { %v406_v0 = vadd.f32 %v405_v63, %v391_v60  ;;  %v373_v1 = vadd.f32 %v888_v19, %v372_v59  ;;  %v442_v43 = vmul.f32 %v725_v40, %v802_v17 }
 0x121   :  { %v407_v4 = vadd.f32 %v406_v0, %v392_v2  ;;  %v374_v5 = vadd.f32 %v895_v30, %v373_v1 }
 0x123   :  { %v408_v6 = vadd.f32 %v407_v4, %v393_v3  ;;  %v375_v7 = vadd.f32 %v902_v37, %v374_v5 }
 0x125   :  { %v409_v11 = vadd.f32 %v408_v6, %v394_v9  ;;  %v416_v12 = vrot.slane %v375_v7, 4 }
 0x127   :  { %v417_v13 = vadd.f32 %v416_v12, %v375_v7  ;;  %v423_v14 = vrot.slane %v409_v11, 4 }
 0x129   :  { %v418_v15 = vrot.slane %v417_v13, 2  ;;  %v424_v16 = vadd.f32 %v423_v14, %v409_v11 }
 0x12b   :  { %v419_v20 = vadd.f32 %v418_v15, %v417_v13  ;;  %v425_v21 = vrot.slane %v424_v16, 2 }
 0x12d   :  { %v420_v23 = vrot.slane %v419_v20, 1  ;;  %v426_v24 = vadd.f32 %v425_v21, %v424_v16 }
 0x12f   :  { %v421_v25 = vadd.f32 %v420_v23, %v419_v20  ;;  %v427_v26 = vrot.slane %v426_v24, 1 }
 0x131   :  { %v428_v29 = vadd.f32 %v427_v26, %v426_v24  ;;  %v429_v31 = vmul.f32 0.0078125, %v421_v25 }
 0x133   :  { %v430_v32 = vmul.f32 0.0078125, %v428_v29  ;;  %v431_v33 = vmul.f32 %v429_v31, %v429_v31 }
 0x135   :  { %v432_v34 = vsub.f32 %v430_v32, %v431_v33 }
 0x137   :  { %v443_v35 = vadd.f32 1e-05, %v432_v34 }
 0x139   :  { %726 = vrsqrt.f32 %v443_v35 }
 0x143   :  { %v727_v47 = vpop.eup %726 }
 0x144   :  { %v445_v48 = vmul.f32 %v727_v47, %v442_v43 }
 0x146   :  { %v446_v50 = vmul.f32 %v445_v48, %v429_v31  ;;  %v467_v51 = vrot.slane %v445_v48, %v466_v44 }
 0x148   :  { %v447_v53 = vsub.f32 %v434_v49, %v446_v50  ;;  %v468_v55 = vmul.f32 %v851_v39, %v467_v51  ;;  %v469_v56 = vmul.f32 %v855_v45, %v467_v51  ;;  %v472_v57 = vmul.f32 %v879_v8, %v467_v51 }
 0x149   :  { %v473_v58 = vmul.f32 %v886_v18, %v467_v51  ;;  %v474_v17 = vmul.f32 %v893_v28, %v467_v51  ;;  %v475_v59 = vmul.f32 %v900_v36, %v467_v51  ;;  %v476_v60 = vmul.f32 %v853_v41, %v467_v51 }
 0x14a   :  { %v477_v63 = vmul.f32 %v857_v46, %v467_v51  ;;  %v478_v0 = vmul.f32 %v863_v54, %v467_v51  ;;  %v479_v1 = vmul.f32 %v873_v62, %v467_v51  ;;  %v480_v39 = vmul.f32 %v881_v10, %v467_v51 }
 0x14b   :  { %v481_v45 = vmul.f32 %v888_v19, %v467_v51  ;;  %v482_v8 = vmul.f32 %v895_v30, %v467_v51  ;;  %v470_v18 = vmul.f32 %v861_v52, %v467_v51  ;;  %v471_v28 = vmul.f32 %v871_v61, %v467_v51 }
 0x14c   :  { %v483_v36 = vmul.f32 %v902_v37, %v467_v51  ;;  %v487_v2 = vrot.slane %v447_v53, %v466_v44 }
 0x14e   :  { %v488_v41 = vadd.f32 %v487_v2, %v468_v55  ;;  %v489_v3 = vadd.f32 %v487_v2, %v469_v56  ;;  %v490_v46 = vadd.f32 %v487_v2, %v470_v18  ;;  %v491_v4 = vadd.f32 %v487_v2, %v471_v28 }
 0x14f   :  { %v492_v54 = vadd.f32 %v487_v2, %v472_v57  ;;  %v493_v5 = vadd.f32 %v487_v2, %v473_v58  ;;  %v494_v62 = vadd.f32 %v487_v2, %v474_v17  ;;  %v495_v6 = vadd.f32 %v487_v2, %v475_v59 }
 0x150   :  { %v496_v10 = vadd.f32 %v487_v2, %v476_v60  ;;  %v497_v7 = vadd.f32 %v487_v2, %v477_v63  ;;  %v498_v19 = vadd.f32 %v487_v2, %v478_v0  ;;  %v499_v9 = vadd.f32 %v487_v2, %v479_v1 }
 0x151   :  { %v500_v30 = vadd.f32 %v487_v2, %v480_v39  ;;  %v501_v11 = vadd.f32 %v487_v2, %v481_v45  ;;  %v502_v52 = vadd.f32 %v487_v2, %v482_v8  ;;  %v503_v12 = vadd.f32 %v487_v2, %v483_v36 }
 0x152   :  { %vm504_vm1 = vcmp.gt.f32.partialorder %v488_v41, 0.0  ;;  %vm505_vm2 = vcmp.gt.f32.partialorder %v489_v3, 0.0  ;;  %vm506_vm3 = vcmp.gt.f32.partialorder %v490_v46, 0.0  ;;  %vm507_vm4 = vcmp.gt.f32.partialorder %v491_v4, 0.0 }
 0x153   :  { %vm508_vm5 = vcmp.gt.f32.partialorder %v492_v54, 0.0  ;;  %vm509_vm6 = vcmp.gt.f32.partialorder %v493_v5, 0.0  ;;  %vm510_vm7 = vcmp.gt.f32.partialorder %v494_v62, 0.0  ;;  %vm511_vm8 = vcmp.gt.f32.partialorder %v495_v6, 0.0 }
 0x154   :  { %vm512_vm9 = vcmp.gt.f32.partialorder %v496_v10, 0.0  ;;  %vm513_vm10 = vcmp.gt.f32.partialorder %v497_v7, 0.0  ;;  %vm514_vm11 = vcmp.gt.f32.partialorder %v498_v19, 0.0  ;;  %vm515_vm12 = vcmp.gt.f32.partialorder %v499_v9, 0.0 }
 0x155   :  { %vm516_vm13 = vcmp.gt.f32.partialorder %v500_v30, 0.0  ;;  %vm517_vm14 = vcmp.gt.f32.partialorder %v501_v11, 0.0  ;;  %vm518_vm15 = vcmp.gt.f32.partialorder %v502_v52, 0.0  ;;  %vm519_vm0 = vcmp.gt.f32.partialorder %v503_v12, 0.0 }
 0x156   :  { %v520_v61 = vmul.f32 0.2, %v488_v41  ;;  %v521_v37 = vmul.f32 0.2, %v489_v3  ;;  %v522_v13 = vmul.f32 0.2, %v490_v46 }
 0x157   :  { %v523_v14 = vmul.f32 0.2, %v491_v4  ;;  %v524_v15 = vmul.f32 0.2, %v492_v54  ;;  %v525_v16 = vmul.f32 0.2, %v493_v5 }
 0x158   :  { %v526_v20 = vmul.f32 0.2, %v494_v62  ;;  %v527_v21 = vmul.f32 0.2, %v495_v6  ;;  %v528_v22 = vmul.f32 0.2, %v496_v10  ;;  %v536_v23 = vsel %vm504_vm1, %v488_v41, %v520_v61 }
 0x159   :  { %v529_v24 = vmul.f32 0.2, %v497_v7  ;;  %v530_v25 = vmul.f32 0.2, %v498_v19  ;;  %v531_v26 = vmul.f32 0.2, %v499_v9  ;;  %v537_v27 = vsel %vm505_vm2, %v489_v3, %v521_v37  ;;  %552 = vst [vmem:[%s1018_s3] sm:$0xff] %v536_v23 }
 0x15a   :  { %v532_v29 = vmul.f32 0.2, %v500_v30  ;;  %v533_v31 = vmul.f32 0.2, %v501_v11  ;;  %v534_v32 = vmul.f32 0.2, %v502_v52  ;;  %v538_v33 = vsel %vm506_vm3, %v490_v46, %v522_v13 }
 0x15b   :  { %553 = vst [vmem:[%s1018_s3 + $0x8] sm:$0xff] %v537_v27  ;;  %v535_v34 = vmul.f32 0.2, %v503_v12  ;;  %v539_v35 = vsel %vm507_vm4, %v491_v4, %v523_v14  ;;  %v540_v38 = vsel %vm508_vm5, %v492_v54, %v524_v15  ;;  %v541_v40 = vsel %vm509_vm6, %v493_v5, %v525_v16  ;;  %554 = vst [vmem:[%s1018_s3 + $0x10] sm:$0xff] %v538_v33 }
 0x15c   :  { %v542_v42 = vsel %vm510_vm7, %v494_v62, %v526_v20  ;;  %v543_v43 = vsel %vm511_vm8, %v495_v6, %v527_v21  ;;  %v544_v44 = vsel %vm512_vm9, %v496_v10, %v528_v22  ;;  %v545_v47 = vsel %vm513_vm10, %v497_v7, %v529_v24  ;;  %555 = vst [vmem:[%s1018_s3 + $0x18] sm:$0xff] %v539_v35 }
 0x15d   :  { %556 = vst [vmem:[%s1018_s3 + $0x20] sm:$0xff] %v540_v38  ;;  %557 = vst [vmem:[%s1018_s3 + $0x28] sm:$0xff] %v541_v40  ;;  %v546_v48 = vsel %vm514_vm11, %v498_v19, %v530_v25  ;;  %v547_v49 = vsel %vm515_vm12, %v499_v9, %v531_v26  ;;  %v548_v50 = vsel %vm516_vm13, %v500_v30, %v532_v29 }
 0x15e   :  { %v549_v51 = vsel %vm517_vm14, %v501_v11, %v533_v31  ;;  %558 = vst [vmem:[%s1018_s3 + $0x30] sm:$0xff] %v542_v42  ;;  %559 = vst [vmem:[%s1018_s3 + $0x38] sm:$0xff] %v543_v43  ;;  %v550_v53 = vsel %vm518_vm15, %v502_v52, %v534_v32  ;;  %v551_v55 = vsel %vm519_vm0, %v503_v12, %v535_v34 }
 0x15f   :  { %560 = vst [vmem:[%s1018_s3 + $0x40] sm:$0xff] %v544_v44  ;;  %561 = vst [vmem:[%s1018_s3 + $0x48] sm:$0xff] %v545_v47 }
 0x160   :  { %562 = vst [vmem:[%s1018_s3 + $0x50] sm:$0xff] %v546_v48  ;;  %563 = vst [vmem:[%s1018_s3 + $0x58] sm:$0xff] %v547_v49 }
 0x161   :  { %564 = vst [vmem:[%s1018_s3 + $0x60] sm:$0xff] %v548_v50  ;;  %565 = vst [vmem:[%s1018_s3 + $0x68] sm:$0xff] %v549_v51 }
 0x162   :  { %566 = vst [vmem:[%s1018_s3 + $0x70] sm:$0xff] %v550_v53  ;;  %567 = vst [vmem:[%s1018_s3 + $0x78] sm:$0xff] %v551_v55 }

// kernel: forward.9
= control target key start
LH: loop header
LB: loop body
LE: loop exit
PB: predicated region body
PF: predicated region fallthrough
CT: control target
= control target key end

     0   :  { %vm469_vm0 = vcmask 1040384   ;;  %s828_s1 = inlined_call_operand.vmem [shape: bf16[512,128], index: 1, kind: input, shape index: {}]   ;;  %s829_s0 = inlined_call_operand.vmem [shape: bf16[32,512], index: 0, kind: input, shape index: {}]   ;;  %s830_s2 = inlined_call_operand.vmem [shape: f32[8,128], index: 2, kind: input, shape index: {}]   ;;  %s831_s3 = inlined_call_operand.vmem [shape: f32[32,128], index: 3, kind: output, shape index: {}]  }
   0x1   :  { %v617_v0 = vld [vmem:[%s828_s1 + $0x40] sm:$0xff]   ;;  %v621_v4 = vld [vmem:[%s828_s1 + $0x48] sm:$0xff]   ;;  %v625_v8 = vld [vmem:[%s828_s1 + $0x50] sm:$0xff]  }
   0x2   :  { %v618_v1 = vld [vmem:[%s828_s1 + $0xc0] sm:$0xff]   ;;  %561 = vmatprep.subr.bf16.mxu0 %v617_v0  ;;  %v622_v5 = vld [vmem:[%s828_s1 + $0xc8] sm:$0xff]   ;;  %v626_v9 = vld [vmem:[%s828_s1 + $0xd0] sm:$0xff]  }
   0x3   :  { %v619_v2 = vld [vmem:[%s828_s1] sm:$0xff]   ;;  %589 = vmatprep.subr.bf16.mxu1 %v618_v1  ;;  %v623_v6 = vld [vmem:[%s828_s1 + $0x8] sm:$0xff]   ;;  %v627_v10 = vld [vmem:[%s828_s1 + $0x10] sm:$0xff]  }
   0x4   :  { %v620_v3 = vld [vmem:[%s828_s1 + $0x80] sm:$0xff]   ;;  %562 = vmatpush3.bf16.msra.mxu0 %v619_v2  ;;  %v624_v7 = vld [vmem:[%s828_s1 + $0x88] sm:$0xff]   ;;  %v628_v11 = vld [vmem:[%s828_s1 + $0x90] sm:$0xff]  }
   0x5   :  { %590 = vmatpush3.bf16.msra.mxu1 %v620_v3  ;;  %563 = vmatprep.subr.bf16.mxu0 %v621_v4  ;;  %v629_v12 = vld [vmem:[%s828_s1 + $0x58] sm:$0xff]   ;;  %v633_v16 = vld [vmem:[%s828_s1 + $0x60] sm:$0xff]   ;;  %v637_v20 = vld [vmem:[%s828_s1 + $0x68] sm:$0xff]  }
   0x6   :  { %591 = vmatprep.subr.bf16.mxu1 %v622_v5  ;;  %v630_v13 = vld [vmem:[%s828_s1 + $0xd8] sm:$0xff]   ;;  %v634_v17 = vld [vmem:[%s828_s1 + $0xe0] sm:$0xff]   ;;  %v638_v21 = vld [vmem:[%s828_s1 + $0xe8] sm:$0xff]  }
   0x7   :  { %v631_v14 = vld [vmem:[%s828_s1 + $0x18] sm:$0xff]   ;;  %v635_v18 = vld [vmem:[%s828_s1 + $0x20] sm:$0xff]   ;;  %v639_v22 = vld [vmem:[%s828_s1 + $0x28] sm:$0xff]  }
   0x8   :  { %564 = vmatpush3.bf16.msra.mxu0 %v623_v6  ;;  %v632_v15 = vld [vmem:[%s828_s1 + $0x98] sm:$0xff]   ;;  %v636_v19 = vld [vmem:[%s828_s1 + $0xa0] sm:$0xff]   ;;  %v640_v23 = vld [vmem:[%s828_s1 + $0xa8] sm:$0xff]  }
   0x9   :  { %592 = vmatpush3.bf16.msra.mxu1 %v624_v7  ;;  %565 = vmatprep.subr.bf16.mxu0 %v625_v8  ;;  %v641_v24 = vld [vmem:[%s828_s1 + $0x70] sm:$0xff]   ;;  %v645_v28 = vld [vmem:[%s828_s1 + $0x78] sm:$0xff]   ;;  %v802_v38 = vld [vmem:[%s830_s2] sm:$0x1] }
   0xa   :  { %593 = vmatprep.subr.bf16.mxu1 %v626_v9  ;;  %v642_v25 = vld [vmem:[%s828_s1 + $0xf0] sm:$0xff]   ;;  %v646_v29 = vld [vmem:[%s828_s1 + $0xf8] sm:$0xff]   ;;  %v468_v39 = vmul.f32 %v802_v38, %v802_v38 }
   0xb   :  { %v643_v26 = vld [vmem:[%s828_s1 + $0x30] sm:$0xff]   ;;  %v647_v30 = vld [vmem:[%s828_s1 + $0x38] sm:$0xff]  }
   0xc   :  { %566 = vmatpush3.bf16.msra.mxu0 %v627_v10  ;;  %v644_v27 = vld [vmem:[%s828_s1 + $0xb0] sm:$0xff]   ;;  %v648_v31 = vld [vmem:[%s828_s1 + $0xb8] sm:$0xff]   ;;  %v470_v41 = vsel %vm469_vm0, %v468_v39, 0.0 }
   0xd   :  { %594 = vmatpush3.bf16.msra.mxu1 %v628_v11  ;;  %567 = vmatprep.subr.bf16.mxu0 %v629_v12  ;;  %v649_v32 = vld [vmem:[%s829_s0] ss:$16 sps:$4 sm:$0xff]   ;;  %v651_v33 = vld [vmem:[%s829_s0 + $0x4] ss:$16 sps:$4 sm:$0xff]   ;;  %v652_v34 = vld [vmem:[%s829_s0 + $0x8] ss:$16 sps:$4 sm:$0xff]  }
   0xe   :  { %595 = vmatprep.subr.bf16.mxu1 %v630_v13  ;;  %v654_v35 = vld [vmem:[%s829_s0 + $0xc] ss:$16 sps:$4 sm:$0xff]   ;;  %357 = vmatprep.mubr.bf16.mxu0 %v651_v33  ;;  %v655_v36 = vld [vmem:[%s829_s0 + $0x24] ss:$16 sps:$4 sm:$0xff]   ;;  %v659_v40 = vld [vmem:[%s829_s0 + $0x20] ss:$16 sps:$4 sm:$0xff]  }
   0xf   :  { %406 = vmatprep.mubr.bf16.mxu1 %v654_v35  ;;  %v657_v37 = vld [vmem:[%s829_s0 + $0x2c] ss:$16 sps:$4 sm:$0xff]   ;;  %v660_v42 = vld [vmem:[%s829_s0 + $0x28] ss:$16 sps:$4 sm:$0xff]   ;;  %471 = vadd.xlane.f32.xlu0 %v470_v41 }
  0x10   :  { %568 = vmatpush3.bf16.msra.mxu0 %v631_v14 }
  0x11   :  { %596 = vmatpush3.bf16.msra.mxu1 %v632_v15  ;;  %569 = vmatprep.subr.bf16.mxu0 %v633_v16 }
  0x12   :  { %597 = vmatprep.subr.bf16.mxu1 %v634_v17 }
  0x14   :  { %570 = vmatpush3.bf16.msra.mxu0 %v635_v18 }
  0x15   :  { %598 = vmatpush3.bf16.msra.mxu1 %v636_v19  ;;  %571 = vmatprep.subr.bf16.mxu0 %v637_v20 }
  0x16   :  { %599 = vmatprep.subr.bf16.mxu1 %v638_v21 }
  0x18   :  { %572 = vmatpush3.bf16.msra.mxu0 %v639_v22 }
  0x19   :  { %600 = vmatpush3.bf16.msra.mxu1 %v640_v23  ;;  %573 = vmatprep.subr.bf16.mxu0 %v641_v24 }
  0x1a   :  { %601 = vmatprep.subr.bf16.mxu1 %v642_v25 }
  0x1c   :  { %574 = vmatpush3.bf16.msra.mxu0 %v643_v26 }
  0x1d   :  { %602 = vmatpush3.bf16.msra.mxu1 %v644_v27  ;;  %575 = vmatprep.subr.bf16.mxu0 %v645_v28 }
  0x1e   :  { %603 = vmatprep.subr.bf16.mxu1 %v646_v29 }
  0x20   :  { %576 = vmatpush3.bf16.msra.mxu0 %v647_v30 }
  0x21   :  { %604 = vmatpush3.bf16.msra.mxu1 %v648_v31 }
  0x23   :  { %358 = vmatmul.mubr.bf16.vlgmr.msra.gmra.mrb[0].mxu0 %v649_v32 }
  0x24   :  { %407 = vmatmul.mubr.bf16.vlgmr.msra.gmra.mrb[0].mxu1 %v652_v34  ;;  %365 = vmatprep.mubr.bf16.mxu0 %v655_v36  ;;  %v485_v36 = vlaneseq }
  0x25   :  { %414 = vmatprep.mubr.bf16.mxu1 %v657_v37 }
  0x26   :  { %v486_v39 = vshrl.u32 %v485_v36, 7 }
  0x28   :  { %v487_v41 = vsub.s32 0, %v486_v39 }
  0x2b   :  { %366 = vmatmul.mubr.bf16.gmra.mrb[4].mxu0 %v659_v40 }
  0x2c   :  { %415 = vmatmul.mubr.bf16.gmra.mrb[4].mxu1 %v660_v42 }
  0x9c   :  { %v472_v24 = vpop.xlane.xlu0 %471 }
  0x9d   :  { %v473_v29 = vadd.f32 1e-12, %v472_v24 }
  0x9f   :  { %661 = vrsqrt.f32 %v473_v29 }
  0xa9   :  { %v662_v37 = vpop.eup %661 }
  0xaa   :  { %v475_v40 = vmul.f32 %v662_v37, %v802_v38 }
  0xf6   :  { %v577_v43 = vpop.f32.mrb[0].mxu0 }
  0xf7   :  { %v605_v44 = vpop.f32.mrb[0].mxu1  ;;  %v578_v45 = vpop.f32.mrb[1].mxu0 }
  0xf8   :  { %v579_v46 = vadd.f32 %v578_v45, %v577_v43  ;;  %v606_v47 = vpop.f32.mrb[1].mxu1  ;;  %v580_v48 = vpop.f32.mrb[2].mxu0 }
  0xf9   :  { %v607_v49 = vadd.f32 %v606_v47, %v605_v44  ;;  %v608_v50 = vpop.f32.mrb[2].mxu1  ;;  %v581_v51 = vpop.f32.mrb[3].mxu0  ;;  %v467_v44 = vld [vmem:[%s830_s2 + $0x1] sm:$0x1] }
  0xfa   :  { %v582_v52 = vadd.f32 %v581_v51, %v580_v48  ;;  %v609_v53 = vpop.f32.mrb[3].mxu1 }
  0xfb   :  { %v409_v54 = vadd.f32 %v607_v49, %v579_v46  ;;  %v610_v55 = vadd.f32 %v609_v53, %v608_v50 }
  0xfd   :  { %v412_v56 = vadd.f32 %v610_v55, %v582_v52  ;;  %v436_v58 = vmul.f32 %v409_v54, %v409_v54 }
  0xfe   :  { %v583_v57 = vpop.f32.mrb[4].mxu0 }
  0xff   :  { %v430_v59 = vadd.f32 %v412_v56, %v409_v54  ;;  %v437_v60 = vmul.f32 %v412_v56, %v412_v56  ;;  %v611_v61 = vpop.f32.mrb[4].mxu1  ;;  %v584_v62 = vpop.f32.mrb[5].mxu0 }
 0x100   :  { %v585_v63 = vadd.f32 %v584_v62, %v583_v57  ;;  %v612_v0 = vpop.f32.mrb[5].mxu1  ;;  %v586_v1 = vpop.f32.mrb[6].mxu0 }
 0x101   :  { %v440_v2 = vadd.f32 %v437_v60, %v436_v58  ;;  %v613_v3 = vadd.f32 %v612_v0, %v611_v61  ;;  %v614_v4 = vpop.f32.mrb[6].mxu1  ;;  %v587_v5 = vpop.f32.mrb[7].mxu0 }
 0x102   :  { %v588_v6 = vadd.f32 %v587_v5, %v586_v1  ;;  %v615_v7 = vpop.f32.mrb[7].mxu1 }
 0x103   :  { %v417_v8 = vadd.f32 %v613_v3, %v585_v63  ;;  %v616_v9 = vadd.f32 %v615_v7, %v614_v4 }
 0x105   :  { %v431_v10 = vadd.f32 %v430_v59, %v417_v8  ;;  %v438_v11 = vmul.f32 %v417_v8, %v417_v8  ;;  %v420_v12 = vadd.f32 %v616_v9, %v588_v6 }
 0x107   :  { %v441_v13 = vadd.f32 %v440_v2, %v438_v11  ;;  %v432_v14 = vadd.f32 %v431_v10, %v420_v12  ;;  %v439_v15 = vmul.f32 %v420_v12, %v420_v12 }
 0x109   :  { %v442_v16 = vadd.f32 %v441_v13, %v439_v15  ;;  %v449_v17 = vrot.slane %v432_v14, 4 }
 0x10b   :  { %v450_v18 = vadd.f32 %v449_v17, %v432_v14  ;;  %v456_v19 = vrot.slane %v442_v16, 4 }
 0x10d   :  { %v451_v20 = vrot.slane %v450_v18, 2  ;;  %v457_v21 = vadd.f32 %v456_v19, %v442_v16 }
 0x10f   :  { %v452_v22 = vadd.f32 %v451_v20, %v450_v18  ;;  %v458_v23 = vrot.slane %v457_v21, 2 }
 0x111   :  { %v453_v25 = vrot.slane %v452_v22, 1  ;;  %v459_v26 = vadd.f32 %v458_v23, %v457_v21 }
 0x113   :  { %v454_v27 = vadd.f32 %v453_v25, %v452_v22  ;;  %v460_v28 = vrot.slane %v459_v26, 1 }
 0x115   :  { %v461_v30 = vadd.f32 %v460_v28, %v459_v26  ;;  %v462_v31 = vmul.f32 0.03125, %v454_v27 }
 0x117   :  { %v463_v32 = vmul.f32 0.03125, %v461_v30  ;;  %v464_v33 = vmul.f32 %v462_v31, %v462_v31 }
 0x119   :  { %v465_v34 = vsub.f32 %v463_v32, %v464_v33 }
 0x11b   :  { %v476_v35 = vadd.f32 1e-05, %v465_v34 }
 0x11d   :  { %663 = vrsqrt.f32 %v476_v35 }
 0x127   :  { %v664_v42 = vpop.eup %663 }
 0x128   :  { %v478_v43 = vmul.f32 %v664_v42, %v475_v40 }
 0x12a   :  { %v479_v45 = vmul.f32 %v478_v43, %v462_v31  ;;  %v488_v46 = vrot.slane %v478_v43, %v487_v41 }
 0x12c   :  { %v480_v47 = vsub.f32 %v467_v44, %v479_v45  ;;  %v489_v48 = vmul.f32 %v488_v46, %v409_v54  ;;  %v490_v49 = vmul.f32 %v488_v46, %v412_v56  ;;  %v491_v50 = vmul.f32 %v488_v46, %v417_v8 }
 0x12d   :  { %v492_v51 = vmul.f32 %v488_v46, %v420_v12 }
 0x12e   :  { %v496_v52 = vrot.slane %v480_v47, %v487_v41 }
 0x130   :  { %v497_v53 = vadd.f32 %v496_v52, %v489_v48  ;;  %v498_v55 = vadd.f32 %v496_v52, %v490_v49  ;;  %v499_v57 = vadd.f32 %v496_v52, %v491_v50  ;;  %v500_v58 = vadd.f32 %v496_v52, %v492_v51 }
 0x132   :  { %vm501_vm1 = vcmp.gt.f32.partialorder %v497_v53, 0.0  ;;  %vm502_vm2 = vcmp.gt.f32.partialorder %v498_v55, 0.0  ;;  %vm503_vm3 = vcmp.gt.f32.partialorder %v499_v57, 0.0  ;;  %vm504_vm4 = vcmp.gt.f32.partialorder %v500_v58, 0.0 }
 0x133   :  { %v505_v38 = vmul.f32 0.2, %v497_v53  ;;  %v506_v59 = vmul.f32 0.2, %v498_v55  ;;  %v507_v60 = vmul.f32 0.2, %v499_v57 }
 0x134   :  { %v508_v61 = vmul.f32 0.2, %v500_v58 }
 0x135   :  { %v509_v62 = vsel %vm501_vm1, %v497_v53, %v505_v38  ;;  %v510_v63 = vsel %vm502_vm2, %v498_v55, %v506_v59  ;;  %v511_v0 = vsel %vm503_vm3, %v499_v57, %v507_v60 }
 0x136   :  { %v512_v54 = vsel %vm504_vm4, %v500_v58, %v508_v61  ;;  %513 = vst [vmem:[%s831_s3] sm:$0xff] %v509_v62  ;;  %514 = vst [vmem:[%s831_s3 + $0x8] sm:$0xff] %v510_v63 }
 0x137   :  { %515 = vst [vmem:[%s831_s3 + $0x10] sm:$0xff] %v511_v0  ;;  %516 = vst [vmem:[%s831_s3 + $0x18] sm:$0xff] %v512_v54 }

// kernel: forward.11
= control target key start
LH: loop header
LB: loop body
LE: loop exit
PB: predicated region body
PF: predicated region fallthrough
CT: control target
= control target key end

     0   :  { %v691_v33 = vmov 0.0   ;;  %vm692_vm0 = vmmov 0   ;;  %s857_s1 = inlined_call_operand.vmem [shape: bf16[640,128], index: 1, kind: input, shape index: {}]   ;;  %s858_s0 = inlined_call_operand.vmem [shape: bf16[16,640], index: 0, kind: input, shape index: {}]   ;;  %s859_s2 = inlined_call_operand.vmem [shape: f32[8,128], index: 2, kind: input, shape index: {}]   ;;  %s860_s3 = inlined_call_operand.vmem [shape: f32[16,128], index: 3, kind: output, shape index: {}]  }
   0x1   :  { %v636_v0 = vld [vmem:[%s857_s1 + $0x40] sm:$0xff]   ;;  %v640_v4 = vld [vmem:[%s857_s1 + $0x48] sm:$0xff]   ;;  %v644_v8 = vld [vmem:[%s857_s1 + $0x50] sm:$0xff]  }
   0x2   :  { %v637_v1 = vld [vmem:[%s857_s1] sm:$0xff]   ;;  %561 = vmatprep.subr.bf16.mxu0 %v636_v0  ;;  %v641_v5 = vld [vmem:[%s857_s1 + $0x8] sm:$0xff]   ;;  %v645_v9 = vld [vmem:[%s857_s1 + $0x10] sm:$0xff]  }
   0x3   :  { %v638_v2 = vld [vmem:[%s857_s1 + $0xc0] sm:$0xff]   ;;  %562 = vmatpush3.bf16.msra.mxu0 %v637_v1  ;;  %v642_v6 = vld [vmem:[%s857_s1 + $0xc8] sm:$0xff]   ;;  %v646_v10 = vld [vmem:[%s857_s1 + $0xd0] sm:$0xff]  }
   0x4   :  { %v639_v3 = vld [vmem:[%s857_s1 + $0x80] sm:$0xff]   ;;  %583 = vmatprep.subr.bf16.mxu1 %v638_v2  ;;  %563 = vmatprep.subr.bf16.mxu0 %v640_v4  ;;  %v643_v7 = vld [vmem:[%s857_s1 + $0x88] sm:$0xff]   ;;  %v647_v11 = vld [vmem:[%s857_s1 + $0x90] sm:$0xff]  }
   0x5   :  { %584 = vmatpush3.bf16.msra.mxu1 %v639_v3  ;;  %v648_v12 = vld [vmem:[%s857_s1 + $0x58] sm:$0xff]   ;;  %v652_v16 = vld [vmem:[%s857_s1 + $0x60] sm:$0xff]   ;;  %v656_v20 = vld [vmem:[%s857_s1 + $0x68] sm:$0xff]  }
   0x6   :  { %585 = vmatprep.subr.bf16.mxu1 %v642_v6  ;;  %v649_v13 = vld [vmem:[%s857_s1 + $0x18] sm:$0xff]   ;;  %v653_v17 = vld [vmem:[%s857_s1 + $0x20] sm:$0xff]   ;;  %v657_v21 = vld [vmem:[%s857_s1 + $0x28] sm:$0xff]  }
   0x7   :  { %564 = vmatpush3.bf16.msra.mxu0 %v641_v5  ;;  %v650_v14 = vld [vmem:[%s857_s1 + $0xd8] sm:$0xff]   ;;  %v654_v18 = vld [vmem:[%s857_s1 + $0xe0] sm:$0xff]   ;;  %v658_v22 = vld [vmem:[%s857_s1 + $0xe8] sm:$0xff]  }
   0x8   :  { %565 = vmatprep.subr.bf16.mxu0 %v644_v8  ;;  %v651_v15 = vld [vmem:[%s857_s1 + $0x98] sm:$0xff]   ;;  %v655_v19 = vld [vmem:[%s857_s1 + $0xa0] sm:$0xff]   ;;  %v659_v23 = vld [vmem:[%s857_s1 + $0xa8] sm:$0xff]  }
   0x9   :  { %586 = vmatpush3.bf16.msra.mxu1 %v643_v7  ;;  %v660_v24 = vld [vmem:[%s857_s1 + $0x70] sm:$0xff]   ;;  %v664_v28 = vld [vmem:[%s857_s1 + $0x78] sm:$0xff]   ;;  %v673_v36 = vld [vmem:[%s858_s0 + $0xc] ss:$20 sps:$4 sm:$0xff]  }
   0xa   :  { %587 = vmatprep.subr.bf16.mxu1 %v646_v10  ;;  %v661_v25 = vld [vmem:[%s857_s1 + $0x30] sm:$0xff]   ;;  %v665_v29 = vld [vmem:[%s857_s1 + $0x38] sm:$0xff]   ;;  %v674_v37 = vld [vmem:[%s857_s1 + $0x100] sm:$0xff]   ;;  %445 = vmatprep.mubr.bf16.mxu1 %v673_v36 }
   0xb   :  { %566 = vmatpush3.bf16.msra.mxu0 %v645_v9  ;;  %v662_v26 = vld [vmem:[%s857_s1 + $0xf0] sm:$0xff]   ;;  %v666_v30 = vld [vmem:[%s857_s1 + $0xf8] sm:$0xff]   ;;  %v675_v38 = vld [vmem:[%s857_s1 + $0x108] sm:$0xff]  }
   0xc   :  { %567 = vmatprep.subr.bf16.mxu0 %v648_v12  ;;  %v663_v27 = vld [vmem:[%s857_s1 + $0xb0] sm:$0xff]   ;;  %v669_v32 = vld [vmem:[%s858_s0 + $0x4] ss:$20 sps:$4 sm:$0xff]   ;;  %v671_v35 = vld [vmem:[%s858_s0 + $0x8] ss:$20 sps:$4 sm:$0xff]  }
   0xd   :  { %588 = vmatpush3.bf16.msra.mxu1 %v647_v11  ;;  %v667_v31 = vld [vmem:[%s858_s0] ss:$20 sps:$4 sm:$0xff]   ;;  %v670_v34 = vld [vmem:[%s857_s1 + $0xb8] sm:$0xff]   ;;  %404 = vmatprep.mubr.bf16.mxu0 %v669_v32  ;;  %v679_v42 = vld [vmem:[%s857_s1 + $0x128] sm:$0xff]  }
   0xe   :  { %589 = vmatprep.subr.bf16.mxu1 %v650_v14  ;;  %v676_v39 = vld [vmem:[%s857_s1 + $0x110] sm:$0xff]   ;;  %v677_v40 = vld [vmem:[%s857_s1 + $0x118] sm:$0xff]   ;;  %v678_v41 = vld [vmem:[%s857_s1 + $0x120] sm:$0xff]  }
   0xf   :  { %568 = vmatpush3.bf16.msra.mxu0 %v649_v13  ;;  %v680_v43 = vld [vmem:[%s857_s1 + $0x130] sm:$0xff]   ;;  %v681_v44 = vld [vmem:[%s857_s1 + $0x138] sm:$0xff]   ;;  %v513_v47 = vld [vmem:[%s859_s2] ss:$0 sm:$0xff] }
  0x10   :  { %569 = vmatprep.subr.bf16.mxu0 %v652_v16  ;;  %v682_v45 = vld [vmem:[%s858_s0 + $0x10] ss:$20 sps:$4 sm:$0xff]  }
  0x11   :  { %590 = vmatpush3.bf16.msra.mxu1 %v651_v15 }
  0x12   :  { %591 = vmatprep.subr.bf16.mxu1 %v654_v18 }
  0x13   :  { %570 = vmatpush3.bf16.msra.mxu0 %v653_v17 }
  0x14   :  { %571 = vmatprep.subr.bf16.mxu0 %v656_v20 }
  0x15   :  { %592 = vmatpush3.bf16.msra.mxu1 %v655_v19 }
  0x16   :  { %593 = vmatprep.subr.bf16.mxu1 %v658_v22 }
  0x17   :  { %572 = vmatpush3.bf16.msra.mxu0 %v657_v21 }
  0x18   :  { %573 = vmatprep.subr.bf16.mxu0 %v660_v24 }
  0x19   :  { %594 = vmatpush3.bf16.msra.mxu1 %v659_v23 }
  0x1a   :  { %595 = vmatprep.subr.bf16.mxu1 %v662_v26 }
  0x1b   :  { %574 = vmatpush3.bf16.msra.mxu0 %v661_v25 }
  0x1c   :  { %575 = vmatprep.subr.bf16.mxu0 %v664_v28 }
  0x1d   :  { %596 = vmatpush3.bf16.msra.mxu1 %v663_v27 }
  0x1e   :  { %597 = vmatprep.subr.bf16.mxu1 %v666_v30 }
  0x1f   :  { %576 = vmatpush3.bf16.msra.mxu0 %v665_v29 }
  0x20   :  { %614 = vmatprep.subr.bf16.mxu0 %v691_v33 }
  0x21   :  { %598 = vmatpush3.bf16.msra.mxu1 %v670_v34 }
  0x22   :  { %405 = vmatmul.mubr.bf16.vlgmr.msra.gmra.mrb[0].mxu0 %v667_v31 }
  0x23   :  { %630 = vmatprep.mubr.msk.bf16.mxu0 %vm692_vm0, %v691_v33  ;;  %615 = vmatpush3.bf16.msra.mxu0 %v674_v37 }
  0x24   :  { %446 = vmatmul.mubr.bf16.vlgmr.msra.gmra.mrb[0].mxu1 %v671_v35  ;;  %616 = vmatprep.subr.bf16.mxu0 %v691_v33 }
  0x27   :  { %617 = vmatpush3.bf16.msra.mxu0 %v675_v38 }
  0x28   :  { %618 = vmatprep.subr.bf16.mxu0 %v691_v33 }
  0x2b   :  { %619 = vmatpush3.bf16.msra.mxu0 %v676_v39 }
  0x2c   :  { %620 = vmatprep.subr.bf16.mxu0 %v691_v33 }
  0x2f   :  { %621 = vmatpush3.bf16.msra.mxu0 %v677_v40 }
  0x30   :  { %622 = vmatprep.subr.bf16.mxu0 %v691_v33 }
  0x33   :  { %623 = vmatpush3.bf16.msra.mxu0 %v678_v41 }
  0x34   :  { %624 = vmatprep.subr.bf16.mxu0 %v691_v33 }
  0x37   :  { %625 = vmatpush3.bf16.msra.mxu0 %v679_v42 }
  0x38   :  { %626 = vmatprep.subr.bf16.mxu0 %v691_v33 }
  0x3b   :  { %627 = vmatpush3.bf16.msra.mxu0 %v680_v43 }
  0x3c   :  { %628 = vmatprep.subr.bf16.mxu0 %v691_v33 }
  0x3f   :  { %629 = vmatpush3.bf16.msra.mxu0 %v681_v44 }
  0x42   :  { %631 = vmatmul.mubr.bf16.vlgmr.msra.gmra.mrb[4].mxu0 %v682_v45 }
  0xf5   :  { %v577_v46 = vpop.f32.mrb[0].mxu0 }
  0xf6   :  { %v578_v48 = vpop.f32.mrb[1].mxu0 }
  0xf7   :  { %v579_v49 = vadd.f32 %v578_v48, %v577_v46  ;;  %v580_v50 = vpop.f32.mrb[2].mxu0  ;;  %v599_v51 = vpop.f32.mrb[0].mxu1 }
  0xf8   :  { %v581_v52 = vpop.f32.mrb[3].mxu0  ;;  %v600_v55 = vpop.f32.mrb[1].mxu1 }
  0xf9   :  { %v407_v53 = vadd.f32 %v579_v49, %v513_v47  ;;  %v582_v54 = vadd.f32 %v581_v52, %v580_v50  ;;  %v601_v56 = vadd.f32 %v600_v55, %v599_v51  ;;  %v602_v57 = vpop.f32.mrb[2].mxu1 }
  0xfa   :  { %v603_v59 = vpop.f32.mrb[3].mxu1 }
  0xfb   :  { %v410_v58 = vadd.f32 %v582_v54, %v513_v47  ;;  %v604_v60 = vadd.f32 %v603_v59, %v602_v57  ;;  %v448_v61 = vadd.f32 %v601_v56, %v407_v53 }
  0xfd   :  { %v451_v62 = vadd.f32 %v604_v60, %v410_v58 }
 0x115   :  { %v488_v63 = vpop.f32.mrb[4].mxu0 }
 0x116   :  { %v489_v0 = vadd.f32 %v488_v63, %v448_v61  ;;  %v632_v1 = vpop.f32.mrb[5].mxu0 }
 0x117   :  { %v491_v2 = vpop.f32.mrb[6].mxu0 }
 0x118   :  { %v559_v3 = vmul.f32 -1.442695, %v489_v0  ;;  %v492_v4 = vadd.f32 %v491_v2, %v451_v62  ;;  %v633_v5 = vpop.f32.mrb[7].mxu0 }
 0x11a   :  { %683 = vpow2.f32 %v559_v3  ;;  %v560_v6 = vmul.f32 -1.442695, %v492_v4 }
 0x11c   :  { %685 = vpow2.f32 %v560_v6 }
 0x124   :  { %v684_v7 = vpop.eup %683 }
 0x125   :  { %v501_v8 = vadd.f32 1.0, %v684_v7 }
 0x126   :  { %v686_v9 = vpop.eup %685 }
 0x127   :  { %687 = vrcp.f32 %v501_v8  ;;  %v502_v10 = vadd.f32 1.0, %v686_v9 }
 0x129   :  { %689 = vrcp.f32 %v502_v10 }
 0x131   :  { %v688_v11 = vpop.eup %687 }
 0x132   :  { %507 = vst [vmem:[%s860_s3] sm:$0xff] %v688_v11 }
 0x133   :  { %v690_v12 = vpop.eup %689 }
 0x134   :  { %508 = vst [vmem:[%s860_s3 + $0x8] sm:$0xff] %v690_v12 }

// kernel: forward.10
= control target key start
LH: loop header
LB: loop body
LE: loop exit
PB: predicated region body
PF: predicated region fallthrough
CT: control target
= control target key end

     0   :  { %vm871_vm0 = vcmask 1040384   ;;  %s1466_s1 = inlined_call_operand.vmem [shape: bf16[1024,128], index: 1, kind: input, shape index: {}]   ;;  %s1467_s0 = inlined_call_operand.vmem [shape: bf16[32,1024], index: 0, kind: input, shape index: {}]   ;;  %s1468_s2 = inlined_call_operand.vmem [shape: f32[8,128], index: 2, kind: input, shape index: {}]   ;;  %s1469_s3 = inlined_call_operand.vmem [shape: f32[32,128], index: 3, kind: output, shape index: {}]  }
   0x1   :  { %v1115_v0 = vld [vmem:[%s1466_s1 + $0x40] sm:$0xff]   ;;  %v1119_v4 = vld [vmem:[%s1466_s1 + $0x48] sm:$0xff]   ;;  %v1123_v8 = vld [vmem:[%s1466_s1 + $0x50] sm:$0xff]  }
   0x2   :  { %v1116_v1 = vld [vmem:[%s1466_s1 + $0xc0] sm:$0xff]   ;;  %1003 = vmatprep.subr.bf16.mxu0 %v1115_v0  ;;  %v1120_v5 = vld [vmem:[%s1466_s1 + $0xc8] sm:$0xff]   ;;  %v1124_v9 = vld [vmem:[%s1466_s1 + $0xd0] sm:$0xff]  }
   0x3   :  { %v1117_v2 = vld [vmem:[%s1466_s1] sm:$0xff]   ;;  %1031 = vmatprep.subr.bf16.mxu1 %v1116_v1  ;;  %v1121_v6 = vld [vmem:[%s1466_s1 + $0x8] sm:$0xff]   ;;  %v1125_v10 = vld [vmem:[%s1466_s1 + $0x10] sm:$0xff]  }
   0x4   :  { %v1118_v3 = vld [vmem:[%s1466_s1 + $0x80] sm:$0xff]   ;;  %1004 = vmatpush3.bf16.msra.mxu0 %v1117_v2  ;;  %v1122_v7 = vld [vmem:[%s1466_s1 + $0x88] sm:$0xff]   ;;  %v1126_v11 = vld [vmem:[%s1466_s1 + $0x90] sm:$0xff]  }
   0x5   :  { %1032 = vmatpush3.bf16.msra.mxu1 %v1118_v3  ;;  %1005 = vmatprep.subr.bf16.mxu0 %v1119_v4  ;;  %v1127_v12 = vld [vmem:[%s1466_s1 + $0x58] sm:$0xff]   ;;  %v1131_v16 = vld [vmem:[%s1466_s1 + $0x60] sm:$0xff]   ;;  %v1135_v20 = vld [vmem:[%s1466_s1 + $0x68] sm:$0xff]  }
   0x6   :  { %1033 = vmatprep.subr.bf16.mxu1 %v1120_v5  ;;  %v1128_v13 = vld [vmem:[%s1466_s1 + $0xd8] sm:$0xff]   ;;  %v1132_v17 = vld [vmem:[%s1466_s1 + $0xe0] sm:$0xff]   ;;  %v1136_v21 = vld [vmem:[%s1466_s1 + $0xe8] sm:$0xff]  }
   0x7   :  { %v1129_v14 = vld [vmem:[%s1466_s1 + $0x18] sm:$0xff]   ;;  %v1133_v18 = vld [vmem:[%s1466_s1 + $0x20] sm:$0xff]   ;;  %v1137_v22 = vld [vmem:[%s1466_s1 + $0x28] sm:$0xff]  }
   0x8   :  { %1006 = vmatpush3.bf16.msra.mxu0 %v1121_v6  ;;  %v1130_v15 = vld [vmem:[%s1466_s1 + $0x98] sm:$0xff]   ;;  %v1134_v19 = vld [vmem:[%s1466_s1 + $0xa0] sm:$0xff]   ;;  %v1138_v23 = vld [vmem:[%s1466_s1 + $0xa8] sm:$0xff]  }
   0x9   :  { %1034 = vmatpush3.bf16.msra.mxu1 %v1122_v7  ;;  %1007 = vmatprep.subr.bf16.mxu0 %v1123_v8  ;;  %v1139_v24 = vld [vmem:[%s1466_s1 + $0x70] sm:$0xff]   ;;  %v1143_v28 = vld [vmem:[%s1466_s1 + $0x78] sm:$0xff]   ;;  %v21_v32 = vld [vmem:[%s1467_s0] sm:$0xff] }
   0xa   :  { %1035 = vmatprep.subr.bf16.mxu1 %v1124_v9  ;;  %v1140_v25 = vld [vmem:[%s1466_s1 + $0xf0] sm:$0xff]   ;;  %v1144_v29 = vld [vmem:[%s1466_s1 + $0xf8] sm:$0xff]   ;;  %v25_v33 = vld [vmem:[%s1467_s0 + $0x20] sm:$0xff] }
   0xb   :  { %v1141_v26 = vld [vmem:[%s1466_s1 + $0x30] sm:$0xff]   ;;  %v1145_v30 = vld [vmem:[%s1466_s1 + $0x38] sm:$0xff]   ;;  %v22_v34 = vld [vmem:[%s1467_s0 + $0x8] sm:$0xff]  ;;  %v923_v35 = vcombine.low %v21_v32, %v25_v33  ;;  %v924_v36 = vcombine.high %v21_v32, %v25_v33 }
   0xc   :  { %1008 = vmatpush3.bf16.msra.mxu0 %v1125_v10  ;;  %v1142_v27 = vld [vmem:[%s1466_s1 + $0xb0] sm:$0xff]   ;;  %v1146_v31 = vld [vmem:[%s1466_s1 + $0xb8] sm:$0xff]   ;;  %v26_v37 = vld [vmem:[%s1467_s0 + $0x28] sm:$0xff] }
   0xd   :  { %1036 = vmatpush3.bf16.msra.mxu1 %v1126_v11  ;;  %1009 = vmatprep.subr.bf16.mxu0 %v1127_v12  ;;  %v925_v38 = vcombine.low %v22_v34, %v26_v37  ;;  %v926_v39 = vcombine.high %v22_v34, %v26_v37  ;;  %v1147_v40 = vld [vmem:[%s1466_s1 + $0x140] sm:$0xff]   ;;  %v1151_v44 = vld [vmem:[%s1466_s1 + $0x148] sm:$0xff]   ;;  %v1155_v48 = vld [vmem:[%s1466_s1 + $0x150] sm:$0xff]  }
   0xe   :  { %1037 = vmatprep.subr.bf16.mxu1 %v1128_v13  ;;  %661 = vmatprep.mubr.bf16.mxu0 %v924_v36  ;;  %v1148_v41 = vld [vmem:[%s1466_s1 + $0x1c0] sm:$0xff]   ;;  %v1152_v45 = vld [vmem:[%s1466_s1 + $0x1c8] sm:$0xff]   ;;  %v1156_v49 = vld [vmem:[%s1466_s1 + $0x1d0] sm:$0xff]  }
   0xf   :  { %710 = vmatprep.mubr.bf16.mxu1 %v926_v39  ;;  %v1149_v42 = vld [vmem:[%s1466_s1 + $0x100] sm:$0xff]   ;;  %v1153_v46 = vld [vmem:[%s1466_s1 + $0x108] sm:$0xff]   ;;  %v1157_v50 = vld [vmem:[%s1466_s1 + $0x110] sm:$0xff]  }
  0x10   :  { %1010 = vmatpush3.bf16.msra.mxu0 %v1129_v14  ;;  %v1150_v43 = vld [vmem:[%s1466_s1 + $0x180] sm:$0xff]   ;;  %v1154_v47 = vld [vmem:[%s1466_s1 + $0x188] sm:$0xff]   ;;  %v1158_v51 = vld [vmem:[%s1466_s1 + $0x190] sm:$0xff]  }
  0x11   :  { %1038 = vmatpush3.bf16.msra.mxu1 %v1130_v15  ;;  %1011 = vmatprep.subr.bf16.mxu0 %v1131_v16  ;;  %v1159_v52 = vld [vmem:[%s1466_s1 + $0x158] sm:$0xff]   ;;  %v1163_v56 = vld [vmem:[%s1466_s1 + $0x160] sm:$0xff]   ;;  %v30_v63 = vld [vmem:[%s1467_s0 + $0x48] sm:$0xff] }
  0x12   :  { %1039 = vmatprep.subr.bf16.mxu1 %v1132_v17  ;;  %v1160_v53 = vld [vmem:[%s1466_s1 + $0x1d8] sm:$0xff]   ;;  %v1164_v57 = vld [vmem:[%s1466_s1 + $0x1e0] sm:$0xff]   ;;  %v34_v0 = vld [vmem:[%s1467_s0 + $0x68] sm:$0xff] }
  0x13   :  { %v1161_v54 = vld [vmem:[%s1466_s1 + $0x118] sm:$0xff]   ;;  %v1165_v58 = vld [vmem:[%s1466_s1 + $0x120] sm:$0xff]   ;;  %v934_v2 = vcombine.high %v30_v63, %v34_v0  ;;  %v1167_v3 = vld [vmem:[%s1466_s1 + $0x168] sm:$0xff]   ;;  %v933_v4 = vcombine.low %v30_v63, %v34_v0 }
  0x14   :  { %1012 = vmatpush3.bf16.msra.mxu0 %v1133_v18  ;;  %v1162_v55 = vld [vmem:[%s1466_s1 + $0x198] sm:$0xff]   ;;  %v1166_v59 = vld [vmem:[%s1466_s1 + $0x1a0] sm:$0xff]   ;;  %v1168_v5 = vld [vmem:[%s1466_s1 + $0x1e8] sm:$0xff]  }
  0x15   :  { %1040 = vmatpush3.bf16.msra.mxu1 %v1134_v19  ;;  %1013 = vmatprep.subr.bf16.mxu0 %v1135_v20  ;;  %v29_v60 = vld [vmem:[%s1467_s0 + $0x40] sm:$0xff]  ;;  %v1169_v6 = vld [vmem:[%s1466_s1 + $0x128] sm:$0xff]   ;;  %v1171_v8 = vld [vmem:[%s1466_s1 + $0x170] sm:$0xff]  }
  0x16   :  { %1041 = vmatprep.subr.bf16.mxu1 %v1136_v21  ;;  %v33_v61 = vld [vmem:[%s1467_s0 + $0x60] sm:$0xff]  ;;  %v1170_v7 = vld [vmem:[%s1466_s1 + $0x1a8] sm:$0xff]   ;;  %v1172_v9 = vld [vmem:[%s1466_s1 + $0x1f0] sm:$0xff]  }
  0x17   :  { %v932_v62 = vcombine.high %v29_v60, %v33_v61  ;;  %v931_v1 = vcombine.low %v29_v60, %v33_v61  ;;  %v1173_v10 = vld [vmem:[%s1466_s1 + $0x130] sm:$0xff]   ;;  %v1175_v12 = vld [vmem:[%s1466_s1 + $0x178] sm:$0xff]  }
  0x18   :  { %1014 = vmatpush3.bf16.msra.mxu0 %v1137_v22  ;;  %v1174_v11 = vld [vmem:[%s1466_s1 + $0x1b0] sm:$0xff]   ;;  %v1176_v13 = vld [vmem:[%s1466_s1 + $0x1f8] sm:$0xff]  }
  0x19   :  { %1042 = vmatpush3.bf16.msra.mxu1 %v1138_v23  ;;  %1015 = vmatprep.subr.bf16.mxu0 %v1139_v24  ;;  %v1177_v14 = vld [vmem:[%s1466_s1 + $0x138] sm:$0xff]   ;;  %v23_v16 = vld [vmem:[%s1467_s0 + $0x10] sm:$0xff] }
  0x1a   :  { %1043 = vmatprep.subr.bf16.mxu1 %v1140_v25  ;;  %v1178_v15 = vld [vmem:[%s1466_s1 + $0x1b8] sm:$0xff]   ;;  %v27_v17 = vld [vmem:[%s1467_s0 + $0x30] sm:$0xff] }
  0x1b   :  { %v24_v18 = vld [vmem:[%s1467_s0 + $0x18] sm:$0xff]  ;;  %v927_v20 = vcombine.low %v23_v16, %v27_v17  ;;  %v928_v21 = vcombine.high %v23_v16, %v27_v17  ;;  %v31_v24 = vld [vmem:[%s1467_s0 + $0x50] sm:$0xff] }
  0x1c   :  { %1016 = vmatpush3.bf16.msra.mxu0 %v1141_v26  ;;  %v28_v19 = vld [vmem:[%s1467_s0 + $0x38] sm:$0xff]  ;;  %v35_v25 = vld [vmem:[%s1467_s0 + $0x70] sm:$0xff] }
  0x1d   :  { %1044 = vmatpush3.bf16.msra.mxu1 %v1142_v27  ;;  %1017 = vmatprep.subr.bf16.mxu0 %v1143_v28  ;;  %v929_v22 = vcombine.low %v24_v18, %v28_v19  ;;  %v930_v23 = vcombine.high %v24_v18, %v28_v19  ;;  %v32_v26 = vld [vmem:[%s1467_s0 + $0x58] sm:$0xff]  ;;  %v936_v27 = vcombine.high %v31_v24, %v35_v25 }
  0x1e   :  { %1045 = vmatprep.subr.bf16.mxu1 %v1144_v29  ;;  %v36_v28 = vld [vmem:[%s1467_s0 + $0x78] sm:$0xff]  ;;  %v1446_v29 = vld [vmem:[%s1468_s2] sm:$0x1]  ;;  %v935_v33 = vcombine.low %v31_v24, %v35_v25 }
  0x1f   :  { %v937_v34 = vcombine.low %v32_v26, %v36_v28 }
  0x20   :  { %1018 = vmatpush3.bf16.msra.mxu0 %v1145_v30  ;;  %v938_v30 = vcombine.high %v32_v26, %v36_v28 }
  0x21   :  { %1046 = vmatpush3.bf16.msra.mxu1 %v1146_v31  ;;  %1059 = vmatprep.subr.bf16.mxu0 %v1147_v40  ;;  %v870_v31 = vmul.f32 %v1446_v29, %v1446_v29 }
  0x22   :  { %1087 = vmatprep.subr.bf16.mxu1 %v1148_v41 }
  0x23   :  { %662 = vmatmul.mubr.bf16.vlgmr.msra.gmra.mrb[0].mxu0 %v923_v35  ;;  %v872_v32 = vsel %vm871_vm0, %v870_v31, 0.0 }
  0x24   :  { %711 = vmatmul.mubr.bf16.vlgmr.msra.gmra.mrb[0].mxu1 %v925_v38  ;;  %1060 = vmatpush3.bf16.msra.mxu0 %v1149_v42 }
  0x25   :  { %1088 = vmatpush3.bf16.msra.mxu1 %v1150_v43  ;;  %1061 = vmatprep.subr.bf16.mxu0 %v1151_v44 }
  0x26   :  { %1089 = vmatprep.subr.bf16.mxu1 %v1152_v45  ;;  %669 = vmatprep.mubr.bf16.mxu0 %v932_v62 }
  0x27   :  { %718 = vmatprep.mubr.bf16.mxu1 %v934_v2  ;;  %873 = vadd.xlane.f32.xlu0 %v872_v32 }
  0x28   :  { %1062 = vmatpush3.bf16.msra.mxu0 %v1153_v46 }
  0x29   :  { %1090 = vmatpush3.bf16.msra.mxu1 %v1154_v47  ;;  %1063 = vmatprep.subr.bf16.mxu0 %v1155_v48 }
  0x2a   :  { %1091 = vmatprep.subr.bf16.mxu1 %v1156_v49 }
  0x2b   :  { %670 = vmatmul.mubr.bf16.gmra.mrb[4].mxu0 %v931_v1 }
  0x2c   :  { %1064 = vmatpush3.bf16.msra.mxu0 %v1157_v50  ;;  %719 = vmatmul.mubr.bf16.gmra.mrb[4].mxu1 %v933_v4 }
  0x2d   :  { %1092 = vmatpush3.bf16.msra.mxu1 %v1158_v51  ;;  %1065 = vmatprep.subr.bf16.mxu0 %v1159_v52 }
  0x2e   :  { %1093 = vmatprep.subr.bf16.mxu1 %v1160_v53  ;;  %759 = vmatprep.mubr.bf16.mxu0 %v928_v21 }
  0x2f   :  { %808 = vmatprep.mubr.bf16.mxu1 %v930_v23 }
  0x30   :  { %1066 = vmatpush3.bf16.msra.mxu0 %v1161_v54 }
  0x31   :  { %1094 = vmatpush3.bf16.msra.mxu1 %v1162_v55  ;;  %1067 = vmatprep.subr.bf16.mxu0 %v1163_v56 }
  0x32   :  { %1095 = vmatprep.subr.bf16.mxu1 %v1164_v57 }
  0x34   :  { %1068 = vmatpush3.bf16.msra.mxu0 %v1165_v58 }
  0x35   :  { %1096 = vmatpush3.bf16.msra.mxu1 %v1166_v59  ;;  %1069 = vmatprep.subr.bf16.mxu0 %v1167_v3 }
  0x36   :  { %1097 = vmatprep.subr.bf16.mxu1 %v1168_v5 }
  0x38   :  { %1070 = vmatpush3.bf16.msra.mxu0 %v1169_v6 }
  0x39   :  { %1098 = vmatpush3.bf16.msra.mxu1 %v1170_v7  ;;  %1071 = vmatprep.subr.bf16.mxu0 %v1171_v8 }
  0x3a   :  { %1099 = vmatprep.subr.bf16.mxu1 %v1172_v9 }
  0x3c   :  { %1072 = vmatpush3.bf16.msra.mxu0 %v1173_v10 }
  0x3d   :  { %1100 = vmatpush3.bf16.msra.mxu1 %v1174_v11  ;;  %1073 = vmatprep.subr.bf16.mxu0 %v1175_v12 }
  0x3e   :  { %1101 = vmatprep.subr.bf16.mxu1 %v1176_v13 }
  0x40   :  { %1074 = vmatpush3.bf16.msra.mxu0 %v1177_v14 }
  0x41   :  { %1102 = vmatpush3.bf16.msra.mxu1 %v1178_v15 }
  0x43   :  { %760 = vmatmul.mubr.bf16.vlgmr.msra.gmra.mrb[8].mxu0 %v927_v20 }
  0x44   :  { %809 = vmatmul.mubr.bf16.vlgmr.msra.gmra.mrb[8].mxu1 %v929_v22  ;;  %767 = vmatprep.mubr.bf16.mxu0 %v936_v27 }
  0x45   :  { %816 = vmatprep.mubr.bf16.mxu1 %v938_v30 }
  0x4b   :  { %768 = vmatmul.mubr.bf16.gmra.mrb[12].mxu0 %v935_v33 }
  0x4c   :  { %817 = vmatmul.mubr.bf16.gmra.mrb[12].mxu1 %v937_v34 }
  0xf6   :  { %v1019_v35 = vpop.f32.mrb[0].mxu0 }
  0xf7   :  { %v1047_v36 = vpop.f32.mrb[0].mxu1  ;;  %v1020_v37 = vpop.f32.mrb[1].mxu0 }
  0xf8   :  { %v1021_v38 = vadd.f32 %v1020_v37, %v1019_v35  ;;  %v1048_v39 = vpop.f32.mrb[1].mxu1  ;;  %v1022_v40 = vpop.f32.mrb[2].mxu0 }
  0xf9   :  { %v1049_v41 = vadd.f32 %v1048_v39, %v1047_v36  ;;  %v1050_v42 = vpop.f32.mrb[2].mxu1  ;;  %v1023_v43 = vpop.f32.mrb[3].mxu0 }
  0xfa   :  { %v1024_v44 = vadd.f32 %v1023_v43, %v1022_v40  ;;  %v1051_v45 = vpop.f32.mrb[3].mxu1 }
  0xfb   :  { %v713_v46 = vadd.f32 %v1049_v41, %v1021_v38  ;;  %v1052_v47 = vadd.f32 %v1051_v45, %v1050_v42 }
  0xfd   :  { %v716_v48 = vadd.f32 %v1052_v47, %v1024_v44 }
  0xfe   :  { %v1025_v49 = vpop.f32.mrb[4].mxu0 }
  0xff   :  { %v1053_v50 = vpop.f32.mrb[4].mxu1  ;;  %v1026_v51 = vpop.f32.mrb[5].mxu0 }
 0x100   :  { %v1027_v52 = vadd.f32 %v1026_v51, %v1025_v49  ;;  %v1054_v53 = vpop.f32.mrb[5].mxu1  ;;  %v1028_v54 = vpop.f32.mrb[6].mxu0 }
 0x101   :  { %v1055_v55 = vadd.f32 %v1054_v53, %v1053_v50  ;;  %v1056_v56 = vpop.f32.mrb[6].mxu1  ;;  %v1029_v57 = vpop.f32.mrb[7].mxu0 }
 0x102   :  { %v1030_v58 = vadd.f32 %v1029_v57, %v1028_v54  ;;  %v1057_v59 = vpop.f32.mrb[7].mxu1  ;;  %v874_v49 = vpop.xlane.xlu0 %873 }
 0x103   :  { %v721_v60 = vadd.f32 %v1055_v55, %v1027_v52  ;;  %v1058_v61 = vadd.f32 %v1057_v59, %v1056_v56  ;;  %v875_v54 = vadd.f32 1e-12, %v874_v49 }
 0x105   :  { %v724_v62 = vadd.f32 %v1058_v61, %v1030_v58  ;;  %1179 = vrsqrt.f32 %v875_v54  ;;  %v887_v61 = vlaneseq }
 0x116   :  { %v1075_v63 = vpop.f32.mrb[8].mxu0 }
 0x117   :  { %v1103_v0 = vpop.f32.mrb[8].mxu1  ;;  %v1076_v1 = vpop.f32.mrb[9].mxu0 }
 0x118   :  { %v1104_v2 = vpop.f32.mrb[9].mxu1  ;;  %v1077_v3 = vadd.f32 %v1076_v1, %v1075_v63  ;;  %v1078_v5 = vpop.f32.mrb[10].mxu0  ;;  %v888_v63 = vshrl.u32 %v887_v61, 7 }
 0x119   :  { %v1105_v4 = vadd.f32 %v1104_v2, %v1103_v0  ;;  %v1106_v6 = vpop.f32.mrb[10].mxu1  ;;  %v1079_v7 = vpop.f32.mrb[11].mxu0 }
 0x11a   :  { %v1107_v8 = vpop.f32.mrb[11].mxu1  ;;  %v762_v9 = vadd.f32 %v1077_v3, %v713_v46  ;;  %v1080_v10 = vadd.f32 %v1079_v7, %v1078_v5  ;;  %v889_v1 = vsub.s32 0, %v888_v63 }
 0x11b   :  { %v1108_v11 = vadd.f32 %v1107_v8, %v1106_v6 }
 0x11c   :  { %v811_v12 = vadd.f32 %v1105_v4, %v762_v9  ;;  %v765_v13 = vadd.f32 %v1080_v10, %v716_v48  ;;  %v869_v4 = vld [vmem:[%s1468_s2 + $0x1] sm:$0x1] }
 0x11e   :  { %v814_v14 = vadd.f32 %v1108_v11, %v765_v13  ;;  %v1081_v15 = vpop.f32.mrb[12].mxu0  ;;  %v838_v17 = vmul.f32 %v811_v12, %v811_v12 }
 0x11f   :  { %v1109_v16 = vpop.f32.mrb[12].mxu1  ;;  %v1082_v18 = vpop.f32.mrb[13].mxu0 }
 0x120   :  { %v1110_v19 = vpop.f32.mrb[13].mxu1  ;;  %v832_v20 = vadd.f32 %v814_v14, %v811_v12  ;;  %v839_v21 = vmul.f32 %v814_v14, %v814_v14  ;;  %v1083_v22 = vadd.f32 %v1082_v18, %v1081_v15  ;;  %v1084_v24 = vpop.f32.mrb[14].mxu0 }
 0x121   :  { %v1111_v23 = vadd.f32 %v1110_v19, %v1109_v16  ;;  %v1112_v25 = vpop.f32.mrb[14].mxu1  ;;  %v1085_v26 = vpop.f32.mrb[15].mxu0 }
 0x122   :  { %v1113_v27 = vpop.f32.mrb[15].mxu1  ;;  %v842_v28 = vadd.f32 %v839_v21, %v838_v17  ;;  %v770_v30 = vadd.f32 %v1083_v22, %v721_v60  ;;  %v1086_v31 = vadd.f32 %v1085_v26, %v1084_v24 }
 0x123   :  { %v1114_v32 = vadd.f32 %v1113_v27, %v1112_v25 }
 0x124   :  { %v819_v33 = vadd.f32 %v1111_v23, %v770_v30  ;;  %v773_v34 = vadd.f32 %v1086_v31, %v724_v62  ;;  %v1180_v62 = vpop.eup %1179 }
 0x125   :  { %v877_v0 = vmul.f32 %v1180_v62, %v1446_v29 }
 0x126   :  { %v833_v35 = vadd.f32 %v832_v20, %v819_v33  ;;  %v840_v36 = vmul.f32 %v819_v33, %v819_v33  ;;  %v822_v37 = vadd.f32 %v1114_v32, %v773_v34 }
 0x128   :  { %v843_v38 = vadd.f32 %v842_v28, %v840_v36  ;;  %v834_v39 = vadd.f32 %v833_v35, %v822_v37  ;;  %v841_v40 = vmul.f32 %v822_v37, %v822_v37 }
 0x12a   :  { %v844_v41 = vadd.f32 %v843_v38, %v841_v40  ;;  %v851_v42 = vrot.slane %v834_v39, 4 }
 0x12c   :  { %v852_v43 = vadd.f32 %v851_v42, %v834_v39  ;;  %v858_v44 = vrot.slane %v844_v41, 4 }
 0x12e   :  { %v853_v45 = vrot.slane %v852_v43, 2  ;;  %v859_v46 = vadd.f32 %v858_v44, %v844_v41 }
 0x130   :  { %v854_v47 = vadd.f32 %v853_v45, %v852_v43  ;;  %v860_v48 = vrot.slane %v859_v46, 2 }
 0x132   :  { %v855_v50 = vrot.slane %v854_v47, 1  ;;  %v861_v51 = vadd.f32 %v860_v48, %v859_v46 }
 0x134   :  { %v856_v52 = vadd.f32 %v855_v50, %v854_v47  ;;  %v862_v53 = vrot.slane %v861_v51, 1 }
 0x136   :  { %v863_v55 = vadd.f32 %v862_v53, %v861_v51  ;;  %v864_v56 = vmul.f32 0.055555556, %v856_v52 }
 0x138   :  { %v865_v57 = vmul.f32 0.055555556, %v863_v55  ;;  %v866_v58 = vmul.f32 %v864_v56, %v864_v56 }
 0x13a   :  { %v867_v59 = vsub.f32 %v865_v57, %v866_v58 }
 0x13c   :  { %v878_v60 = vadd.f32 1e-05, %v867_v59 }
 0x13e   :  { %1181 = vrsqrt.f32 %v878_v60 }
 0x148   :  { %v1182_v2 = vpop.eup %1181 }
 0x149   :  { %v880_v3 = vmul.f32 %v1182_v2, %v877_v0 }
 0x14b   :  { %v881_v5 = vmul.f32 %v880_v3, %v864_v56  ;;  %v890_v6 = vrot.slane %v880_v3, %v889_v1 }
 0x14d   :  { %v882_v7 = vsub.f32 %v869_v4, %v881_v5  ;;  %v891_v8 = vmul.f32 %v890_v6, %v811_v12  ;;  %v892_v9 = vmul.f32 %v890_v6, %v814_v14  ;;  %v893_v10 = vmul.f32 %v890_v6, %v819_v33 }
 0x14e   :  { %v894_v11 = vmul.f32 %v890_v6, %v822_v37 }
 0x14f   :  { %v898_v13 = vrot.slane %v882_v7, %v889_v1 }
 0x151   :  { %v899_v15 = vadd.f32 %v898_v13, %v891_v8  ;;  %v900_v16 = vadd.f32 %v898_v13, %v892_v9  ;;  %v901_v17 = vadd.f32 %v898_v13, %v893_v10  ;;  %v902_v18 = vadd.f32 %v898_v13, %v894_v11 }
 0x153   :  { %vm903_vm1 = vcmp.gt.f32.partialorder %v899_v15, 0.0  ;;  %vm904_vm2 = vcmp.gt.f32.partialorder %v900_v16, 0.0  ;;  %vm905_vm3 = vcmp.gt.f32.partialorder %v901_v17, 0.0  ;;  %vm906_vm4 = vcmp.gt.f32.partialorder %v902_v18, 0.0 }
 0x154   :  { %v907_v29 = vmul.f32 0.2, %v899_v15  ;;  %v908_v19 = vmul.f32 0.2, %v900_v16  ;;  %v909_v20 = vmul.f32 0.2, %v901_v17 }
 0x155   :  { %v910_v21 = vmul.f32 0.2, %v902_v18 }
 0x156   :  { %v911_v22 = vsel %vm903_vm1, %v899_v15, %v907_v29  ;;  %v912_v23 = vsel %vm904_vm2, %v900_v16, %v908_v19  ;;  %v913_v24 = vsel %vm905_vm3, %v901_v17, %v909_v20 }
 0x157   :  { %v914_v12 = vsel %vm906_vm4, %v902_v18, %v910_v21  ;;  %915 = vst [vmem:[%s1469_s3] sm:$0xff] %v911_v22  ;;  %916 = vst [vmem:[%s1469_s3 + $0x8] sm:$0xff] %v912_v23 }
 0x158   :  { %917 = vst [vmem:[%s1469_s3 + $0x10] sm:$0xff] %v913_v24  ;;  %918 = vst [vmem:[%s1469_s3 + $0x18] sm:$0xff] %v914_v12 }

</bundles_post_ra>
